<compile_context>
chip_gen: v6e
topology: v6e:2x2x1
jax: 0.10.0
libtpu: 0.0.40
codegen_flags: <defaults>
</compile_context>

<pallas_src>
import jax
import jax.numpy as jnp
import numpy as np
from jax.experimental import pallas as pl
from jax.experimental.pallas import tpu as pltpu

K = 8  # conv kernel size (fixed by the module)

PARAM_ORDER = ['e1_w', 'e1_b', 'e2_w', 'e2_b', 'e3_w', 'e3_b',
               'd1_w', 'd1_b', 'd2_w', 'd2_b', 'd3_w', 'd3_b',
               'lin2_w', 'lin2_b']


# ----------------------------------------------------------------------------
# Fused Pallas kernel: one grid step = one batch element through the whole net
# ----------------------------------------------------------------------------
def cnn_ae_kernel(x_ref,
                  e1w_ref, e1b_ref, e2w_ref, e2b_ref, e3w_ref, e3b_ref,
                  d1w_ref, d1b_ref, d2w_ref, d2b_ref, d3w_ref, d3b_ref,
                  l2w_ref, l2b_ref,
                  dec_ref, enc_ref):

    def conv_bn_relu(h, w_ref, b_ref, pad):
        """Conv1d(k=8,s=1) + folded-BN bias + ReLU via a single im2col matmul."""
        Cin, Lin = h.shape
        Lout = Lin + 2 * pad - K + 1
        zp = jnp.zeros((Cin, pad), jnp.float32)
        hp = jnp.concatenate([zp, h, zp], axis=1)                 # (Cin, Lin+2p)
        xcol = jnp.concatenate([hp[:, k:k + Lout] for k in range(K)], axis=0)
        y = jnp.dot(w_ref[...], xcol,                             # (Cout, Lout)
                    preferred_element_type=jnp.float32) + b_ref[...]
        return jnp.maximum(y, 0.0)

    def maxpool(h):
        """MaxPool1d(kernel=2, stride=2, padding=1, return_indices=True).

        Inputs are post-ReLU (>= 0), so a finite pad of -1 reproduces PyTorch's
        -inf padding exactly (and avoids -inf*0 NaNs in the selection matmul).
        Returns pooled values and a {0,1} float marking whether the right
        element of each window won (the 'index' needed by the unpool).
        """
        C, L = h.shape
        Lout = L // 2 + 1
        P = 2 * Lout
        padl = jnp.full((C, 1), -1.0, jnp.float32)
        padr = jnp.full((C, P - L), -1.0, jnp.float32)
        hpe = jnp.concatenate([padl, h, padr], axis=1)            # (C, P + 1)
        a = hpe[:, 0:P]
        b = hpe[:, 1:P + 1]
        m = jnp.maximum(a, b)
        tsec = (b > a).astype(jnp.float32)
        # downsample by 2 (pick columns 2*i) with a 0/1 selection matmul
        jj = jax.lax.broadcasted_iota(jnp.int32, (P, Lout), 0)
        ii = jax.lax.broadcasted_iota(jnp.int32, (P, Lout), 1)
        sel = (jj == 2 * ii).astype(jnp.float32)                  # (P, Lout)
        vals = jnp.dot(m, sel, preferred_element_type=jnp.float32)
        tsel = jnp.dot(tsec, sel, preferred_element_type=jnp.float32)
        return vals, tsel

    def maxunpool(vals, tsel):
        """MaxUnpool1d(kernel=2, stride=2, padding=1), scatter-free.

        out[2i]   gets vals[i] if the right element won (tsel=1)
        out[2i-1] gets vals[i] if the left  element won (tsel=0)
        TODO(synk): indices past the output end (PyTorch raises) are dropped.
        """
        C, Lin = vals.shape
        Lout = 2 * Lin - 2
        ii = jax.lax.broadcasted_iota(jnp.int32, (Lin, Lout), 0)
        jj = jax.lax.broadcasted_iota(jnp.int32, (Lin, Lout), 1)
        right = (jj == 2 * ii).astype(jnp.float32)
        left = (jj == 2 * ii - 1).astype(jnp.float32)
        return (jnp.dot(vals * tsel, right, preferred_element_type=jnp.float32) +
                jnp.dot(vals * (1.0 - tsel), left, preferred_element_type=jnp.float32))

    # ---------------- encoder ----------------
    h = x_ref[0].astype(jnp.float32)                              # (8, 100)
    h = conv_bn_relu(h, e1w_ref, e1b_ref, pad=4)                  # (32, 101)
    h, ts1 = maxpool(h)                                           # (32, 51)
    # TODO(synk): Dropout(0.35) -> identity (eval semantics).
    h = conv_bn_relu(h, e2w_ref, e2b_ref, pad=4)                  # (64, 52)
    h, ts2 = maxpool(h)                                           # (64, 27)
    h = conv_bn_relu(h, e3w_ref, e3b_ref, pad=4)                  # (128, 28)
    enc, ts3 = maxpool(h)                                         # (128, 15)
    enc_ref[0] = enc.astype(enc_ref.dtype)

    # ---------------- decoder ----------------
    # ConvTranspose1d(k=8,s=1,p=4) == Conv1d with flipped/transposed taps, pad=3
    d = maxunpool(enc, ts3)                                       # (128, 28)
    d = conv_bn_relu(d, d1w_ref, d1b_ref, pad=3)                  # (64, 27)
    # lin1 = Identity (n_channels == 6)
    d = maxunpool(d, ts2)                                         # (64, 52)
    d = conv_bn_relu(d, d2w_ref, d2b_ref, pad=3)                  # (32, 51)
    d = maxunpool(d, ts1)                                         # (32, 100)
    d = conv_bn_relu(d, d3w_ref, d3b_ref, pad=3)                  # (8, 99)
    d = jnp.dot(d, l2w_ref[...],                                  # lin2: (8, 100)
                preferred_element_type=jnp.float32) + l2b_ref[...]
    dec_ref[0] = d.astype(dec_ref.dtype)


# ----------------------------------------------------------------------------
# Wrapper
# ----------------------------------------------------------------------------
def cnn_ae_forward(params, x):
    """x: (B, L=100, C=6)  ->  (x_decoded (B,100,6), x_encoded (B, 1920))."""
    B, L, C = x.shape
    # one-time input prep: NCL layout, channels zero-padded 6 -> 8
    h = jnp.transpose(x, (0, 2, 1))                               # (B, 6, 100)
    h = jnp.pad(h, ((0, 0), (0, 8 - C), (0, 0)))                  # (B, 8, 100)

    weight_args = [params[k] for k in PARAM_ORDER]
    w_specs = [pl.BlockSpec(w.shape, lambda b: (0, 0)) for w in weight_args]

    dec8, enc = pl.pallas_call(
        cnn_ae_kernel,
        out_shape=(jax.ShapeDtypeStruct((B, 8, 100), jnp.float32),
                   jax.ShapeDtypeStruct((B, 128, 15), jnp.float32)),
        grid_spec=pltpu.PrefetchScalarGridSpec(
            num_scalar_prefetch=0,
            grid=(B,),
            in_specs=[pl.BlockSpec((1, 8, 100), lambda b: (b, 0, 0))] + w_specs,
            out_specs=[pl.BlockSpec((1, 8, 100), lambda b: (b, 0, 0)),
                       pl.BlockSpec((1, 128, 15), lambda b: (b, 0, 0))],
        ),
        compiler_params=pltpu.CompilerParams(dimension_semantics=("parallel",)),
    )(h, *weight_args)

    x_decoded = jnp.transpose(dec8[:, :C, :], (0, 2, 1))          # (B, 100, 6)
    x_encoded = enc.reshape(B, -1)                                # (B, 1920)
    return x_decoded, x_encoded


# ----------------------------------------------------------------------------
# Parameter preparation (BN folded into weights, im2col-shaped, channel-padded)
# ----------------------------------------------------------------------------
def _fold_bn(gamma, beta, mean, var, eps=1e-5):
    scale = gamma / jnp.sqrt(var + eps)
    bias = beta - mean * scale
    return scale.astype(jnp.float32), bias.astype(jnp.float32)


def _conv_w2d(w_oik, scale):
    """PyTorch Conv1d weight (Cout, Cin, K) -> (Cout, K*Cin), BN scale folded."""
    w = w_oik * scale[:, None, None]
    Cout, Cin, k = w.shape
    return jnp.transpose(w, (0, 2, 1)).reshape(Cout, k * Cin).astype(jnp.float32)


def _convT_w2d(w_iok, scale):
    """PyTorch ConvTranspose1d weight (Cin, Cout, K) -> equivalent conv (Cout, K*Cin)."""
    w_eq = jnp.transpose(jnp.flip(w_iok, axis=2), (1, 0, 2))      # (Cout, Cin, K)
    w_eq = w_eq * scale[:, None, None]
    Cout, Cin, k = w_eq.shape
    return jnp.transpose(w_eq, (0, 2, 1)).reshape(Cout, k * Cin).astype(jnp.float32)


def init_params(key, n_channels=6, out_channels=128):
    assert n_channels == 6, "this script implements the n_channels=6 config"
    ks = jax.random.split(key, 8)

    def norm(k, shape, fan_in):
        return jax.random.normal(k, shape, jnp.float32) / np.sqrt(fan_in)

    def bn(c):
        gamma = 1.0 + 0.01 * jnp.arange(c, dtype=jnp.float32)
        beta = 0.02 * jnp.arange(c, dtype=jnp.float32)
        mean = jnp.zeros((c,), jnp.float32)
        var = jnp.ones((c,), jnp.float32)
        return _fold_bn(gamma, beta, mean, var)

    p = {}
    # encoder convs: Conv1d weight (Cout, Cin, 8), bias=False
    w = norm(ks[0], (32, n_channels, K), n_channels * K)
    w = jnp.pad(w, ((0, 0), (0, 8 - n_channels), (0, 0)))         # Cin 6 -> 8
    s, b = bn(32)
    p['e1_w'], p['e1_b'] = _conv_w2d(w, s), b[:, None]

    w = norm(ks[1], (64, 32, K), 32 * K); s, b = bn(64)
    p['e2_w'], p['e2_b'] = _conv_w2d(w, s), b[:, None]

    w = norm(ks[2], (out_channels, 64, K), 64 * K); s, b = bn(out_channels)
    p['e3_w'], p['e3_b'] = _conv_w2d(w, s), b[:, None]

    # decoder transposed convs: ConvTranspose1d weight (Cin, Cout, 8), bias=False
    w = norm(ks[3], (out_channels, 64, K), out_channels * K); s, b = bn(64)
    p['d1_w'], p['d1_b'] = _convT_w2d(w, s), b[:, None]

    w = norm(ks[4], (64, 32, K), 64 * K); s, b = bn(32)
    p['d2_w'], p['d2_b'] = _convT_w2d(w, s), b[:, None]

    w = norm(ks[5], (32, n_channels, K), 32 * K)
    w = jnp.pad(w, ((0, 0), (0, 8 - n_channels), (0, 0)))         # Cout 6 -> 8
    s, b = bn(n_channels)
    s = jnp.pad(s, (0, 8 - n_channels), constant_values=1.0)
    b = jnp.pad(b, (0, 8 - n_channels))
    p['d3_w'], p['d3_b'] = _convT_w2d(w, s), b[:, None]

    # lin1 = Identity for n_channels == 6; lin2 = Linear(99, 100)
    p['lin2_w'] = jnp.transpose(norm(ks[6], (100, 99), 99), (1, 0))   # (99, 100)
    p['lin2_b'] = 0.01 * jax.random.normal(ks[7], (1, 100), jnp.float32)
    return p


if __name__ == "__main__":
    B, L, C = 2, 100, 6      # n_channels=6 config; L=100 fixed by Linear(99, 100)
    key = jax.random.PRNGKey(0)
    kx, kp = jax.random.split(key)
    x = jax.random.normal(kx, (B, L, C), jnp.float32)
    params = init_params(kp, n_channels=C, out_channels=128)

    dec, enc = jax.jit(cnn_ae_forward)(params, x)
    jax.block_until_ready((dec, enc))

    assert dec.shape == (B, 100, 6), dec.shape
    assert enc.shape == (B, 15 * 128), enc.shape
    assert bool(jnp.all(jnp.isfinite(dec))) and bool(jnp.all(jnp.isfinite(enc)))
    print("KERNEL_OK")
</pallas_src>

<mosaic_0001>
module attributes {stable_mosaic.version = 11 : i64} {
  func.func @cnn_ae_kernel(%arg0: i32, %arg1: memref<1x8x100xf32, #tpu.memory_space<vmem>>, %arg2: memref<32x64xf32, #tpu.memory_space<vmem>>, %arg3: memref<32x1xf32, #tpu.memory_space<vmem>>, %arg4: memref<64x256xf32, #tpu.memory_space<vmem>>, %arg5: memref<64x1xf32, #tpu.memory_space<vmem>>, %arg6: memref<128x512xf32, #tpu.memory_space<vmem>>, %arg7: memref<128x1xf32, #tpu.memory_space<vmem>>, %arg8: memref<64x1024xf32, #tpu.memory_space<vmem>>, %arg9: memref<64x1xf32, #tpu.memory_space<vmem>>, %arg10: memref<32x512xf32, #tpu.memory_space<vmem>>, %arg11: memref<32x1xf32, #tpu.memory_space<vmem>>, %arg12: memref<8x256xf32, #tpu.memory_space<vmem>>, %arg13: memref<8x1xf32, #tpu.memory_space<vmem>>, %arg14: memref<99x100xf32, #tpu.memory_space<vmem>>, %arg15: memref<1x100xf32, #tpu.memory_space<vmem>>, %arg16: memref<1x8x100xf32, #tpu.memory_space<vmem>>, %arg17: memref<1x128x15xf32, #tpu.memory_space<vmem>>) attributes {dimension_semantics = [#tpu.dimension_semantics<parallel>], iteration_bounds = array<i64: 2>, scalar_prefetch = 0 : i64, scratch_operands = 0 : i64, tpu.core_type = #tpu.core_type<tc>, window_params = [{transform_indices = @transform_0, window_bounds = array<i64: 1, 8, 100>}, {pipeline_mode = #tpu.pipeline_mode<synchronous>, transform_indices = @transform_1, window_bounds = array<i64: 32, 64>}, {pipeline_mode = #tpu.pipeline_mode<synchronous>, transform_indices = @transform_2, window_bounds = array<i64: 32, 1>}, {pipeline_mode = #tpu.pipeline_mode<synchronous>, transform_indices = @transform_3, window_bounds = array<i64: 64, 256>}, {pipeline_mode = #tpu.pipeline_mode<synchronous>, transform_indices = @transform_4, window_bounds = array<i64: 64, 1>}, {pipeline_mode = #tpu.pipeline_mode<synchronous>, transform_indices = @transform_5, window_bounds = array<i64: 128, 512>}, {pipeline_mode = #tpu.pipeline_mode<synchronous>, transform_indices = @transform_6, window_bounds = array<i64: 128, 1>}, {pipeline_mode = #tpu.pipeline_mode<synchronous>, transform_indices = @transform_7, window_bounds = array<i64: 64, 1024>}, {pipeline_mode = #tpu.pipeline_mode<synchronous>, transform_indices = @transform_8, window_bounds = array<i64: 64, 1>}, {pipeline_mode = #tpu.pipeline_mode<synchronous>, transform_indices = @transform_9, window_bounds = array<i64: 32, 512>}, {pipeline_mode = #tpu.pipeline_mode<synchronous>, transform_indices = @transform_10, window_bounds = array<i64: 32, 1>}, {pipeline_mode = #tpu.pipeline_mode<synchronous>, transform_indices = @transform_11, window_bounds = array<i64: 8, 256>}, {pipeline_mode = #tpu.pipeline_mode<synchronous>, transform_indices = @transform_12, window_bounds = array<i64: 8, 1>}, {pipeline_mode = #tpu.pipeline_mode<synchronous>, transform_indices = @transform_13, window_bounds = array<i64: 99, 100>}, {pipeline_mode = #tpu.pipeline_mode<synchronous>, transform_indices = @transform_14, window_bounds = array<i64: 1, 100>}, {transform_indices = @transform_15, window_bounds = array<i64: 1, 8, 100>}, {transform_indices = @transform_16, window_bounds = array<i64: 1, 128, 15>}]} {
    %c0 = arith.constant 0 : index
    %c0_0 = arith.constant 0 : index
    %c0_1 = arith.constant 0 : index
    %0 = vector.load %arg1[%c0, %c0_0, %c0_1] : memref<1x8x100xf32, #tpu.memory_space<vmem>>, vector<1x8x100xf32>
    %1 = vector.shape_cast %0 : vector<1x8x100xf32> to vector<8x100xf32>
    %cst = arith.constant 0.000000e+00 : f32
    %2 = vector.broadcast %cst : f32 to vector<8x4xf32>
    %3 = tpu.concatenate %2, %1, %2 in 1 : vector<8x4xf32>, vector<8x100xf32>, vector<8x4xf32> -> vector<8x108xf32>
    %4 = vector.extract_strided_slice %3 {offsets = [0, 0], sizes = [8, 101], strides = [1, 1]} : vector<8x108xf32> to vector<8x101xf32>
    %5 = vector.extract_strided_slice %3 {offsets = [0, 1], sizes = [8, 101], strides = [1, 1]} : vector<8x108xf32> to vector<8x101xf32>
    %6 = vector.extract_strided_slice %3 {offsets = [0, 2], sizes = [8, 101], strides = [1, 1]} : vector<8x108xf32> to vector<8x101xf32>
    %7 = vector.extract_strided_slice %3 {offsets = [0, 3], sizes = [8, 101], strides = [1, 1]} : vector<8x108xf32> to vector<8x101xf32>
    %8 = vector.extract_strided_slice %3 {offsets = [0, 4], sizes = [8, 101], strides = [1, 1]} : vector<8x108xf32> to vector<8x101xf32>
    %9 = vector.extract_strided_slice %3 {offsets = [0, 5], sizes = [8, 101], strides = [1, 1]} : vector<8x108xf32> to vector<8x101xf32>
    %10 = vector.extract_strided_slice %3 {offsets = [0, 6], sizes = [8, 101], strides = [1, 1]} : vector<8x108xf32> to vector<8x101xf32>
    %11 = vector.extract_strided_slice %3 {offsets = [0, 7], sizes = [8, 101], strides = [1, 1]} : vector<8x108xf32> to vector<8x101xf32>
    %12 = tpu.concatenate %4, %5, %6, %7, %8, %9, %10, %11 in 0 : vector<8x101xf32>, vector<8x101xf32>, vector<8x101xf32>, vector<8x101xf32>, vector<8x101xf32>, vector<8x101xf32>, vector<8x101xf32>, vector<8x101xf32> -> vector<64x101xf32>
    %c0_2 = arith.constant 0 : index
    %c0_3 = arith.constant 0 : index
    %13 = vector.load %arg2[%c0_2, %c0_3] : memref<32x64xf32, #tpu.memory_space<vmem>>, vector<32x64xf32>
    %cst_4 = arith.constant dense<0.000000e+00> : vector<32x101xf32>
    %14 = tpu.matmul %13, %12, %cst_4 {dimension_numbers = #tpu.dot_dimension_numbers<[1], [0], [0], [1], [0, 0, 1, 1], [], []>} : vector<32x64xf32>, vector<64x101xf32>, vector<32x101xf32> -> vector<32x101xf32>
    %c0_5 = arith.constant 0 : index
    %c0_6 = arith.constant 0 : index
    %15 = vector.load %arg3[%c0_5, %c0_6] : memref<32x1xf32, #tpu.memory_space<vmem>>, vector<32x1xf32>
    %16 = vector.broadcast %15 : vector<32x1xf32> to vector<32x101xf32>
    %17 = arith.addf %14, %16 : vector<32x101xf32>
    %cst_7 = arith.constant 0.000000e+00 : f32
    %18 = vector.broadcast %cst_7 : f32 to vector<32x101xf32>
    %19 = arith.maximumf %17, %18 : vector<32x101xf32>
    %cst_8 = arith.constant -1.000000e+00 : f32
    %20 = vector.broadcast %cst_8 : f32 to vector<32x1xf32>
    %cst_9 = arith.constant -1.000000e+00 : f32
    %21 = vector.broadcast %cst_9 : f32 to vector<32x1xf32>
    %22 = tpu.concatenate %20, %19, %21 in 1 : vector<32x1xf32>, vector<32x101xf32>, vector<32x1xf32> -> vector<32x103xf32>
    %23 = vector.extract_strided_slice %22 {offsets = [0, 0], sizes = [32, 102], strides = [1, 1]} : vector<32x103xf32> to vector<32x102xf32>
    %24 = vector.extract_strided_slice %22 {offsets = [0, 1], sizes = [32, 102], strides = [1, 1]} : vector<32x103xf32> to vector<32x102xf32>
    %25 = arith.maximumf %23, %24 : vector<32x102xf32>
    %26 = arith.cmpf ogt, %24, %23 : vector<32x102xf32>
    %27 = arith.extui %26 : vector<32x102xi1> to vector<32x102xi32>
    %28 = arith.sitofp %27 : vector<32x102xi32> to vector<32x102xf32>
    %29 = tpu.iota {dimensions = array<i32: 0>} : vector<102x51xi32>
    %30 = tpu.iota {dimensions = array<i32: 1>} : vector<102x51xi32>
    %c2_i32 = arith.constant 2 : i32
    %31 = vector.broadcast %c2_i32 : i32 to vector<102x51xi32>
    %32 = arith.muli %31, %30 : vector<102x51xi32>
    %33 = arith.cmpi eq, %29, %32 : vector<102x51xi32>
    %34 = arith.extui %33 : vector<102x51xi1> to vector<102x51xi32>
    %35 = arith.sitofp %34 : vector<102x51xi32> to vector<102x51xf32>
    %cst_10 = arith.constant dense<0.000000e+00> : vector<32x51xf32>
    %36 = tpu.matmul %25, %35, %cst_10 {dimension_numbers = #tpu.dot_dimension_numbers<[1], [0], [0], [1], [0, 0, 1, 1], [], []>} : vector<32x102xf32>, vector<102x51xf32>, vector<32x51xf32> -> vector<32x51xf32>
    %cst_11 = arith.constant dense<0.000000e+00> : vector<32x51xf32>
    %37 = tpu.matmul %28, %35, %cst_11 {dimension_numbers = #tpu.dot_dimension_numbers<[1], [0], [0], [1], [0, 0, 1, 1], [], []>} : vector<32x102xf32>, vector<102x51xf32>, vector<32x51xf32> -> vector<32x51xf32>
    %cst_12 = arith.constant 0.000000e+00 : f32
    %38 = vector.broadcast %cst_12 : f32 to vector<32x4xf32>
    %39 = tpu.concatenate %38, %36, %38 in 1 : vector<32x4xf32>, vector<32x51xf32>, vector<32x4xf32> -> vector<32x59xf32>
    %40 = vector.extract_strided_slice %39 {offsets = [0, 0], sizes = [32, 52], strides = [1, 1]} : vector<32x59xf32> to vector<32x52xf32>
    %41 = vector.extract_strided_slice %39 {offsets = [0, 1], sizes = [32, 52], strides = [1, 1]} : vector<32x59xf32> to vector<32x52xf32>
    %42 = vector.extract_strided_slice %39 {offsets = [0, 2], sizes = [32, 52], strides = [1, 1]} : vector<32x59xf32> to vector<32x52xf32>
    %43 = vector.extract_strided_slice %39 {offsets = [0, 3], sizes = [32, 52], strides = [1, 1]} : vector<32x59xf32> to vector<32x52xf32>
    %44 = vector.extract_strided_slice %39 {offsets = [0, 4], sizes = [32, 52], strides = [1, 1]} : vector<32x59xf32> to vector<32x52xf32>
    %45 = vector.extract_strided_slice %39 {offsets = [0, 5], sizes = [32, 52], strides = [1, 1]} : vector<32x59xf32> to vector<32x52xf32>
    %46 = vector.extract_strided_slice %39 {offsets = [0, 6], sizes = [32, 52], strides = [1, 1]} : vector<32x59xf32> to vector<32x52xf32>
    %47 = vector.extract_strided_slice %39 {offsets = [0, 7], sizes = [32, 52], strides = [1, 1]} : vector<32x59xf32> to vector<32x52xf32>
    %48 = tpu.concatenate %40, %41, %42, %43, %44, %45, %46, %47 in 0 : vector<32x52xf32>, vector<32x52xf32>, vector<32x52xf32>, vector<32x52xf32>, vector<32x52xf32>, vector<32x52xf32>, vector<32x52xf32>, vector<32x52xf32> -> vector<256x52xf32>
    %c0_13 = arith.constant 0 : index
    %c0_14 = arith.constant 0 : index
    %49 = vector.load %arg4[%c0_13, %c0_14] : memref<64x256xf32, #tpu.memory_space<vmem>>, vector<64x256xf32>
    %cst_15 = arith.constant dense<0.000000e+00> : vector<64x52xf32>
    %50 = tpu.matmul %49, %48, %cst_15 {dimension_numbers = #tpu.dot_dimension_numbers<[1], [0], [0], [1], [0, 0, 1, 1], [], []>} : vector<64x256xf32>, vector<256x52xf32>, vector<64x52xf32> -> vector<64x52xf32>
    %c0_16 = arith.constant 0 : index
    %c0_17 = arith.constant 0 : index
    %51 = vector.load %arg5[%c0_16, %c0_17] : memref<64x1xf32, #tpu.memory_space<vmem>>, vector<64x1xf32>
    %52 = vector.broadcast %51 : vector<64x1xf32> to vector<64x52xf32>
    %53 = arith.addf %50, %52 : vector<64x52xf32>
    %cst_18 = arith.constant 0.000000e+00 : f32
    %54 = vector.broadcast %cst_18 : f32 to vector<64x52xf32>
    %55 = arith.maximumf %53, %54 : vector<64x52xf32>
    %cst_19 = arith.constant -1.000000e+00 : f32
    %56 = vector.broadcast %cst_19 : f32 to vector<64x1xf32>
    %cst_20 = arith.constant -1.000000e+00 : f32
    %57 = vector.broadcast %cst_20 : f32 to vector<64x2xf32>
    %58 = tpu.concatenate %56, %55, %57 in 1 : vector<64x1xf32>, vector<64x52xf32>, vector<64x2xf32> -> vector<64x55xf32>
    %59 = vector.extract_strided_slice %58 {offsets = [0, 0], sizes = [64, 54], strides = [1, 1]} : vector<64x55xf32> to vector<64x54xf32>
    %60 = vector.extract_strided_slice %58 {offsets = [0, 1], sizes = [64, 54], strides = [1, 1]} : vector<64x55xf32> to vector<64x54xf32>
    %61 = arith.maximumf %59, %60 : vector<64x54xf32>
    %62 = arith.cmpf ogt, %60, %59 : vector<64x54xf32>
    %63 = arith.extui %62 : vector<64x54xi1> to vector<64x54xi32>
    %64 = arith.sitofp %63 : vector<64x54xi32> to vector<64x54xf32>
    %65 = tpu.iota {dimensions = array<i32: 0>} : vector<54x27xi32>
    %66 = tpu.iota {dimensions = array<i32: 1>} : vector<54x27xi32>
    %c2_i32_21 = arith.constant 2 : i32
    %67 = vector.broadcast %c2_i32_21 : i32 to vector<54x27xi32>
    %68 = arith.muli %67, %66 : vector<54x27xi32>
    %69 = arith.cmpi eq, %65, %68 : vector<54x27xi32>
    %70 = arith.extui %69 : vector<54x27xi1> to vector<54x27xi32>
    %71 = arith.sitofp %70 : vector<54x27xi32> to vector<54x27xf32>
    %cst_22 = arith.constant dense<0.000000e+00> : vector<64x27xf32>
    %72 = tpu.matmul %61, %71, %cst_22 {dimension_numbers = #tpu.dot_dimension_numbers<[1], [0], [0], [1], [0, 0, 1, 1], [], []>} : vector<64x54xf32>, vector<54x27xf32>, vector<64x27xf32> -> vector<64x27xf32>
    %cst_23 = arith.constant dense<0.000000e+00> : vector<64x27xf32>
    %73 = tpu.matmul %64, %71, %cst_23 {dimension_numbers = #tpu.dot_dimension_numbers<[1], [0], [0], [1], [0, 0, 1, 1], [], []>} : vector<64x54xf32>, vector<54x27xf32>, vector<64x27xf32> -> vector<64x27xf32>
    %cst_24 = arith.constant 0.000000e+00 : f32
    %74 = vector.broadcast %cst_24 : f32 to vector<64x4xf32>
    %75 = tpu.concatenate %74, %72, %74 in 1 : vector<64x4xf32>, vector<64x27xf32>, vector<64x4xf32> -> vector<64x35xf32>
    %76 = vector.extract_strided_slice %75 {offsets = [0, 0], sizes = [64, 28], strides = [1, 1]} : vector<64x35xf32> to vector<64x28xf32>
    %77 = vector.extract_strided_slice %75 {offsets = [0, 1], sizes = [64, 28], strides = [1, 1]} : vector<64x35xf32> to vector<64x28xf32>
    %78 = vector.extract_strided_slice %75 {offsets = [0, 2], sizes = [64, 28], strides = [1, 1]} : vector<64x35xf32> to vector<64x28xf32>
    %79 = vector.extract_strided_slice %75 {offsets = [0, 3], sizes = [64, 28], strides = [1, 1]} : vector<64x35xf32> to vector<64x28xf32>
    %80 = vector.extract_strided_slice %75 {offsets = [0, 4], sizes = [64, 28], strides = [1, 1]} : vector<64x35xf32> to vector<64x28xf32>
    %81 = vector.extract_strided_slice %75 {offsets = [0, 5], sizes = [64, 28], strides = [1, 1]} : vector<64x35xf32> to vector<64x28xf32>
    %82 = vector.extract_strided_slice %75 {offsets = [0, 6], sizes = [64, 28], strides = [1, 1]} : vector<64x35xf32> to vector<64x28xf32>
    %83 = vector.extract_strided_slice %75 {offsets = [0, 7], sizes = [64, 28], strides = [1, 1]} : vector<64x35xf32> to vector<64x28xf32>
    %84 = tpu.concatenate %76, %77, %78, %79, %80, %81, %82, %83 in 0 : vector<64x28xf32>, vector<64x28xf32>, vector<64x28xf32>, vector<64x28xf32>, vector<64x28xf32>, vector<64x28xf32>, vector<64x28xf32>, vector<64x28xf32> -> vector<512x28xf32>
    %c0_25 = arith.constant 0 : index
    %c0_26 = arith.constant 0 : index
    %85 = vector.load %arg6[%c0_25, %c0_26] : memref<128x512xf32, #tpu.memory_space<vmem>>, vector<128x512xf32>
    %cst_27 = arith.constant dense<0.000000e+00> : vector<128x28xf32>
    %86 = tpu.matmul %85, %84, %cst_27 {dimension_numbers = #tpu.dot_dimension_numbers<[1], [0], [0], [1], [0, 0, 1, 1], [], []>} : vector<128x512xf32>, vector<512x28xf32>, vector<128x28xf32> -> vector<128x28xf32>
    %c0_28 = arith.constant 0 : index
    %c0_29 = arith.constant 0 : index
    %87 = vector.load %arg7[%c0_28, %c0_29] : memref<128x1xf32, #tpu.memory_space<vmem>>, vector<128x1xf32>
    %88 = vector.broadcast %87 : vector<128x1xf32> to vector<128x28xf32>
    %89 = arith.addf %86, %88 : vector<128x28xf32>
    %cst_30 = arith.constant 0.000000e+00 : f32
    %90 = vector.broadcast %cst_30 : f32 to vector<128x28xf32>
    %91 = arith.maximumf %89, %90 : vector<128x28xf32>
    %cst_31 = arith.constant -1.000000e+00 : f32
    %92 = vector.broadcast %cst_31 : f32 to vector<128x1xf32>
    %cst_32 = arith.constant -1.000000e+00 : f32
    %93 = vector.broadcast %cst_32 : f32 to vector<128x2xf32>
    %94 = tpu.concatenate %92, %91, %93 in 1 : vector<128x1xf32>, vector<128x28xf32>, vector<128x2xf32> -> vector<128x31xf32>
    %95 = vector.extract_strided_slice %94 {offsets = [0, 0], sizes = [128, 30], strides = [1, 1]} : vector<128x31xf32> to vector<128x30xf32>
    %96 = vector.extract_strided_slice %94 {offsets = [0, 1], sizes = [128, 30], strides = [1, 1]} : vector<128x31xf32> to vector<128x30xf32>
    %97 = arith.maximumf %95, %96 : vector<128x30xf32>
    %98 = arith.cmpf ogt, %96, %95 : vector<128x30xf32>
    %99 = arith.extui %98 : vector<128x30xi1> to vector<128x30xi32>
    %100 = arith.sitofp %99 : vector<128x30xi32> to vector<128x30xf32>
    %101 = tpu.iota {dimensions = array<i32: 0>} : vector<30x15xi32>
    %102 = tpu.iota {dimensions = array<i32: 1>} : vector<30x15xi32>
    %c2_i32_33 = arith.constant 2 : i32
    %103 = vector.broadcast %c2_i32_33 : i32 to vector<30x15xi32>
    %104 = arith.muli %103, %102 : vector<30x15xi32>
    %105 = arith.cmpi eq, %101, %104 : vector<30x15xi32>
    %106 = arith.extui %105 : vector<30x15xi1> to vector<30x15xi32>
    %107 = arith.sitofp %106 : vector<30x15xi32> to vector<30x15xf32>
    %cst_34 = arith.constant dense<0.000000e+00> : vector<128x15xf32>
    %108 = tpu.matmul %97, %107, %cst_34 {dimension_numbers = #tpu.dot_dimension_numbers<[1], [0], [0], [1], [0, 0, 1, 1], [], []>} : vector<128x30xf32>, vector<30x15xf32>, vector<128x15xf32> -> vector<128x15xf32>
    %cst_35 = arith.constant dense<0.000000e+00> : vector<128x15xf32>
    %109 = tpu.matmul %100, %107, %cst_35 {dimension_numbers = #tpu.dot_dimension_numbers<[1], [0], [0], [1], [0, 0, 1, 1], [], []>} : vector<128x30xf32>, vector<30x15xf32>, vector<128x15xf32> -> vector<128x15xf32>
    %c0_36 = arith.constant 0 : index
    %c0_37 = arith.constant 0 : index
    %c0_38 = arith.constant 0 : index
    %110 = vector.load %arg17[%c0_36, %c0_37, %c0_38] : memref<1x128x15xf32, #tpu.memory_space<vmem>>, vector<1x128x15xf32>
    %111 = vector.shape_cast %110 : vector<1x128x15xf32> to vector<128x15xf32>
    %112 = vector.shape_cast %108 : vector<128x15xf32> to vector<1x128x15xf32>
    tpu.vector_store %arg17[%c0_36, %c0_37, %c0_38], %112 {strides = array<i32>} : memref<1x128x15xf32, #tpu.memory_space<vmem>>, vector<1x128x15xf32>,
    %113 = tpu.iota {dimensions = array<i32: 0>} : vector<15x28xi32>
    %114 = tpu.iota {dimensions = array<i32: 1>} : vector<15x28xi32>
    %c2_i32_39 = arith.constant 2 : i32
    %115 = vector.broadcast %c2_i32_39 : i32 to vector<15x28xi32>
    %116 = arith.muli %115, %113 : vector<15x28xi32>
    %117 = arith.cmpi eq, %114, %116 : vector<15x28xi32>
    %118 = arith.extui %117 : vector<15x28xi1> to vector<15x28xi32>
    %119 = arith.sitofp %118 : vector<15x28xi32> to vector<15x28xf32>
    %c2_i32_40 = arith.constant 2 : i32
    %120 = vector.broadcast %c2_i32_40 : i32 to vector<15x28xi32>
    %121 = arith.muli %120, %113 : vector<15x28xi32>
    %c1_i32 = arith.constant 1 : i32
    %122 = vector.broadcast %c1_i32 : i32 to vector<15x28xi32>
    %123 = arith.subi %121, %122 : vector<15x28xi32>
    %124 = arith.cmpi eq, %114, %123 : vector<15x28xi32>
    %125 = arith.extui %124 : vector<15x28xi1> to vector<15x28xi32>
    %126 = arith.sitofp %125 : vector<15x28xi32> to vector<15x28xf32>
    %127 = arith.mulf %108, %109 : vector<128x15xf32>
    %cst_41 = arith.constant dense<0.000000e+00> : vector<128x28xf32>
    %128 = tpu.matmul %127, %119, %cst_41 {dimension_numbers = #tpu.dot_dimension_numbers<[1], [0], [0], [1], [0, 0, 1, 1], [], []>} : vector<128x15xf32>, vector<15x28xf32>, vector<128x28xf32> -> vector<128x28xf32>
    %cst_42 = arith.constant 1.000000e+00 : f32
    %129 = vector.broadcast %cst_42 : f32 to vector<128x15xf32>
    %130 = arith.subf %129, %109 : vector<128x15xf32>
    %131 = arith.mulf %108, %130 : vector<128x15xf32>
    %cst_43 = arith.constant dense<0.000000e+00> : vector<128x28xf32>
    %132 = tpu.matmul %131, %126, %cst_43 {dimension_numbers = #tpu.dot_dimension_numbers<[1], [0], [0], [1], [0, 0, 1, 1], [], []>} : vector<128x15xf32>, vector<15x28xf32>, vector<128x28xf32> -> vector<128x28xf32>
    %133 = arith.addf %128, %132 : vector<128x28xf32>
    %cst_44 = arith.constant 0.000000e+00 : f32
    %134 = vector.broadcast %cst_44 : f32 to vector<128x3xf32>
    %135 = tpu.concatenate %134, %133, %134 in 1 : vector<128x3xf32>, vector<128x28xf32>, vector<128x3xf32> -> vector<128x34xf32>
    %136 = vector.extract_strided_slice %135 {offsets = [0, 0], sizes = [128, 27], strides = [1, 1]} : vector<128x34xf32> to vector<128x27xf32>
    %137 = vector.extract_strided_slice %135 {offsets = [0, 1], sizes = [128, 27], strides = [1, 1]} : vector<128x34xf32> to vector<128x27xf32>
    %138 = vector.extract_strided_slice %135 {offsets = [0, 2], sizes = [128, 27], strides = [1, 1]} : vector<128x34xf32> to vector<128x27xf32>
    %139 = vector.extract_strided_slice %135 {offsets = [0, 3], sizes = [128, 27], strides = [1, 1]} : vector<128x34xf32> to vector<128x27xf32>
    %140 = vector.extract_strided_slice %135 {offsets = [0, 4], sizes = [128, 27], strides = [1, 1]} : vector<128x34xf32> to vector<128x27xf32>
    %141 = vector.extract_strided_slice %135 {offsets = [0, 5], sizes = [128, 27], strides = [1, 1]} : vector<128x34xf32> to vector<128x27xf32>
    %142 = vector.extract_strided_slice %135 {offsets = [0, 6], sizes = [128, 27], strides = [1, 1]} : vector<128x34xf32> to vector<128x27xf32>
    %143 = vector.extract_strided_slice %135 {offsets = [0, 7], sizes = [128, 27], strides = [1, 1]} : vector<128x34xf32> to vector<128x27xf32>
    %144 = tpu.concatenate %136, %137, %138, %139, %140, %141, %142, %143 in 0 : vector<128x27xf32>, vector<128x27xf32>, vector<128x27xf32>, vector<128x27xf32>, vector<128x27xf32>, vector<128x27xf32>, vector<128x27xf32>, vector<128x27xf32> -> vector<1024x27xf32>
    %c0_45 = arith.constant 0 : index
    %c0_46 = arith.constant 0 : index
    %145 = vector.load %arg8[%c0_45, %c0_46] : memref<64x1024xf32, #tpu.memory_space<vmem>>, vector<64x1024xf32>
    %cst_47 = arith.constant dense<0.000000e+00> : vector<64x27xf32>
    %146 = tpu.matmul %145, %144, %cst_47 {dimension_numbers = #tpu.dot_dimension_numbers<[1], [0], [0], [1], [0, 0, 1, 1], [], []>} : vector<64x1024xf32>, vector<1024x27xf32>, vector<64x27xf32> -> vector<64x27xf32>
    %c0_48 = arith.constant 0 : index
    %c0_49 = arith.constant 0 : index
    %147 = vector.load %arg9[%c0_48, %c0_49] : memref<64x1xf32, #tpu.memory_space<vmem>>, vector<64x1xf32>
    %148 = vector.broadcast %147 : vector<64x1xf32> to vector<64x27xf32>
    %149 = arith.addf %146, %148 : vector<64x27xf32>
    %cst_50 = arith.constant 0.000000e+00 : f32
    %150 = vector.broadcast %cst_50 : f32 to vector<64x27xf32>
    %151 = arith.maximumf %149, %150 : vector<64x27xf32>
    %152 = tpu.iota {dimensions = array<i32: 0>} : vector<27x52xi32>
    %153 = tpu.iota {dimensions = array<i32: 1>} : vector<27x52xi32>
    %c2_i32_51 = arith.constant 2 : i32
    %154 = vector.broadcast %c2_i32_51 : i32 to vector<27x52xi32>
    %155 = arith.muli %154, %152 : vector<27x52xi32>
    %156 = arith.cmpi eq, %153, %155 : vector<27x52xi32>
    %157 = arith.extui %156 : vector<27x52xi1> to vector<27x52xi32>
    %158 = arith.sitofp %157 : vector<27x52xi32> to vector<27x52xf32>
    %c2_i32_52 = arith.constant 2 : i32
    %159 = vector.broadcast %c2_i32_52 : i32 to vector<27x52xi32>
    %160 = arith.muli %159, %152 : vector<27x52xi32>
    %c1_i32_53 = arith.constant 1 : i32
    %161 = vector.broadcast %c1_i32_53 : i32 to vector<27x52xi32>
    %162 = arith.subi %160, %161 : vector<27x52xi32>
    %163 = arith.cmpi eq, %153, %162 : vector<27x52xi32>
    %164 = arith.extui %163 : vector<27x52xi1> to vector<27x52xi32>
    %165 = arith.sitofp %164 : vector<27x52xi32> to vector<27x52xf32>
    %166 = arith.mulf %151, %73 : vector<64x27xf32>
    %cst_54 = arith.constant dense<0.000000e+00> : vector<64x52xf32>
    %167 = tpu.matmul %166, %158, %cst_54 {dimension_numbers = #tpu.dot_dimension_numbers<[1], [0], [0], [1], [0, 0, 1, 1], [], []>} : vector<64x27xf32>, vector<27x52xf32>, vector<64x52xf32> -> vector<64x52xf32>
    %cst_55 = arith.constant 1.000000e+00 : f32
    %168 = vector.broadcast %cst_55 : f32 to vector<64x27xf32>
    %169 = arith.subf %168, %73 : vector<64x27xf32>
    %170 = arith.mulf %151, %169 : vector<64x27xf32>
    %cst_56 = arith.constant dense<0.000000e+00> : vector<64x52xf32>
    %171 = tpu.matmul %170, %165, %cst_56 {dimension_numbers = #tpu.dot_dimension_numbers<[1], [0], [0], [1], [0, 0, 1, 1], [], []>} : vector<64x27xf32>, vector<27x52xf32>, vector<64x52xf32> -> vector<64x52xf32>
    %172 = arith.addf %167, %171 : vector<64x52xf32>
    %cst_57 = arith.constant 0.000000e+00 : f32
    %173 = vector.broadcast %cst_57 : f32 to vector<64x3xf32>
    %174 = tpu.concatenate %173, %172, %173 in 1 : vector<64x3xf32>, vector<64x52xf32>, vector<64x3xf32> -> vector<64x58xf32>
    %175 = vector.extract_strided_slice %174 {offsets = [0, 0], sizes = [64, 51], strides = [1, 1]} : vector<64x58xf32> to vector<64x51xf32>
    %176 = vector.extract_strided_slice %174 {offsets = [0, 1], sizes = [64, 51], strides = [1, 1]} : vector<64x58xf32> to vector<64x51xf32>
    %177 = vector.extract_strided_slice %174 {offsets = [0, 2], sizes = [64, 51], strides = [1, 1]} : vector<64x58xf32> to vector<64x51xf32>
    %178 = vector.extract_strided_slice %174 {offsets = [0, 3], sizes = [64, 51], strides = [1, 1]} : vector<64x58xf32> to vector<64x51xf32>
    %179 = vector.extract_strided_slice %174 {offsets = [0, 4], sizes = [64, 51], strides = [1, 1]} : vector<64x58xf32> to vector<64x51xf32>
    %180 = vector.extract_strided_slice %174 {offsets = [0, 5], sizes = [64, 51], strides = [1, 1]} : vector<64x58xf32> to vector<64x51xf32>
    %181 = vector.extract_strided_slice %174 {offsets = [0, 6], sizes = [64, 51], strides = [1, 1]} : vector<64x58xf32> to vector<64x51xf32>
    %182 = vector.extract_strided_slice %174 {offsets = [0, 7], sizes = [64, 51], strides = [1, 1]} : vector<64x58xf32> to vector<64x51xf32>
    %183 = tpu.concatenate %175, %176, %177, %178, %179, %180, %181, %182 in 0 : vector<64x51xf32>, vector<64x51xf32>, vector<64x51xf32>, vector<64x51xf32>, vector<64x51xf32>, vector<64x51xf32>, vector<64x51xf32>, vector<64x51xf32> -> vector<512x51xf32>
    %c0_58 = arith.constant 0 : index
    %c0_59 = arith.constant 0 : index
    %184 = vector.load %arg10[%c0_58, %c0_59] : memref<32x512xf32, #tpu.memory_space<vmem>>, vector<32x512xf32>
    %cst_60 = arith.constant dense<0.000000e+00> : vector<32x51xf32>
    %185 = tpu.matmul %184, %183, %cst_60 {dimension_numbers = #tpu.dot_dimension_numbers<[1], [0], [0], [1], [0, 0, 1, 1], [], []>} : vector<32x512xf32>, vector<512x51xf32>, vector<32x51xf32> -> vector<32x51xf32>
    %c0_61 = arith.constant 0 : index
    %c0_62 = arith.constant 0 : index
    %186 = vector.load %arg11[%c0_61, %c0_62] : memref<32x1xf32, #tpu.memory_space<vmem>>, vector<32x1xf32>
    %187 = vector.broadcast %186 : vector<32x1xf32> to vector<32x51xf32>
    %188 = arith.addf %185, %187 : vector<32x51xf32>
    %cst_63 = arith.constant 0.000000e+00 : f32
    %189 = vector.broadcast %cst_63 : f32 to vector<32x51xf32>
    %190 = arith.maximumf %188, %189 : vector<32x51xf32>
    %191 = tpu.iota {dimensions = array<i32: 0>} : vector<51x100xi32>
    %192 = tpu.iota {dimensions = array<i32: 1>} : vector<51x100xi32>
    %c2_i32_64 = arith.constant 2 : i32
    %193 = vector.broadcast %c2_i32_64 : i32 to vector<51x100xi32>
    %194 = arith.muli %193, %191 : vector<51x100xi32>
    %195 = arith.cmpi eq, %192, %194 : vector<51x100xi32>
    %196 = arith.extui %195 : vector<51x100xi1> to vector<51x100xi32>
    %197 = arith.sitofp %196 : vector<51x100xi32> to vector<51x100xf32>
    %c2_i32_65 = arith.constant 2 : i32
    %198 = vector.broadcast %c2_i32_65 : i32 to vector<51x100xi32>
    %199 = arith.muli %198, %191 : vector<51x100xi32>
    %c1_i32_66 = arith.constant 1 : i32
    %200 = vector.broadcast %c1_i32_66 : i32 to vector<51x100xi32>
    %201 = arith.subi %199, %200 : vector<51x100xi32>
    %202 = arith.cmpi eq, %192, %201 : vector<51x100xi32>
    %203 = arith.extui %202 : vector<51x100xi1> to vector<51x100xi32>
    %204 = arith.sitofp %203 : vector<51x100xi32> to vector<51x100xf32>
    %205 = arith.mulf %190, %37 : vector<32x51xf32>
    %cst_67 = arith.constant dense<0.000000e+00> : vector<32x100xf32>
    %206 = tpu.matmul %205, %197, %cst_67 {dimension_numbers = #tpu.dot_dimension_numbers<[1], [0], [0], [1], [0, 0, 1, 1], [], []>} : vector<32x51xf32>, vector<51x100xf32>, vector<32x100xf32> -> vector<32x100xf32>
    %cst_68 = arith.constant 1.000000e+00 : f32
    %207 = vector.broadcast %cst_68 : f32 to vector<32x51xf32>
    %208 = arith.subf %207, %37 : vector<32x51xf32>
    %209 = arith.mulf %190, %208 : vector<32x51xf32>
    %cst_69 = arith.constant dense<0.000000e+00> : vector<32x100xf32>
    %210 = tpu.matmul %209, %204, %cst_69 {dimension_numbers = #tpu.dot_dimension_numbers<[1], [0], [0], [1], [0, 0, 1, 1], [], []>} : vector<32x51xf32>, vector<51x100xf32>, vector<32x100xf32> -> vector<32x100xf32>
    %211 = arith.addf %206, %210 : vector<32x100xf32>
    %cst_70 = arith.constant 0.000000e+00 : f32
    %212 = vector.broadcast %cst_70 : f32 to vector<32x3xf32>
    %213 = tpu.concatenate %212, %211, %212 in 1 : vector<32x3xf32>, vector<32x100xf32>, vector<32x3xf32> -> vector<32x106xf32>
    %214 = vector.extract_strided_slice %213 {offsets = [0, 0], sizes = [32, 99], strides = [1, 1]} : vector<32x106xf32> to vector<32x99xf32>
    %215 = vector.extract_strided_slice %213 {offsets = [0, 1], sizes = [32, 99], strides = [1, 1]} : vector<32x106xf32> to vector<32x99xf32>
    %216 = vector.extract_strided_slice %213 {offsets = [0, 2], sizes = [32, 99], strides = [1, 1]} : vector<32x106xf32> to vector<32x99xf32>
    %217 = vector.extract_strided_slice %213 {offsets = [0, 3], sizes = [32, 99], strides = [1, 1]} : vector<32x106xf32> to vector<32x99xf32>
    %218 = vector.extract_strided_slice %213 {offsets = [0, 4], sizes = [32, 99], strides = [1, 1]} : vector<32x106xf32> to vector<32x99xf32>
    %219 = vector.extract_strided_slice %213 {offsets = [0, 5], sizes = [32, 99], strides = [1, 1]} : vector<32x106xf32> to vector<32x99xf32>
    %220 = vector.extract_strided_slice %213 {offsets = [0, 6], sizes = [32, 99], strides = [1, 1]} : vector<32x106xf32> to vector<32x99xf32>
    %221 = vector.extract_strided_slice %213 {offsets = [0, 7], sizes = [32, 99], strides = [1, 1]} : vector<32x106xf32> to vector<32x99xf32>
    %222 = tpu.concatenate %214, %215, %216, %217, %218, %219, %220, %221 in 0 : vector<32x99xf32>, vector<32x99xf32>, vector<32x99xf32>, vector<32x99xf32>, vector<32x99xf32>, vector<32x99xf32>, vector<32x99xf32>, vector<32x99xf32> -> vector<256x99xf32>
    %c0_71 = arith.constant 0 : index
    %c0_72 = arith.constant 0 : index
    %223 = vector.load %arg12[%c0_71, %c0_72] : memref<8x256xf32, #tpu.memory_space<vmem>>, vector<8x256xf32>
    %cst_73 = arith.constant dense<0.000000e+00> : vector<8x99xf32>
    %224 = tpu.matmul %223, %222, %cst_73 {dimension_numbers = #tpu.dot_dimension_numbers<[1], [0], [0], [1], [0, 0, 1, 1], [], []>} : vector<8x256xf32>, vector<256x99xf32>, vector<8x99xf32> -> vector<8x99xf32>
    %c0_74 = arith.constant 0 : index
    %c0_75 = arith.constant 0 : index
    %225 = vector.load %arg13[%c0_74, %c0_75] : memref<8x1xf32, #tpu.memory_space<vmem>>, vector<8x1xf32>
    %226 = vector.broadcast %225 : vector<8x1xf32> to vector<8x99xf32>
    %227 = arith.addf %224, %226 : vector<8x99xf32>
    %cst_76 = arith.constant 0.000000e+00 : f32
    %228 = vector.broadcast %cst_76 : f32 to vector<8x99xf32>
    %229 = arith.maximumf %227, %228 : vector<8x99xf32>
    %c0_77 = arith.constant 0 : index
    %c0_78 = arith.constant 0 : index
    %230 = vector.load %arg14[%c0_77, %c0_78] : memref<99x100xf32, #tpu.memory_space<vmem>>, vector<99x100xf32>
    %cst_79 = arith.constant dense<0.000000e+00> : vector<8x100xf32>
    %231 = tpu.matmul %229, %230, %cst_79 {dimension_numbers = #tpu.dot_dimension_numbers<[1], [0], [0], [1], [0, 0, 1, 1], [], []>} : vector<8x99xf32>, vector<99x100xf32>, vector<8x100xf32> -> vector<8x100xf32>
    %c0_80 = arith.constant 0 : index
    %c0_81 = arith.constant 0 : index
    %232 = vector.load %arg15[%c0_80, %c0_81] : memref<1x100xf32, #tpu.memory_space<vmem>>, vector<1x100xf32>
    %233 = vector.broadcast %232 : vector<1x100xf32> to vector<8x100xf32>
    %234 = arith.addf %231, %233 : vector<8x100xf32>
    %c0_82 = arith.constant 0 : index
    %c0_83 = arith.constant 0 : index
    %c0_84 = arith.constant 0 : index
    %235 = vector.load %arg16[%c0_82, %c0_83, %c0_84] : memref<1x8x100xf32, #tpu.memory_space<vmem>>, vector<1x8x100xf32>
    %236 = vector.shape_cast %235 : vector<1x8x100xf32> to vector<8x100xf32>
    %237 = vector.shape_cast %234 : vector<8x100xf32> to vector<1x8x100xf32>
    tpu.vector_store %arg16[%c0_82, %c0_83, %c0_84], %237 {strides = array<i32>} : memref<1x8x100xf32, #tpu.memory_space<vmem>>, vector<1x8x100xf32>,
    return
  }
  func.func @transform_0(%arg0: i32) -> (i32, i32, i32) {
    %c0_i32 = arith.constant 0 : i32
    %c0_i32_0 = arith.constant 0 : i32
    %c0_i32_1 = arith.constant 0 : i32
    return %arg0, %c0_i32, %c0_i32_0 : i32, i32, i32
  }
  func.func @transform_1(%arg0: i32) -> (i32, i32) {
    %c0_i32 = arith.constant 0 : i32
    %c0_i32_0 = arith.constant 0 : i32
    %c0_i32_1 = arith.constant 0 : i32
    return %c0_i32, %c0_i32_0 : i32, i32
  }
  func.func @transform_2(%arg0: i32) -> (i32, i32) {
    %c0_i32 = arith.constant 0 : i32
    %c0_i32_0 = arith.constant 0 : i32
    %c0_i32_1 = arith.constant 0 : i32
    return %c0_i32, %c0_i32_0 : i32, i32
  }
  func.func @transform_3(%arg0: i32) -> (i32, i32) {
    %c0_i32 = arith.constant 0 : i32
    %c0_i32_0 = arith.constant 0 : i32
    %c0_i32_1 = arith.constant 0 : i32
    return %c0_i32, %c0_i32_0 : i32, i32
  }
  func.func @transform_4(%arg0: i32) -> (i32, i32) {
    %c0_i32 = arith.constant 0 : i32
    %c0_i32_0 = arith.constant 0 : i32
    %c0_i32_1 = arith.constant 0 : i32
    return %c0_i32, %c0_i32_0 : i32, i32
  }
  func.func @transform_5(%arg0: i32) -> (i32, i32) {
    %c0_i32 = arith.constant 0 : i32
    %c0_i32_0 = arith.constant 0 : i32
    %c0_i32_1 = arith.constant 0 : i32
    return %c0_i32, %c0_i32_0 : i32, i32
  }
  func.func @transform_6(%arg0: i32) -> (i32, i32) {
    %c0_i32 = arith.constant 0 : i32
    %c0_i32_0 = arith.constant 0 : i32
    %c0_i32_1 = arith.constant 0 : i32
    return %c0_i32, %c0_i32_0 : i32, i32
  }
  func.func @transform_7(%arg0: i32) -> (i32, i32) {
    %c0_i32 = arith.constant 0 : i32
    %c0_i32_0 = arith.constant 0 : i32
    %c0_i32_1 = arith.constant 0 : i32
    return %c0_i32, %c0_i32_0 : i32, i32
  }
  func.func @transform_8(%arg0: i32) -> (i32, i32) {
    %c0_i32 = arith.constant 0 : i32
    %c0_i32_0 = arith.constant 0 : i32
    %c0_i32_1 = arith.constant 0 : i32
    return %c0_i32, %c0_i32_0 : i32, i32
  }
  func.func @transform_9(%arg0: i32) -> (i32, i32) {
    %c0_i32 = arith.constant 0 : i32
    %c0_i32_0 = arith.constant 0 : i32
    %c0_i32_1 = arith.constant 0 : i32
    return %c0_i32, %c0_i32_0 : i32, i32
  }
  func.func @transform_10(%arg0: i32) -> (i32, i32) {
    %c0_i32 = arith.constant 0 : i32
    %c0_i32_0 = arith.constant 0 : i32
    %c0_i32_1 = arith.constant 0 : i32
    return %c0_i32, %c0_i32_0 : i32, i32
  }
  func.func @transform_11(%arg0: i32) -> (i32, i32) {
    %c0_i32 = arith.constant 0 : i32
    %c0_i32_0 = arith.constant 0 : i32
    %c0_i32_1 = arith.constant 0 : i32
    return %c0_i32, %c0_i32_0 : i32, i32
  }
  func.func @transform_12(%arg0: i32) -> (i32, i32) {
    %c0_i32 = arith.constant 0 : i32
    %c0_i32_0 = arith.constant 0 : i32
    %c0_i32_1 = arith.constant 0 : i32
    return %c0_i32, %c0_i32_0 : i32, i32
  }
  func.func @transform_13(%arg0: i32) -> (i32, i32) {
    %c0_i32 = arith.constant 0 : i32
    %c0_i32_0 = arith.constant 0 : i32
    %c0_i32_1 = arith.constant 0 : i32
    return %c0_i32, %c0_i32_0 : i32, i32
  }
  func.func @transform_14(%arg0: i32) -> (i32, i32) {
    %c0_i32 = arith.constant 0 : i32
    %c0_i32_0 = arith.constant 0 : i32
    %c0_i32_1 = arith.constant 0 : i32
    return %c0_i32, %c0_i32_0 : i32, i32
  }
  func.func @transform_15(%arg0: i32) -> (i32, i32, i32) {
    %c0_i32 = arith.constant 0 : i32
    %c0_i32_0 = arith.constant 0 : i32
    %c0_i32_1 = arith.constant 0 : i32
    return %arg0, %c0_i32, %c0_i32_0 : i32, i32, i32
  }
  func.func @transform_16(%arg0: i32) -> (i32, i32, i32) {
    %c0_i32 = arith.constant 0 : i32
    %c0_i32_0 = arith.constant 0 : i32
    %c0_i32_1 = arith.constant 0 : i32
    return %arg0, %c0_i32, %c0_i32_0 : i32, i32, i32
  }
}

</mosaic_0001>

<bundles_post_ra>
// kernel: cnn_ae_forward.1
= control target key start
LH: loop header
LB: loop body
LE: loop exit
PB: predicated region body
PF: predicated region fallthrough
CT: control target
= control target key end

     0   :  { %s10444_s0 = inlined_call_operand.vmem [shape: f32[2,8,100], index: 0, kind: input, shape index: {}]   ;;  %s10445_s1 = inlined_call_operand.vmem [shape: f32[32,64], index: 1, kind: input, shape index: {}]   ;;  %s10446_s2 = inlined_call_operand.vmem [shape: f32[32,1], index: 2, kind: input, shape index: {}]   ;;  %s10447_s3 = inlined_call_operand.vmem [shape: f32[64,256], index: 3, kind: input, shape index: {}]   ;;  %s10448_s4 = inlined_call_operand.vmem [shape: f32[64,1], index: 4, kind: input, shape index: {}]   ;;  %s10449_s5 = inlined_call_operand.hbm [shape: f32[128,512], index: 5, kind: input, shape index: {}]   ;;  %s10450_s6 = inlined_call_operand.vmem [shape: f32[128,1], index: 6, kind: input, shape index: {}]   ;;  %s10451_s7 = inlined_call_operand.hbm [shape: f32[64,1024], index: 7, kind: input, shape index: {}]   ;;  %s10452_s8 = inlined_call_operand.vmem [shape: f32[64,1], index: 8, kind: input, shape index: {}]   ;;  %s10453_s9 = inlined_call_operand.vmem [shape: f32[32,512], index: 9, kind: input, shape index: {}]   ;;  %s10454_s10 = inlined_call_operand.vmem [shape: f32[32,1], index: 10, kind: input, shape index: {}]   ;;  %s10455_s11 = inlined_call_operand.hbm [shape: f32[8,256], index: 11, kind: input, shape index: {}]   ;;  %s10456_s12 = inlined_call_operand.vmem [shape: f32[8,1], index: 12, kind: input, shape index: {}]   ;;  %s10457_s13 = inlined_call_operand.vmem [shape: f32[99,100], index: 13, kind: input, shape index: {}]   ;;  %s10458_s14 = inlined_call_operand.vmem [shape: f32[1,100], index: 14, kind: input, shape index: {}]   ;;  %s10459_s15 = inlined_call_operand.vmem [shape: f32[2,8,100], index: 15, kind: output, shape index: {0}]   ;;  %s10460_s16 = inlined_call_operand.vmem [shape: f32[2,128,15], index: 16, kind: output, shape index: {1}]  }
   0x1   :  { %10515 = sst [smem:[#allocation64_spill]] %s10444_s0 }
   0x2   :  { %10516 = sst [smem:[#allocation65_spill]] %s10445_s1 }
   0x3   :  { %10517 = sst [smem:[#allocation66_spill]] %s10446_s2 }
   0x4   :  { %10518 = sst [smem:[#allocation67_spill]] %s10447_s3 }
   0x5   :  { %10519 = sst [smem:[#allocation68_spill]] %s10448_s4 }
   0x6   :  { %22 = vsyncpa [#allocation3], 0 }
   0x7   :  { %23 = vsyncpa [#allocation5], 0  ;;  %s7801_s21 = smov 0  }
   0x8 LB: > { %s7695_s22 = smov [#allocation4]   ;;  %s7807_s24 = sadd.s32 4294967295, %s7693_s21   ;;  %s7693_s21 = sphi %s7801_s21, %s29_s21  }
   0x9   : > { %s446_s23 = sshll.u32 %s7695_s22, 4  ;;  %p6010_p0 = scmp.ge.s32.totalorder %s7693_s21, 1  ;;  %s447_s23 = int_to_ptr.vmem [resolvable:$true] %s446_s23 }
   0xa   : > { %p406_p1 = scmp.lt.s32.totalorder %s7693_s21, 3  ;;  %p7494_p2 = scmp.eq.s32.totalorder %s7807_s24, 0 }
   0xb   : > { %s7696_s26 = smov [#allocation2]   ;;  %s7697_s29 = smov [#allocation6]  }
   0xc   : > { %p7812_p3 = pnand %p6010_p0, %p406_p1  ;;  %s430_s27 = sshll.u32 %s7696_s26, 4  ;;  %s7818_s27 = int_to_ptr.vmem [resolvable:$true] %s430_s27 }
   0xd   : > { %s7826_s30 = sshll.u32 %s7697_s29, 4  ;;  %s7612_s0 = scalar_lea.vmem %s447_s23, 8192  ;;  %s470_s30 = int_to_ptr.vmem [resolvable:$true] %s7826_s30 }
   0xe   : > { %p7484_p4 = pneg %p7812_p3  ;;  %p7613_p7 = scmp.ne.s32.totalorder %s447_s23, %s7612_s0 }
   0xf   : > { %p7620_p10 = scmp.lt.s32.totalorder %s447_s23, %s447_s23  ;;  %p7621_p11 = scmp.lt.s32.totalorder %s7612_s0, %s7612_s0 }
  0x10   : > { %p7822_p5 = pnand %p7494_p2, %p7484_p4 }
  0x11   : > { %p7622_p12 = por %p7621_p11, %p7620_p10 }
  0x12   : > { %p7603_p6 = pneg %p7822_p5 }
  0x14   : > { %p7615_p8 = pnand %p7613_p7, %p7603_p6 }
  0x16   : > { %p7616_p9 = pneg %p7615_p8 }
  0x18   : > { %p7623_p13 = pnand %p7622_p12, %p7616_p9 }
  0x1a   : > { %7626 = shalt.err (!%p7623_p13)
}
  0x1b   : > { %s7698_s17 = smov 1024   ;;  %s7699_s18 = smov 64  }
  0x1c   : > { %7490 = dma.hbm_to_vmem [thread:$0]  (!%p7822_p5), %s10451_s7, 8192, %s447_s23, [#allocation5], %s7698_s17, %s7698_s17, %s7699_s18  }
  0x1d   : > { %s7638_s22 = scalar_lea.vmem %s7818_s27, 8192  ;;  %p7646_p7 = scmp.lt.s32.totalorder %s7818_s27, %s7818_s27 }
  0x1e   : > { %p7639_p0 = scmp.ne.s32.totalorder %s7818_s27, %s7638_s22  ;;  %p7647_p8 = scmp.lt.s32.totalorder %s7638_s22, %s7638_s22 }
  0x20   : > { %p7641_p1 = pnand %p7639_p0, %p7603_p6  ;;  %p7648_p9 = por %p7647_p8, %p7646_p7 }
  0x22   : > { %p7642_p4 = pneg %p7641_p1 }
  0x24   : > { %p7649_p10 = pnand %p7648_p9, %p7642_p4 }
  0x26   : > { %7652 = shalt.err (!%p7649_p10)
}
  0x27   : > { %s7700_s26 = smov 512   ;;  %s7701_s29 = smov 32  }
  0x28   : > { %7487 = dma.hbm_to_vmem [thread:$0]  (!%p7822_p5), %s10449_s5, 8192, %s7818_s27, [#allocation3], %s7700_s26, %s7700_s26, %s7701_s29  }
  0x29   : > { %s7664_s17 = scalar_lea.vmem %s470_s30, 256  ;;  %p7672_p0 = scmp.lt.s32.totalorder %s470_s30, %s470_s30 }
  0x2a   : > { %p7665_p11 = scmp.ne.s32.totalorder %s470_s30, %s7664_s17  ;;  %p7673_p1 = scmp.lt.s32.totalorder %s7664_s17, %s7664_s17 }
  0x2c   : > { %p7667_p12 = pnand %p7665_p11, %p7603_p6  ;;  %p7674_p4 = por %p7673_p1, %p7672_p0 }
  0x2e   : > { %p7668_p13 = pneg %p7667_p12 }
  0x30   : > { %p7675_p7 = pnand %p7674_p4, %p7668_p13 }
  0x32   : > { %7678 = shalt.err (!%p7675_p7)
}
  0x33   : > { %7493 = dma.hbm_to_vmem [thread:$0]  (!%p7822_p5), %s10455_s11, 256, %s470_s30, [#allocation5]  }
  0x34   : > { %498 = sbr.rel (%p7812_p3) target bundleno = 5482 (0x156a), region = 80 }
  0x39   : > { %7684 = dma.done.wait (%p7494_p2), [#allocation3], 8192  }
  0x3a   : > { %7686 = vsyncadd (%p7494_p2), [#allocation3], 4294959104 }
  0x3b   : > { %7688 = dma.done.wait (%p7494_p2), [#allocation5], 8448  }
  0x3c   : > { %7690 = vsyncadd (%p7494_p2), [#allocation5], 4294958848  ;;  %p559_p6 = scmp.lt.s32.totalorder %s7807_s24, 1  ;;  %s10522_s30 = sld [smem:[#allocation64_spill]]  ;;  %vm577_vm0 = vcmask 31744   ;;  %vm579_vm1 = vcmask 850944   ;;  %v803_v23 = vlaneseq }
  0x3d   : > { %s10474_s22 = smov 4   ;;  %s10468_s26 = smov 122   ;;  %vm631_vm2 = vcmask 523264   ;;  %v7709_v5 = vmov 0   ;;  %vm871_vm3 = vcmask 1045504   ;;  %v10482_v43 = vmov 0.0  }
  0x3e   : > { %s10679_s24 = smov (!%p559_p6, %s7807_s24), 1  ;;  %s10470_s29 = smov 121   ;;  %7530 = vset.pattern.permute.xlu1 %v7709_v5  ;;  %7529 = vset.pattern.permute.xlu0 %v7709_v5  ;;  %v7920_v26 = vshrl.u32 %v803_v23, 7  ;;  %v7922_v27 = vand.u32 127, %v803_v23  ;;  %v10480_v47 = vmov 1.0   ;;  %v10569_v57 = vmov 1.0  }
  0x3f   : > { %s10461_s25 = sshll.u32 %s10679_s24, 3  ;;  %s10523_s1 = sld [smem:[#allocation65_spill]] }
  0x40   : > { %s10464_s17 = smov 123   ;;  %s10462_s18 = smov 124   ;;  %10525 = vst [vmem:[#allocation9_spill] sm:$0xff] %v7922_v27  ;;  %v816_v32 = vadd.s32 96, %v7920_v26  ;;  %v7926_v33 = vmul.u32 2, %v7922_v27  ;;  %v815_v34 = vadd.s32 88, %v7920_v26 }
  0x41   : > { %s10472_s19 = smov 125   ;;  %s10466_s27 = smov 126   ;;  %v814_v37 = vadd.s32 80, %v7920_v26  ;;  %v813_v40 = vadd.s32 72, %v7920_v26  ;;  %v812_v46 = vadd.s32 64, %v7920_v26  ;;  %v811_v48 = vadd.s32 56, %v7920_v26 }
  0x42   : > { %s562_s20 = scalar_lea.vmem %s10522_s30, %s10461_s25  ;;  %s10524_s2 = sld [smem:[#allocation66_spill]]  ;;  %vm832_vm4 = vcmp.eq.s32.totalorder %v816_v32, %v7926_v33  ;;  %vm831_vm5 = vcmp.eq.s32.totalorder %v815_v34, %v7926_v33  ;;  %v7963_v49 = vadd.s32 48, %v7920_v26  ;;  %v7979_v50 = vadd.s32 40, %v7920_v26 }
  0x43   : > { %v572_v0 = vld [vmem:[%s562_s20] sm:$0xff]  ;;  %s10476_s20 = smov 127   ;;  %s10478_s23 = smov 1   ;;  %v6044_v44 = vsel %vm832_vm4, 1.0, %v10482_v43  ;;  %vm830_vm6 = vcmp.eq.s32.totalorder %v814_v37, %v7926_v33  ;;  %vm829_vm7 = vcmp.eq.s32.totalorder %v813_v40, %v7926_v33  ;;  %vm828_vm8 = vcmp.eq.s32.totalorder %v812_v46, %v7926_v33 }
  0x44   : > { %574 = vrot.lane.b32.xlu0 %v572_v0, %s10474_s22  ;;  %7119 = vmatprep.subr.msk.mxu1 %vm871_vm3, %v6044_v44  ;;  %10526 = vst [vmem:[#allocation10_spill] sm:$0xff] %v7963_v49  ;;  %vm827_vm9 = vcmp.eq.s32.totalorder %v811_v48, %v7926_v33  ;;  %10527 = vst [vmem:[#allocation11_spill] sm:$0xff] %v7979_v50  ;;  %vm7995_vm10 = vcmp.eq.s32.totalorder %v7963_v49, %v7926_v33  ;;  %v8000_v52 = vadd.s32 32, %v7920_v26  ;;  %vm754_vm4 = vcmask 834560   ;;  %s10545_s0 = smov 126   ;;  %s10546_s25 = smov 123  }
  0x45   : > { %v603_v4 = vld [vmem:[%s10523_s1] sm:$0xff]  ;;  %v604_v17 = vld [vmem:[%s10523_s1 + $0x8] sm:$0xff]  ;;  %v605_v18 = vld [vmem:[%s10523_s1 + $0x10] sm:$0xff]  ;;  %7120 = vmatpush3.msk.msra.mxu1 %vm871_vm3, %v6044_v44  ;;  %vm8016_vm11 = vcmp.eq.s32.totalorder %v7979_v50, %v7926_v33  ;;  %v8021_v54 = vadd.s32 24, %v7920_v26  ;;  %v8042_v56 = vadd.s32 16, %v7920_v26  ;;  %v8114_v59 = vadd.s32 8, %v7920_v26 }
  0x46   : > { %7113 = vmatprep.mubr.msk.f32.mxu0 %vm631_vm2, %v603_v4  ;;  %v606_v19 = vld [vmem:[%s10523_s1 + $0x18] sm:$0xff]  ;;  %7121 = vmatprep.subr.msk.mxu1 %vm831_vm5, %v10480_v47  ;;  %10530 = vst [vmem:[#allocation12_spill] sm:$0xff] %v8000_v52  ;;  %vm8037_vm12 = vcmp.eq.s32.totalorder %v8000_v52, %v7926_v33  ;;  %s10547_s3 = sld [smem:[#allocation67_spill]]  ;;  %s10557_s1 = smov 125  }
  0x47   : > { %7122 = vmatpush3.msk.msra.mxu1 %vm831_vm5, %v10480_v47  ;;  %10533 = vst [vmem:[#allocation13_spill] sm:$0xff] %v8021_v54  ;;  %10536 = vst [vmem:[#allocation14_spill] sm:$0xff] %v8042_v56  ;;  %vm8058_vm13 = vcmp.eq.s32.totalorder %v8021_v54, %v7926_v33  ;;  %vm8076_vm14 = vcmp.eq.s32.totalorder %v8042_v56, %v7926_v33  ;;  %vm8118_vm15 = vcmp.eq.s32.totalorder %v8114_v59, %v7926_v33  ;;  %s10549_s4 = sld [smem:[#allocation68_spill]]  ;;  %s10558_s28 = smov 121  }
  0x48   : > { %v607_v6 = vld [vmem:[%s10524_s2] sm:$0xff]  ;;  %v608_v7 = vld [vmem:[%s10524_s2 + $0x8] sm:$0xff]  ;;  %v610_v8 = vld [vmem:[%s10524_s2 + $0x18] sm:$0xff]  ;;  %7123 = vmatprep.subr.msk.mxu1 %vm830_vm6, %v10480_v47  ;;  %s10559_s30 = smov 122  }
  0x49   : > { %v609_v9 = vld [vmem:[%s10524_s2 + $0x10] sm:$0xff]  ;;  %7124 = vmatpush3.msk.msra.mxu1 %vm830_vm6, %v10480_v47 }
  0x4a   : > { %7125 = vmatprep.subr.msk.mxu1 %vm829_vm7, %v10480_v47 }
  0x4b   : > { %7126 = vmatpush3.msk.msra.mxu1 %vm829_vm7, %v10480_v47 }
  0x4c   : > { %7127 = vmatprep.subr.msk.mxu1 %vm828_vm8, %v10480_v47 }
  0x4d   : > { %7128 = vmatpush3.msk.msra.mxu1 %vm828_vm8, %v10480_v47  ;;  %v1195_v37 = vld [vmem:[%s10549_s4 + $0x8] sm:$0xff]  ;;  %v1196_v40 = vld [vmem:[%s10549_s4 + $0x10] sm:$0xff] }
  0x4e   : > { %7129 = vmatprep.subr.msk.mxu1 %vm827_vm9, %v10480_v47 }
  0x4f   : > { %7130 = vmatpush3.msk.msra.mxu1 %vm827_vm9, %v10480_v47 }
  0x50   : > { %7131 = vmatprep.subr.msk.mxu1 %vm7995_vm10, %v10480_v47 }
  0x51   : > { %7132 = vmatpush3.msk.msra.mxu1 %vm7995_vm10, %v10480_v47 }
  0x52   : > { %7133 = vmatprep.subr.msk.mxu1 %vm8016_vm11, %v10480_v47 }
  0x53   : > { %7134 = vmatpush3.msk.msra.mxu1 %vm8016_vm11, %v10480_v47 }
  0x54   : > { %7135 = vmatprep.subr.msk.mxu1 %vm8037_vm12, %v10480_v47 }
  0x55   : > { %7136 = vmatpush3.msk.msra.mxu1 %vm8037_vm12, %v10480_v47 }
  0x56   : > { %7137 = vmatprep.subr.msk.mxu1 %vm8058_vm13, %v10480_v47 }
  0x57   : > { %7138 = vmatpush3.msk.msra.mxu1 %vm8058_vm13, %v10480_v47 }
  0x58   : > { %7139 = vmatprep.subr.msk.mxu1 %vm8076_vm14, %v10480_v47 }
  0x59   : > { %7140 = vmatpush3.msk.msra.mxu1 %vm8076_vm14, %v10480_v47 }
  0x5a   : > { %7141 = vmatprep.subr.msk.mxu1 %vm8118_vm15, %v10480_v47 }
  0x5b   : > { %7142 = vmatpush3.msk.msra.mxu1 %vm8118_vm15, %v10480_v47 }
  0xb6   : > { %v575_v1 = vpop.permute.xlu0 %574 }
  0xb7   : > { %v578_v2 = vsel %vm577_vm0, 0.0, %v575_v1 }
  0xb8   : > { %v580_v3 = vsel %vm579_vm1, %v578_v2, 0.0 }
  0xb9   : > { %597 = vrot.lane.b32.xlu1 %v580_v3, %s10468_s26  ;;  %600 = vrot.lane.b32.xlu0 %v580_v3, %s10470_s29 }
  0xbd   : > { %594 = vrot.lane.b32.xlu1 %v580_v3, %s10464_s17  ;;  %591 = vrot.lane.b32.xlu0 %v580_v3, %s10462_s18  ;;  %s10513_s18 = smov 3  }
  0xc1   : > { %588 = vrot.lane.b32.xlu1 %v580_v3, %s10472_s19  ;;  %585 = vrot.lane.b32.xlu0 %v580_v3, %s10466_s27  ;;  %s10548_s27 = smov 124  }
  0xc5   : > { %582 = vrot.lane.b32.xlu1 %v580_v3, %s10476_s20  ;;  %613 = vperm.xlu0 %7529, %v607_v6  }
  0xc9   : > { %618 = vperm.xlu1 %7530, %v608_v7   ;;  %628 = vperm.xlu0 %7529, %v610_v8  }
  0xcd   : > { %623 = vperm.xlu1 %7530, %v609_v9  }
 0x12b   : > { %v598_v10 = vpop.permute.xlu1 %597  ;;  %v601_v11 = vpop.permute.xlu0 %600 }
 0x12c   : > { %7097 = vmatprep.subr.mxu0 %v601_v11 }
 0x12d   : > { %7098 = vmatpush3.msra.mxu0 %v601_v11 }
 0x12e   : > { %7099 = vmatprep.subr.mxu0 %v598_v10 }
 0x12f   : > { %v595_v12 = vpop.permute.xlu1 %594  ;;  %7100 = vmatpush3.msra.mxu0 %v598_v10  ;;  %v592_v13 = vpop.permute.xlu0 %591 }
 0x130   : > { %7101 = vmatprep.subr.mxu0 %v595_v12 }
 0x131   : > { %7102 = vmatpush3.msra.mxu0 %v595_v12 }
 0x132   : > { %7103 = vmatprep.subr.mxu0 %v592_v13 }
 0x133   : > { %v589_v14 = vpop.permute.xlu1 %588  ;;  %7104 = vmatpush3.msra.mxu0 %v592_v13  ;;  %v586_v15 = vpop.permute.xlu0 %585 }
 0x134   : > { %7105 = vmatprep.subr.mxu0 %v589_v14 }
 0x135   : > { %7106 = vmatpush3.msra.mxu0 %v589_v14 }
 0x136   : > { %7107 = vmatprep.subr.mxu0 %v586_v15 }
 0x137   : > { %v583_v16 = vpop.permute.xlu1 %582  ;;  %7108 = vmatpush3.msra.mxu0 %v586_v15 }
 0x138   : > { %7109 = vmatprep.subr.mxu0 %v583_v16 }
 0x139   : > { %7110 = vmatpush3.msra.mxu0 %v583_v16 }
 0x13a   : > { %7111 = vmatprep.subr.msk.mxu0 %vm579_vm1, %v578_v2 }
 0x13b   : > { %7112 = vmatpush3.msk.msra.mxu0 %vm579_vm1, %v578_v2  ;;  %vm8127_vm1 = vcmp.eq.s32.totalorder %v7920_v26, %v7926_v33 }
 0x13c   : > { %7114 = vmatmul.mubr.msk.f32.vlgmr.msra.gmra.mxu0 %vm631_vm2, %v604_v17  ;;  %7151 = vmatprep.subr.msk.mxu0 %vm871_vm3, %v6044_v44 }
 0x13d   : > { %7116 = vmatprep.mubr.msk.f32.mxu0 %vm631_vm2, %v605_v18  ;;  %7152 = vmatpush3.msk.msra.mxu0 %vm871_vm3, %v6044_v44  ;;  %v1201_v44 = vld [vmem:[%s10549_s4 + $0x38] sm:$0xff] }
 0x13e   : > { %7153 = vmatprep.subr.msk.mxu0 %vm831_vm5, %v10480_v47  ;;  %7143 = vmatprep.subr.msk.mxu1 %vm8127_vm1, %v10480_v47 }
 0x13f   : > { %7154 = vmatpush3.msk.msra.mxu0 %vm831_vm5, %v10480_v47  ;;  %7144 = vmatpush3.msk.msra.mxu1 %vm8127_vm1, %v10480_v47  ;;  %vm1085_vm5 = vcmask 449536  }
 0x140   : > { %7117 = vmatmul.mubr.msk.f32.gmra.mxu0 %vm631_vm2, %v606_v19  ;;  %v614_v20 = vpop.permute.xlu0 %613  ;;  %7155 = vmatprep.subr.msk.mxu0 %vm830_vm6, %v10480_v47  ;;  %vm749_vm2 = vcmask 7168  }
 0x141   : > { %7156 = vmatpush3.msk.msra.mxu0 %vm830_vm6, %v10480_v47 }
 0x142   : > { %7157 = vmatprep.subr.msk.mxu0 %vm829_vm7, %v10480_v47 }
 0x143   : > { %7158 = vmatpush3.msk.msra.mxu0 %vm829_vm7, %v10480_v47 }
 0x144   : > { %v619_v21 = vpop.permute.xlu1 %618  ;;  %v629_v30 = vpop.permute.xlu0 %628  ;;  %7159 = vmatprep.subr.msk.mxu0 %vm828_vm8, %v10480_v47 }
 0x145   : > { %7160 = vmatpush3.msk.msra.mxu0 %vm828_vm8, %v10480_v47 }
 0x146   : > { %7161 = vmatprep.subr.msk.mxu0 %vm827_vm9, %v10480_v47 }
 0x147   : > { %7162 = vmatpush3.msk.msra.mxu0 %vm827_vm9, %v10480_v47 }
 0x148   : > { %v624_v38 = vpop.permute.xlu1 %623  ;;  %7163 = vmatprep.subr.msk.mxu0 %vm7995_vm10, %v10480_v47 }
 0x149   : > { %7164 = vmatpush3.msk.msra.mxu0 %vm7995_vm10, %v10480_v47 }
 0x14a   : > { %7165 = vmatprep.subr.msk.mxu0 %vm8016_vm11, %v10480_v47 }
 0x14b   : > { %7166 = vmatpush3.msk.msra.mxu0 %vm8016_vm11, %v10480_v47 }
 0x14c   : > { %7167 = vmatprep.subr.msk.mxu0 %vm8037_vm12, %v10480_v47 }
 0x14d   : > { %7168 = vmatpush3.msk.msra.mxu0 %vm8037_vm12, %v10480_v47 }
 0x14e   : > { %7169 = vmatprep.subr.msk.mxu0 %vm8058_vm13, %v10480_v47 }
 0x14f   : > { %7170 = vmatpush3.msk.msra.mxu0 %vm8058_vm13, %v10480_v47 }
 0x150   : > { %7171 = vmatprep.subr.msk.mxu0 %vm8076_vm14, %v10480_v47 }
 0x151   : > { %7172 = vmatpush3.msk.msra.mxu0 %vm8076_vm14, %v10480_v47 }
 0x152   : > { %7173 = vmatprep.subr.msk.mxu0 %vm8118_vm15, %v10480_v47 }
 0x153   : > { %7174 = vmatpush3.msk.msra.mxu0 %vm8118_vm15, %v10480_v47 }
 0x154   : > { %7175 = vmatprep.subr.msk.mxu0 %vm8127_vm1, %v10480_v47 }
 0x155   : > { %7176 = vmatpush3.msk.msra.mxu0 %vm8127_vm1, %v10480_v47 }
 0x1fc   : > { %v7115_v22 = vpop.f32.mrf.mxu0 }
 0x1fd   : > { %v716_v24 = vadd.f32 %v7115_v22, %v619_v21 }
 0x1fe   : > { %v710_v25 = vpop.f32.mrf.mxu0 }
 0x1ff   : > { %v730_v28 = vmax.f32 %v716_v24, 0.0  ;;  %v711_v29 = vadd.f32 %v710_v25, %v614_v20 }
 0x200   : > { %v7118_v31 = vpop.f32.mrf.mxu0 }
 0x201   : > { %v729_v35 = vmax.f32 %v711_v29, 0.0  ;;  %v726_v36 = vadd.f32 %v7118_v31, %v629_v30  ;;  %739 = vrot.lane.b32.xlu0 %v730_v28, %s10478_s23 }
 0x202   : > { %v720_v39 = vpop.f32.mrf.mxu0 }
 0x203   : > { %v732_v41 = vmax.f32 %v726_v36, 0.0  ;;  %v721_v42 = vadd.f32 %v720_v39, %v624_v38  ;;  %737 = vrot.lane.b32.xlu1 %v729_v35, %s10478_s23  ;;  %v1179_v36 = vld [vmem:[%s10547_s3 + $0x8] sm:$0xff]  ;;  %v1194_v38 = vld [vmem:[%s10549_s4] sm:$0xff]  ;;  %v1197_v39 = vld [vmem:[%s10549_s4 + $0x18] sm:$0xff] }
 0x205   : > { %v731_v45 = vmax.f32 %v721_v42, 0.0  ;;  %743 = vrot.lane.b32.xlu0 %v732_v41, %s10478_s23  ;;  %v1199_v41 = vld [vmem:[%s10549_s4 + $0x28] sm:$0xff]  ;;  %v1198_v42 = vld [vmem:[%s10549_s4 + $0x20] sm:$0xff] }
 0x207   : > { %741 = vrot.lane.b32.xlu1 %v731_v45, %s10478_s23  ;;  %v1200_v45 = vld [vmem:[%s10549_s4 + $0x30] sm:$0xff]  ;;  %s10556_s23 = smov 4   ;;  %s10676_s4 = smov 3  }
 0x273   : > { %v740_v62 = vpop.permute.xlu0 %739 }
 0x274   : > { %v751_v63 = vsel %vm749_vm2, -1.0, %v740_v62 }
 0x275   : > { %v8154_v0 = vsel %vm754_vm4, %v751_v63, -1.0  ;;  %v738_v1 = vpop.permute.xlu1 %737 }
 0x276   : > { %v750_v2 = vsel %vm749_vm2, -1.0, %v738_v1  ;;  %765 = vrot.lane.b32.xlu0 %v8154_v0, %s10476_s20 }
 0x277   : > { %v8160_v3 = vsel %vm754_vm4, %v750_v2, -1.0  ;;  %v744_v4 = vpop.permute.xlu0 %743 }
 0x278   : > { %v753_v5 = vsel %vm749_vm2, -1.0, %v744_v4  ;;  %763 = vrot.lane.b32.xlu1 %v8160_v3, %s10476_s20 }
 0x279   : > { %v8166_v6 = vsel %vm754_vm4, %v753_v5, -1.0  ;;  %v742_v7 = vpop.permute.xlu1 %741 }
 0x27a   : > { %v752_v8 = vsel %vm749_vm2, -1.0, %v742_v7  ;;  %769 = vrot.lane.b32.xlu0 %v8166_v6, %s10476_s20 }
 0x27b   : > { %v8172_v9 = vsel %vm754_vm4, %v752_v8, -1.0 }
 0x27c   : > { %767 = vrot.lane.b32.xlu1 %v8172_v9, %s10476_s20 }
 0x2e8   : > { %v766_v10 = vpop.permute.xlu0 %765 }
 0x2e9   : > { %v776_v13 = vmax.f32 %v8154_v0, %v766_v10 }
 0x2ea   : > { %v764_v11 = vpop.permute.xlu1 %763 }
 0x2eb   : > { %v775_v12 = vmax.f32 %v8160_v3, %v764_v11 }
 0x2ec   : > { %v770_v14 = vpop.permute.xlu0 %769 }
 0x2ed   : > { %7145 = vmatprep.mubr.msk.f32.mxu1 %vm754_vm4, %v775_v12  ;;  %v778_v17 = vmax.f32 %v8166_v6, %v770_v14 }
 0x2ee   : > { %v768_v15 = vpop.permute.xlu1 %767  ;;  %7146 = vmatmul.mubr.msk.f32.vlgmr.msra.gmra.mxu1 %vm754_vm4, %v776_v13 }
 0x2ef   : > { %v777_v16 = vmax.f32 %v8172_v9, %v768_v15 }
 0x2f1   : > { %7148 = vmatprep.mubr.msk.f32.mxu1 %vm754_vm4, %v777_v16 }
 0x2f2   : > { %7149 = vmatmul.mubr.msk.f32.gmra.mxu1 %vm754_vm4, %v778_v17 }
 0x2f3   : > { %1306 = vmatprep.mubr.f32.mxu1 %v1179_v36  ;;  %v1184_v36 = vld [vmem:[%s10547_s3 + $0x30] sm:$0xff] }
 0x3ae   : > { %v7147_v18 = vpop.f32.mrf.mxu1 }
 0x3b0   : > { %v941_v19 = vpop.f32.mrf.mxu1 }
 0x3b2   : > { %v7150_v20 = vpop.f32.mrf.mxu1 }
 0x3b3   : > { %1075 = vrot.lane.b32.xlu1 %v7150_v20, %s10474_s22 }
 0x3b4   : > { %v951_v21 = vpop.f32.mrf.mxu1 }
 0x3b5   : > { %1073 = vrot.lane.b32.xlu0 %v951_v21, %s10474_s22 }
 0x3b7   : > { %1071 = vrot.lane.b32.xlu1 %v7147_v18, %s10474_s22 }
 0x3b9   : > { %1069 = vrot.lane.b32.xlu0 %v941_v19, %s10474_s22  ;;  %s10550_s22 = smov 1  }
 0x425   : > { %v1076_v22 = vpop.permute.xlu1 %1075 }
 0x426   : > { %v8205_v32 = vsel %vm577_vm0, 0.0, %v1076_v22 }
 0x427   : > { %v1074_v23 = vpop.permute.xlu0 %1073  ;;  %v1089_v33 = vsel %vm1085_vm5, %v8205_v32, 0.0 }
 0x428   : > { %v8214_v34 = vsel %vm577_vm0, 0.0, %v1074_v23 }
 0x429   : > { %v1072_v24 = vpop.permute.xlu1 %1071  ;;  %v1088_v35 = vsel %vm1085_vm5, %v8214_v34, 0.0 }
 0x42a   : > { %v8189_v25 = vsel %vm577_vm0, 0.0, %v1072_v24 }
 0x42b   : > { %v1087_v28 = vsel %vm1085_vm5, %v8189_v25, 0.0  ;;  %v1070_v29 = vpop.permute.xlu0 %1069 }
 0x42c   : > { %1168 = vrot.lane.b32.xlu1 %v1087_v28, %s10470_s29  ;;  %1120 = vrot.lane.b32.xlu0 %v1087_v28, %s10472_s19  ;;  %v8196_v30 = vsel %vm577_vm0, 0.0, %v1070_v29 }
 0x42d   : > { %v1086_v31 = vsel %vm1085_vm5, %v8196_v30, 0.0 }
 0x430   : > { %1156 = vrot.lane.b32.xlu1 %v1087_v28, %s10468_s26  ;;  %1108 = vrot.lane.b32.xlu0 %v1087_v28, %s10545_s0 }
 0x434   : > { %1118 = vrot.lane.b32.xlu0 %v1086_v31, %s10472_s19  ;;  %1166 = vrot.lane.b32.xlu1 %v1086_v31, %s10470_s29 }
 0x438   : > { %1106 = vrot.lane.b32.xlu0 %v1086_v31, %s10545_s0  ;;  %1154 = vrot.lane.b32.xlu1 %v1086_v31, %s10468_s26 }
 0x43c   : > { %1124 = vrot.lane.b32.xlu0 %v1089_v33, %s10472_s19  ;;  %1172 = vrot.lane.b32.xlu1 %v1089_v33, %s10470_s29 }
 0x440   : > { %1112 = vrot.lane.b32.xlu0 %v1089_v33, %s10545_s0  ;;  %1160 = vrot.lane.b32.xlu1 %v1089_v33, %s10468_s26 }
 0x444   : > { %1122 = vrot.lane.b32.xlu0 %v1088_v35, %s10472_s19  ;;  %1170 = vrot.lane.b32.xlu1 %v1088_v35, %s10470_s29 }
 0x448   : > { %1100 = vrot.lane.b32.xlu0 %v1089_v33, %s10476_s20  ;;  %1148 = vrot.lane.b32.xlu1 %v1089_v33, %s10546_s25 }
 0x44c   : > { %1110 = vrot.lane.b32.xlu0 %v1088_v35, %s10545_s0  ;;  %1158 = vrot.lane.b32.xlu1 %v1088_v35, %s10468_s26 }
 0x450   : > { %1096 = vrot.lane.b32.xlu0 %v1087_v28, %s10476_s20  ;;  %1144 = vrot.lane.b32.xlu1 %v1087_v28, %s10546_s25 }
 0x454   : > { %1098 = vrot.lane.b32.xlu0 %v1088_v35, %s10476_s20  ;;  %1146 = vrot.lane.b32.xlu1 %v1088_v35, %s10546_s25 }
 0x458   : > { %1094 = vrot.lane.b32.xlu0 %v1086_v31, %s10476_s20  ;;  %1142 = vrot.lane.b32.xlu1 %v1086_v31, %s10546_s25  ;;  %s10551_s20 = smov 127  }
 0x45c   : > { %1134 = vrot.lane.b32.xlu0 %v1088_v35, %s10548_s27  ;;  %1136 = vrot.lane.b32.xlu1 %v1089_v33, %s10548_s27  ;;  %v1178_v33 = vld [vmem:[%s10547_s3] sm:$0xff]  ;;  %v1181_v35 = vld [vmem:[%s10547_s3 + $0x18] sm:$0xff] }
 0x460   : > { %1130 = vrot.lane.b32.xlu0 %v1086_v31, %s10548_s27  ;;  %1132 = vrot.lane.b32.xlu1 %v1087_v28, %s10548_s27 }
 0x464   : > { %1209 = vperm.xlu0 %7529, %v1195_v37   ;;  %1204 = vperm.xlu1 %7530, %v1194_v38   ;;  %v1187_v37 = vld [vmem:[%s10547_s3 + $0x48] sm:$0xff]  ;;  %v1186_v38 = vld [vmem:[%s10547_s3 + $0x40] sm:$0xff] }
 0x468   : > { %1219 = vperm.xlu0 %7529, %v1197_v39   ;;  %1214 = vperm.xlu1 %7530, %v1196_v40   ;;  %v1189_v39 = vld [vmem:[%s10547_s3 + $0x58] sm:$0xff]  ;;  %v1188_v40 = vld [vmem:[%s10547_s3 + $0x50] sm:$0xff] }
 0x46c   : > { %1229 = vperm.xlu0 %7529, %v1199_v41   ;;  %1224 = vperm.xlu1 %7530, %v1198_v42   ;;  %v1191_v41 = vld [vmem:[%s10547_s3 + $0x68] sm:$0xff]  ;;  %v1190_v42 = vld [vmem:[%s10547_s3 + $0x60] sm:$0xff] }
 0x470   : > { %1239 = vperm.xlu0 %7529, %v1201_v44   ;;  %1234 = vperm.xlu1 %7530, %v1200_v45   ;;  %v1193_v44 = vld [vmem:[%s10547_s3 + $0x78] sm:$0xff]  ;;  %v1192_v45 = vld [vmem:[%s10547_s3 + $0x70] sm:$0xff] }
 0x474   : > { %781 = vrot.lane.b32.xlu0 %v8154_v0, %s10550_s22  ;;  %779 = vrot.lane.b32.xlu1 %v8160_v3, %s10550_s22 }
 0x478   : > { %785 = vrot.lane.b32.xlu0 %v8166_v6, %s10550_s22  ;;  %783 = vrot.lane.b32.xlu1 %v8172_v9, %s10550_s22 }
 0x49e   : > { %v1169_v46 = vpop.permute.xlu1 %1168  ;;  %v1121_v48 = vpop.permute.xlu0 %1120 }
 0x4a2   : > { %v1157_v62 = vpop.permute.xlu1 %1156  ;;  %v1109_v63 = vpop.permute.xlu0 %1108 }
 0x4a6   : > { %v1167_v1 = vpop.permute.xlu1 %1166  ;;  %v1119_v2 = vpop.permute.xlu0 %1118 }
 0x4aa   : > { %v1155_v4 = vpop.permute.xlu1 %1154  ;;  %v1107_v5 = vpop.permute.xlu0 %1106 }
 0x4ae   : > { %v1173_v7 = vpop.permute.xlu1 %1172  ;;  %v1125_v8 = vpop.permute.xlu0 %1124 }
 0x4af   : > { %6368 = vmatprep.subr.mxu1 %v1173_v7 }
 0x4b0   : > { %6369 = vmatpush3.msra.mxu1 %v1125_v8 }
 0x4b2   : > { %v1161_v10 = vpop.permute.xlu1 %1160  ;;  %v1113_v11 = vpop.permute.xlu0 %1112 }
 0x4b6   : > { %v1171_v12 = vpop.permute.xlu1 %1170  ;;  %v1123_v13 = vpop.permute.xlu0 %1122 }
 0x4b7   : > { %6370 = vmatprep.subr.mxu1 %v1171_v12 }
 0x4b8   : > { %6371 = vmatpush3.msra.mxu1 %v1123_v13 }
 0x4b9   : > { %6372 = vmatprep.subr.mxu1 %v1169_v46 }
 0x4ba   : > { %v1149_v14 = vpop.permute.xlu1 %1148  ;;  %6373 = vmatpush3.msra.mxu1 %v1121_v48  ;;  %v1101_v15 = vpop.permute.xlu0 %1100 }
 0x4bb   : > { %6374 = vmatprep.subr.mxu1 %v1167_v1 }
 0x4bc   : > { %6375 = vmatpush3.msra.mxu1 %v1119_v2 }
 0x4bd   : > { %6376 = vmatprep.subr.mxu1 %v1161_v10 }
 0x4be   : > { %v1159_v16 = vpop.permute.xlu1 %1158  ;;  %6377 = vmatpush3.msra.mxu1 %v1113_v11  ;;  %v1111_v17 = vpop.permute.xlu0 %1110 }
 0x4bf   : > { %6378 = vmatprep.subr.mxu1 %v1159_v16 }
 0x4c0   : > { %6379 = vmatpush3.msra.mxu1 %v1111_v17 }
 0x4c1   : > { %6380 = vmatprep.subr.mxu1 %v1157_v62 }
 0x4c2   : > { %v1145_v18 = vpop.permute.xlu1 %1144  ;;  %6381 = vmatpush3.msra.mxu1 %v1109_v63  ;;  %v1097_v19 = vpop.permute.xlu0 %1096 }
 0x4c3   : > { %6382 = vmatprep.subr.mxu1 %v1155_v4 }
 0x4c4   : > { %6383 = vmatpush3.msra.mxu1 %v1107_v5 }
 0x4c5   : > { %6384 = vmatprep.subr.mxu1 %v1149_v14 }
 0x4c6   : > { %v1147_v20 = vpop.permute.xlu1 %1146  ;;  %6385 = vmatpush3.msra.mxu1 %v1101_v15  ;;  %v1099_v21 = vpop.permute.xlu0 %1098 }
 0x4c7   : > { %6386 = vmatprep.subr.mxu1 %v1147_v20 }
 0x4c8   : > { %6387 = vmatpush3.msra.mxu1 %v1099_v21 }
 0x4c9   : > { %6388 = vmatprep.subr.mxu1 %v1145_v18 }
 0x4ca   : > { %v1143_v22 = vpop.permute.xlu1 %1142  ;;  %6389 = vmatpush3.msra.mxu1 %v1097_v19  ;;  %v1095_v23 = vpop.permute.xlu0 %1094 }
 0x4cb   : > { %6390 = vmatprep.subr.mxu1 %v1143_v22 }
 0x4cc   : > { %6391 = vmatpush3.msra.mxu1 %v1095_v23 }
 0x4ce   : > { %v1137_v24 = vpop.permute.xlu1 %1136  ;;  %v1135_v28 = vpop.permute.xlu0 %1134 }
 0x4cf   : > { %6392 = vmatprep.subr.mxu1 %v1137_v24 }
 0x4d0   : > { %6393 = vmatpush3.msk.msra.mxu1 %vm1085_vm5, %v8205_v32  ;;  %v1180_v32 = vld [vmem:[%s10547_s3 + $0x10] sm:$0xff] }
 0x4d1   : > { %6394 = vmatprep.subr.mxu1 %v1135_v28 }
 0x4d2   : > { %v1133_v29 = vpop.permute.xlu1 %1132  ;;  %6395 = vmatpush3.msk.msra.mxu1 %vm1085_vm5, %v8214_v34  ;;  %v1131_v31 = vpop.permute.xlu0 %1130  ;;  %v1182_v34 = vld [vmem:[%s10547_s3 + $0x20] sm:$0xff] }
 0x4d3   : > { %6396 = vmatprep.subr.mxu1 %v1133_v29 }
 0x4d4   : > { %6397 = vmatpush3.msk.msra.mxu1 %vm1085_vm5, %v8189_v25  ;;  %v1183_v25 = vld [vmem:[%s10547_s3 + $0x28] sm:$0xff] }
 0x4d5   : > { %6398 = vmatprep.subr.mxu1 %v1131_v31 }
 0x4d6   : > { %6399 = vmatpush3.msk.msra.mxu1 %vm1085_vm5, %v8196_v30  ;;  %v1185_v30 = vld [vmem:[%s10547_s3 + $0x38] sm:$0xff] }
 0x4d7   : > { %1307 = vmatmul.mubr.f32.vlgmr.msra.gmra.mxu1 %v1178_v33 }
 0x4d8   : > { %1311 = vmatprep.mubr.f32.mxu1 %v1181_v35 }
 0x4db   : > { %1312 = vmatmul.mubr.f32.gmra.mxu1 %v1180_v32 }
 0x4dc   : > { %1316 = vmatprep.mubr.f32.mxu1 %v1183_v25 }
 0x4df   : > { %1317 = vmatmul.mubr.f32.gmra.mxu1 %v1182_v34  ;;  %v1205_v46 = vpop.permute.xlu1 %1204  ;;  %v1210_v48 = vpop.permute.xlu0 %1209 }
 0x4e0   : > { %1321 = vmatprep.mubr.f32.mxu1 %v1185_v30 }
 0x4e3   : > { %1322 = vmatmul.mubr.f32.gmra.mxu1 %v1184_v36  ;;  %v1215_v4 = vpop.permute.xlu1 %1214  ;;  %v1220_v7 = vpop.permute.xlu0 %1219 }
 0x4e4   : > { %1326 = vmatprep.mubr.f32.mxu1 %v1187_v37 }
 0x4e7   : > { %1327 = vmatmul.mubr.f32.gmra.mxu1 %v1186_v38  ;;  %v1225_v15 = vpop.permute.xlu1 %1224  ;;  %v1230_v18 = vpop.permute.xlu0 %1229 }
 0x4e8   : > { %1331 = vmatprep.mubr.f32.mxu1 %v1189_v39 }
 0x4eb   : > { %1332 = vmatmul.mubr.f32.gmra.mxu1 %v1188_v40  ;;  %v1235_v28 = vpop.permute.xlu1 %1234  ;;  %v1240_v31 = vpop.permute.xlu0 %1239 }
 0x4ec   : > { %1336 = vmatprep.mubr.f32.mxu1 %v1191_v41 }
 0x4ef   : > { %1337 = vmatmul.mubr.f32.gmra.mxu1 %v1190_v42  ;;  %v780_v36 = vpop.permute.xlu1 %779  ;;  %v782_v39 = vpop.permute.xlu0 %781 }
 0x4f0   : > { %1341 = vmatprep.mubr.f32.mxu1 %v1193_v44  ;;  %vm791_vm6 = vcmp.gt.f32.partialorder %v8160_v3, %v780_v36  ;;  %vm792_vm7 = vcmp.gt.f32.partialorder %v8154_v0, %v782_v39 }
 0x4f3   : > { %1342 = vmatmul.mubr.f32.gmra.mxu1 %v1192_v45 }
 0x597   : > { %v6400_v62 = vpop.f32.mrf.mxu1 }
 0x599   : > { %v6401_v63 = vpop.f32.mrf.mxu1 }
 0x59a   : > { %v6402_v1 = vadd.f32 %v6401_v63, %v6400_v62  ;;  %v786_v63 = vpop.permute.xlu0 %785 }
 0x59b   : > { %v6403_v2 = vpop.f32.mrf.mxu1  ;;  %vm794_vm9 = vcmp.gt.f32.partialorder %v8166_v6, %v786_v63  ;;  %v8345_v6 = vsel %vm7995_vm10, 1.0, %v10482_v43  ;;  %vm1492_vm10 = vcmask 441344  }
 0x59c   : > { %v1309_v5 = vadd.f32 %v6402_v1, %v1205_v46  ;;  %7183 = vmatprep.subr.msk.mxu0 %vm871_vm3, %v8345_v6 }
 0x59d   : > { %v6404_v8 = vpop.f32.mrf.mxu1 }
 0x59e   : > { %v6405_v10 = vadd.f32 %v6404_v8, %v6403_v2  ;;  %v1347_v11 = vmax.f32 %v1309_v5, 0.0  ;;  %v6028_v5 = vsel %vm791_vm6, 1.0, %v10482_v43  ;;  %vm1395_vm6 = vcmask 433152  }
 0x59f   : > { %v6406_v12 = vpop.f32.mrf.mxu1 }
 0x5a0   : > { %v1314_v13 = vadd.f32 %v6405_v10, %v1210_v48  ;;  %1363 = vrot.lane.b32.xlu1 %v1347_v11, %s10550_s22  ;;  %v784_v48 = vpop.permute.xlu1 %783  ;;  %v6031_v11 = vsel %vm794_vm9, 1.0, %v10482_v43 }
 0x5a1   : > { %v6407_v14 = vpop.f32.mrf.mxu1  ;;  %vm793_vm8 = vcmp.gt.f32.partialorder %v8172_v9, %v784_v48 }
 0x5a2   : > { %v6408_v16 = vadd.f32 %v6407_v14, %v6406_v12  ;;  %v1348_v17 = vmax.f32 %v1314_v13, 0.0  ;;  %v6030_v10 = vsel %vm793_vm8, 1.0, %v10482_v43  ;;  %vm1810_vm8 = vcmask 252928  }
 0x5a3   : > { %v6409_v19 = vpop.f32.mrf.mxu1  ;;  %v7536_v12 = vpack.i.bf16 %v6031_v11, %v6030_v10 }
 0x5a4   : > { %v1319_v20 = vadd.f32 %v6408_v16, %v1215_v4  ;;  %1365 = vrot.lane.b32.xlu0 %v1348_v17, %s10550_s22 }
 0x5a5   : > { %v6410_v21 = vpop.f32.mrf.mxu1 }
 0x5a6   : > { %v6411_v22 = vadd.f32 %v6410_v21, %v6409_v19  ;;  %v1349_v23 = vmax.f32 %v1319_v20, 0.0 }
 0x5a7   : > { %v6412_v24 = vpop.f32.mrf.mxu1 }
 0x5a8   : > { %v1324_v29 = vadd.f32 %v6411_v22, %v1220_v7  ;;  %1367 = vrot.lane.b32.xlu1 %v1349_v23, %s10550_s22  ;;  %v6029_v7 = vsel %vm792_vm7, 1.0, %v10482_v43 }
 0x5a9   : > { %v6413_v33 = vpop.f32.mrf.mxu1  ;;  %v7531_v0 = vpack.i.bf16 %v6029_v7, %v6028_v5 }
 0x5aa   : > { %v6414_v35 = vadd.f32 %v6413_v33, %v6412_v24  ;;  %v1350_v32 = vmax.f32 %v1324_v29, 0.0 }
 0x5ab   : > { %v6415_v25 = vpop.f32.mrf.mxu1 }
 0x5ac   : > { %v1329_v34 = vadd.f32 %v6414_v35, %v1225_v15  ;;  %1369 = vrot.lane.b32.xlu0 %v1350_v32, %s10550_s22 }
 0x5ad   : > { %v6416_v30 = vpop.f32.mrf.mxu1 }
 0x5ae   : > { %v6417_v37 = vadd.f32 %v6416_v30, %v6415_v25  ;;  %v1351_v38 = vmax.f32 %v1329_v34, 0.0 }
 0x5af   : > { %v6418_v40 = vpop.f32.mrf.mxu1 }
 0x5b0   : > { %v1334_v41 = vadd.f32 %v6417_v37, %v1230_v18  ;;  %1371 = vrot.lane.b32.xlu1 %v1351_v38, %s10550_s22 }
 0x5b1   : > { %v6419_v42 = vpop.f32.mrf.mxu1 }
 0x5b2   : > { %v6420_v44 = vadd.f32 %v6419_v42, %v6418_v40  ;;  %v1352_v45 = vmax.f32 %v1334_v41, 0.0 }
 0x5b3   : > { %v6421_v46 = vpop.f32.mrf.mxu1 }
 0x5b4   : > { %v1339_v62 = vadd.f32 %v6420_v44, %v1235_v28  ;;  %1373 = vrot.lane.b32.xlu0 %v1352_v45, %s10550_s22 }
 0x5b5   : > { %v6422_v1 = vpop.f32.mrf.mxu1 }
 0x5b6   : > { %v6423_v2 = vadd.f32 %v6422_v1, %v6421_v46  ;;  %v1353_v4 = vmax.f32 %v1339_v62, 0.0 }
 0x5b8   : > { %v1344_v8 = vadd.f32 %v6423_v2, %v1240_v31  ;;  %1375 = vrot.lane.b32.xlu1 %v1353_v4, %s10550_s22 }
 0x5ba   : > { %v1354_v3 = vmax.f32 %v1344_v8, 0.0 }
 0x5bc   : > { %1377 = vrot.lane.b32.xlu0 %v1354_v3, %s10550_s22  ;;  %7532 = vrot.lane.b32.xlu1 %v7531_v0, %s10551_s20 }
 0x5c0   : > { %7537 = vrot.lane.b32.xlu0 %v7536_v12, %s10551_s20 }
 0x612   : > { %v1364_v9 = vpop.permute.xlu1 %1363 }
 0x613   : > { %v1387_v13 = vsel %vm749_vm2, -1.0, %v1364_v9 }
 0x614   : > { %v8351_v14 = vsel %vm1395_vm6, %v1387_v13, -1.0 }
 0x615   : > { %1412 = vrot.lane.b32.xlu1 %v8351_v14, %s10551_s20 }
 0x616   : > { %v1366_v15 = vpop.permute.xlu0 %1365 }
 0x617   : > { %v1388_v16 = vsel %vm749_vm2, -1.0, %v1366_v15 }
 0x618   : > { %v8357_v51 = vsel %vm1395_vm6, %v1388_v16, -1.0 }
 0x619   : > { %1414 = vrot.lane.b32.xlu0 %v8357_v51, %s10551_s20 }
 0x61a   : > { %v1368_v17 = vpop.permute.xlu1 %1367 }
 0x61b   : > { %v1389_v18 = vsel %vm749_vm2, -1.0, %v1368_v17 }
 0x61c   : > { %v8363_v19 = vsel %vm1395_vm6, %v1389_v18, -1.0 }
 0x61d   : > { %1416 = vrot.lane.b32.xlu1 %v8363_v19, %s10551_s20 }
 0x61e   : > { %v1370_v20 = vpop.permute.xlu0 %1369 }
 0x61f   : > { %v1390_v21 = vsel %vm749_vm2, -1.0, %v1370_v20 }
 0x620   : > { %v8369_v22 = vsel %vm1395_vm6, %v1390_v21, -1.0 }
 0x621   : > { %1418 = vrot.lane.b32.xlu0 %v8369_v22, %s10551_s20 }
 0x622   : > { %v1372_v23 = vpop.permute.xlu1 %1371 }
 0x623   : > { %v1391_v24 = vsel %vm749_vm2, -1.0, %v1372_v23 }
 0x624   : > { %v8375_v28 = vsel %vm1395_vm6, %v1391_v24, -1.0 }
 0x625   : > { %1420 = vrot.lane.b32.xlu1 %v8375_v28, %s10551_s20 }
 0x626   : > { %v1374_v29 = vpop.permute.xlu0 %1373 }
 0x627   : > { %v1392_v31 = vsel %vm749_vm2, -1.0, %v1374_v29 }
 0x628   : > { %v8381_v33 = vsel %vm1395_vm6, %v1392_v31, -1.0 }
 0x629   : > { %1422 = vrot.lane.b32.xlu0 %v8381_v33, %s10551_s20 }
 0x62a   : > { %v1376_v35 = vpop.permute.xlu1 %1375 }
 0x62b   : > { %v1393_v32 = vsel %vm749_vm2, -1.0, %v1376_v35 }
 0x62c   : > { %v8387_v25 = vsel %vm1395_vm6, %v1393_v32, -1.0 }
 0x62d   : > { %1424 = vrot.lane.b32.xlu1 %v8387_v25, %s10551_s20 }
 0x62e   : > { %v7533_v34 = vpop.permute.xlu1 %7532  ;;  %v1378_v30 = vpop.permute.xlu0 %1377 }
 0x62f   : > { %v7535_v36 = vunpack.i.h.bf16 %v7533_v34  ;;  %v7534_v37 = vunpack.i.l.bf16 %v7533_v34  ;;  %v1394_v38 = vsel %vm749_vm2, -1.0, %v1378_v30 }
 0x630   : > { %v8393_v39 = vsel %vm1395_vm6, %v1394_v38, -1.0 }
 0x631   : > { %1448 = vrot.lane.b32.xlu1 %v8363_v19, %s10550_s22  ;;  %7177 = vmatprep.mubr.msk.f32.mxu0 %vm754_vm4, %v7534_v37 }
 0x632   : > { %1426 = vrot.lane.b32.xlu0 %v8393_v39, %s10551_s20  ;;  %7178 = vmatmul.mubr.msk.f32.vlgmr.msra.gmra.mxu0 %vm754_vm4, %v7535_v36  ;;  %v7538_v40 = vpop.permute.xlu0 %7537 }
 0x633   : > { %v7540_v41 = vunpack.i.h.bf16 %v7538_v40  ;;  %v7539_v42 = vunpack.i.l.bf16 %v7538_v40  ;;  %7184 = vmatpush3.msk.msra.mxu0 %vm871_vm3, %v8345_v6 }
 0x634   : > { %7185 = vmatprep.subr.msk.mxu0 %vm8016_vm11, %v10480_v47 }
 0x635   : > { %1452 = vrot.lane.b32.xlu1 %v8375_v28, %s10550_s22  ;;  %7180 = vmatprep.mubr.msk.f32.mxu0 %vm754_vm4, %v7539_v42 }
 0x636   : > { %1444 = vrot.lane.b32.xlu0 %v8351_v14, %s10550_s22  ;;  %7181 = vmatmul.mubr.msk.f32.gmra.mxu0 %vm754_vm4, %v7540_v41 }
 0x637   : > { %7186 = vmatpush3.msk.msra.mxu0 %vm8016_vm11, %v10480_v47 }
 0x638   : > { %7187 = vmatprep.subr.msk.mxu0 %vm8037_vm12, %v10480_v47 }
 0x639   : > { %1456 = vrot.lane.b32.xlu1 %v8387_v25, %s10550_s22  ;;  %7188 = vmatpush3.msk.msra.mxu0 %vm8037_vm12, %v10480_v47 }
 0x63a   : > { %1446 = vrot.lane.b32.xlu0 %v8357_v51, %s10550_s22  ;;  %7189 = vmatprep.subr.msk.mxu0 %vm8058_vm13, %v10480_v47 }
 0x63b   : > { %7190 = vmatpush3.msk.msra.mxu0 %vm8058_vm13, %v10480_v47 }
 0x63c   : > { %7191 = vmatprep.subr.msk.mxu0 %vm8076_vm14, %v10480_v47 }
 0x63d   : > { %7192 = vmatpush3.msk.msra.mxu0 %vm8076_vm14, %v10480_v47 }
 0x63e   : > { %1450 = vrot.lane.b32.xlu0 %v8369_v22, %s10550_s22  ;;  %7193 = vmatprep.subr.msk.mxu0 %vm8118_vm15, %v10480_v47 }
 0x63f   : > { %7194 = vmatpush3.msk.msra.mxu0 %vm8118_vm15, %v10480_v47 }
 0x640   : > { %7195 = vmatprep.subr.msk.mxu0 %vm8127_vm1, %v10480_v47 }
 0x641   : > { %7196 = vmatpush3.msk.msra.mxu0 %vm8127_vm1, %v10480_v47 }
 0x642   : > { %1454 = vrot.lane.b32.xlu0 %v8381_v33, %s10550_s22  ;;  %7209 = vmatprep.subr.msk.mxu0 %vm871_vm3, %v8345_v6 }
 0x646   : > { %1458 = vrot.lane.b32.xlu0 %v8393_v39, %s10550_s22 }
 0x687   : > { %v1413_v44 = vpop.permute.xlu1 %1412 }
 0x688   : > { %v1436_v45 = vmax.f32 %v8351_v14, %v1413_v44 }
 0x68a   : > { %7197 = vmatprep.mubr.msk.f32.mxu0 %vm1492_vm10, %v1436_v45 }
 0x68b   : > { %v1415_v46 = vpop.permute.xlu0 %1414 }
 0x68c   : > { %v1437_v48 = vmax.f32 %v8357_v51, %v1415_v46 }
 0x68e   : > { %7198 = vmatmul.mubr.msk.f32.vlgmr.msra.gmra.mxu0 %vm1492_vm10, %v1437_v48 }
 0x68f   : > { %v1417_v62 = vpop.permute.xlu1 %1416  ;;  %7210 = vmatpush3.msk.msra.mxu0 %vm871_vm3, %v8345_v6 }
 0x690   : > { %v1438_v63 = vmax.f32 %v8363_v19, %v1417_v62  ;;  %7211 = vmatprep.subr.msk.mxu0 %vm8016_vm11, %v10480_v47 }
 0x691   : > { %7212 = vmatpush3.msk.msra.mxu0 %vm8016_vm11, %v10480_v47 }
 0x692   : > { %7200 = vmatprep.mubr.msk.f32.mxu0 %vm1492_vm10, %v1438_v63  ;;  %7213 = vmatprep.subr.msk.mxu0 %vm8037_vm12, %v10480_v47 }
 0x693   : > { %v1419_v1 = vpop.permute.xlu0 %1418  ;;  %7214 = vmatpush3.msk.msra.mxu0 %vm8037_vm12, %v10480_v47 }
 0x694   : > { %v1439_v2 = vmax.f32 %v8369_v22, %v1419_v1  ;;  %7215 = vmatprep.subr.msk.mxu0 %vm8058_vm13, %v10480_v47 }
 0x695   : > { %7216 = vmatpush3.msk.msra.mxu0 %vm8058_vm13, %v10480_v47 }
 0x696   : > { %7201 = vmatmul.mubr.msk.f32.gmra.mxu0 %vm1492_vm10, %v1439_v2  ;;  %7217 = vmatprep.subr.msk.mxu0 %vm8076_vm14, %v10480_v47 }
 0x697   : > { %v1421_v53 = vpop.permute.xlu1 %1420  ;;  %7218 = vmatpush3.msk.msra.mxu0 %vm8076_vm14, %v10480_v47 }
 0x698   : > { %v1440_v55 = vmax.f32 %v8375_v28, %v1421_v53  ;;  %7219 = vmatprep.subr.msk.mxu0 %vm8118_vm15, %v10480_v47 }
 0x699   : > { %7220 = vmatpush3.msk.msra.mxu0 %vm8118_vm15, %v10480_v47 }
 0x69a   : > { %7203 = vmatprep.mubr.msk.f32.mxu0 %vm1492_vm10, %v1440_v55  ;;  %7221 = vmatprep.subr.msk.mxu0 %vm8127_vm1, %v10480_v47 }
 0x69b   : > { %v1423_v4 = vpop.permute.xlu0 %1422  ;;  %7222 = vmatpush3.msk.msra.mxu0 %vm8127_vm1, %v10480_v47 }
 0x69c   : > { %v1441_v5 = vmax.f32 %v8381_v33, %v1423_v4 }
 0x69e   : > { %7204 = vmatmul.mubr.msk.f32.gmra.mxu0 %vm1492_vm10, %v1441_v5 }
 0x69f   : > { %v1425_v7 = vpop.permute.xlu1 %1424 }
 0x6a0   : > { %v1442_v8 = vmax.f32 %v8387_v25, %v1425_v7 }
 0x6a2   : > { %7206 = vmatprep.mubr.msk.f32.mxu0 %vm1492_vm10, %v1442_v8 }
 0x6a3   : > { %v1449_v11 = vpop.permute.xlu1 %1448 }
 0x6a4   : > { %v1427_v0 = vpop.permute.xlu0 %1426  ;;  %vm1470_vm4 = vcmp.gt.f32.partialorder %v8363_v19, %v1449_v11 }
 0x6a5   : > { %v1443_v3 = vmax.f32 %v8393_v39, %v1427_v0  ;;  %v6085_v16 = vsel %vm1470_vm4, 1.0, %v10482_v43 }
 0x6a7   : > { %7207 = vmatmul.mubr.msk.f32.gmra.mxu0 %vm1492_vm10, %v1443_v3 }
 0x6a8   : > { %v1445_v10 = vpop.permute.xlu0 %1444 }
 0x6a9   : > { %vm1468_vm11 = vcmp.gt.f32.partialorder %v8351_v14, %v1445_v10 }
 0x6aa   : > { %v6083_v6 = vsel %vm1468_vm11, 1.0, %v10482_v43 }
 0x6ac   : > { %v1447_v12 = vpop.permute.xlu0 %1446 }
 0x6ad   : > { %vm1469_vm12 = vcmp.gt.f32.partialorder %v8357_v51, %v1447_v12  ;;  %v8521_v51 = vpop.permute.xlu1 %1452 }
 0x6ae   : > { %v6084_v9 = vsel %vm1469_vm12, 1.0, %v10482_v43  ;;  %vm1472_vm6 = vcmp.gt.f32.partialorder %v8375_v28, %v8521_v51 }
 0x6af   : > { %v7541_v13 = vpack.i.bf16 %v6084_v9, %v6083_v6 }
 0x6b0   : > { %v1451_v15 = vpop.permute.xlu0 %1450 }
 0x6b1   : > { %vm1471_vm7 = vcmp.gt.f32.partialorder %v8369_v22, %v1451_v15  ;;  %7542 = vrot.lane.b32.xlu1 %v7541_v13, %s10551_s20  ;;  %v8525_v20 = vpop.permute.xlu1 %1456 }
 0x6b2   : > { %v6086_v14 = vsel %vm1471_vm7, 1.0, %v10482_v43  ;;  %vm1474_vm11 = vcmp.gt.f32.partialorder %v8387_v25, %v8525_v20  ;;  %v2059_v25 = vld [vmem:[%s10450_s6] sm:$0xff] }
 0x6b3   : > { %v7546_v17 = vpack.i.bf16 %v6086_v14, %v6085_v16  ;;  %v6087_v14 = vsel %vm1472_vm6, 1.0, %v10482_v43 }
 0x6b4   : > { %v8523_v18 = vpop.permute.xlu0 %1454 }
 0x6b5   : > { %7547 = vrot.lane.b32.xlu0 %v7546_v17, %s10551_s20  ;;  %vm1473_vm9 = vcmp.gt.f32.partialorder %v8381_v33, %v8523_v18 }
 0x6b6   : > { %v6088_v16 = vsel %vm1473_vm9, 1.0, %v10482_v43 }
 0x6b7   : > { %v7551_v17 = vpack.i.bf16 %v6088_v16, %v6087_v14  ;;  %v2074_v16 = vld [vmem:[%s10450_s6 + $0x78] sm:$0xff] }
 0x6b8   : > { %v8527_v19 = vpop.permute.xlu0 %1458 }
 0x6f2   : > { %v8533_v35 = vpop.f32.mrf.mxu0 }
 0x6f3   : > { %10552 = vst [vmem:[#allocation15_spill] sm:$0xff] %v8533_v35 }
 0x6f4   : > { %v8535_v32 = vpop.f32.mrf.mxu0 }
 0x6f5   : > { %10553 = vst [vmem:[#allocation16_spill] sm:$0xff] %v8535_v32 }
 0x6f6   : > { %v8537_v34 = vpop.f32.mrf.mxu0 }
 0x6f7   : > { %10554 = vst [vmem:[#allocation17_spill] sm:$0xff] %v8537_v34 }
 0x6f8   : > { %v8539_v30 = vpop.f32.mrf.mxu0 }
 0x6f9   : > { %10555 = vst [vmem:[#allocation18_spill] sm:$0xff] %v8539_v30 }
 0x723   : > { %v7543_v21 = vpop.permute.xlu1 %7542 }
 0x724   : > { %v7545_v23 = vunpack.i.h.bf16 %v7543_v21  ;;  %v7544_v22 = vunpack.i.l.bf16 %v7543_v21  ;;  %v1996_v21 = vld [vmem:[#allocation2 + $0x8] sm:$0xff] }
 0x725   : > { %2219 = vmatprep.mubr.f32.mxu1 %v1996_v21 }
 0x726   : > { %7223 = vmatprep.mubr.msk.f32.mxu0 %vm1492_vm10, %v7544_v22 }
 0x727   : > { %v7548_v24 = vpop.permute.xlu0 %7547  ;;  %7224 = vmatmul.mubr.msk.f32.vlgmr.msra.gmra.mxu0 %vm1492_vm10, %v7545_v23  ;;  %v6089_v23 = vsel %vm1474_vm11, 1.0, %v10482_v43 }
 0x728   : > { %v7550_v29 = vunpack.i.h.bf16 %v7548_v24  ;;  %v7549_v31 = vunpack.i.l.bf16 %v7548_v24  ;;  %v2061_v24 = vld [vmem:[%s10450_s6 + $0x10] sm:$0xff] }
 0x72a   : > { %7226 = vmatprep.mubr.msk.f32.mxu0 %vm1492_vm10, %v7549_v31 }
 0x72b   : > { %7227 = vmatmul.mubr.msk.f32.gmra.mxu0 %vm1492_vm10, %v7550_v29  ;;  %v2062_v29 = vld [vmem:[%s10450_s6 + $0x18] sm:$0xff] }
 0x74e   : > { %v7199_v36 = vpop.f32.mrf.mxu0 }
 0x74f   : > { %1780 = vrot.lane.b32.xlu1 %v7199_v36, %s10556_s23 }
 0x750   : > { %v1586_v37 = vpop.f32.mrf.mxu0 }
 0x751   : > { %1778 = vrot.lane.b32.xlu0 %v1586_v37, %s10556_s23  ;;  %v2063_v37 = vld [vmem:[%s10450_s6 + $0x20] sm:$0xff] }
 0x756   : > { %v7202_v38 = vpop.f32.mrf.mxu0 }
 0x757   : > { %1784 = vrot.lane.b32.xlu1 %v7202_v38, %s10556_s23  ;;  %v2064_v38 = vld [vmem:[%s10450_s6 + $0x28] sm:$0xff] }
 0x758   : > { %v1596_v40 = vpop.f32.mrf.mxu0 }
 0x759   : > { %1782 = vrot.lane.b32.xlu0 %v1596_v40, %s10556_s23 }
 0x75e   : > { %v7205_v41 = vpop.f32.mrf.mxu0 }
 0x75f   : > { %1788 = vrot.lane.b32.xlu1 %v7205_v41, %s10556_s23 }
 0x760   : > { %v1606_v42 = vpop.f32.mrf.mxu0 }
 0x761   : > { %1786 = vrot.lane.b32.xlu0 %v1606_v42, %s10556_s23  ;;  %v2065_v42 = vld [vmem:[%s10450_s6 + $0x30] sm:$0xff] }
 0x767   : > { %v7208_v44 = vpop.f32.mrf.mxu0 }
 0x768   : > { %1792 = vrot.lane.b32.xlu1 %v7208_v44, %s10556_s23  ;;  %v2066_v44 = vld [vmem:[%s10450_s6 + $0x38] sm:$0xff] }
 0x769   : > { %v1616_v45 = vpop.f32.mrf.mxu0 }
 0x76c   : > { %1790 = vrot.lane.b32.xlu1 %v1616_v45, %s10556_s23  ;;  %s10677_s23 = sshll.u32 %s10679_s24, 3 }
 0x7c1   : > { %v1781_v46 = vpop.permute.xlu1 %1780 }
 0x7c2   : > { %v8550_v48 = vsel %vm577_vm0, 0.0, %v1781_v46 }
 0x7c3   : > { %v8554_v62 = vsel %vm1810_vm8, %v8550_v48, 0.0  ;;  %v1779_v63 = vpop.permute.xlu0 %1778 }
 0x7c4   : > { %1877 = vrot.lane.b32.xlu0 %v8554_v62, %s10557_s1  ;;  %1973 = vrot.lane.b32.xlu1 %v8554_v62, %s10558_s28  ;;  %v8561_v1 = vsel %vm577_vm0, 0.0, %v1779_v63  ;;  %v2068_v63 = vld [vmem:[%s10450_s6 + $0x48] sm:$0xff] }
 0x7c5   : > { %v8569_v53 = vsel %vm1810_vm8, %v8561_v1, 0.0 }
 0x7c8   : > { %1829 = vrot.lane.b32.xlu0 %v8554_v62, %s10551_s20  ;;  %1925 = vrot.lane.b32.xlu1 %v8554_v62, %s10546_s25 }
 0x7c9   : > { %v1785_v2 = vpop.permute.xlu1 %1784 }
 0x7ca   : > { %v8572_v55 = vsel %vm577_vm0, 0.0, %v1785_v2 }
 0x7cb   : > { %v1814_v4 = vsel %vm1810_vm8, %v8572_v55, 0.0  ;;  %v1783_v5 = vpop.permute.xlu0 %1782 }
 0x7cc   : > { %1875 = vrot.lane.b32.xlu0 %v8569_v53, %s10557_s1  ;;  %1971 = vrot.lane.b32.xlu1 %v8569_v53, %s10558_s28  ;;  %v8587_v7 = vsel %vm577_vm0, 0.0, %v1783_v5  ;;  %v2070_v5 = vld [vmem:[%s10450_s6 + $0x58] sm:$0xff] }
 0x7cd   : > { %v8593_v8 = vsel %vm1810_vm8, %v8587_v7, 0.0 }
 0x7d0   : > { %1827 = vrot.lane.b32.xlu0 %v8569_v53, %s10551_s20  ;;  %1977 = vrot.lane.b32.xlu1 %v1814_v4, %s10558_s28 }
 0x7d1   : > { %v1789_v0 = vpop.permute.xlu1 %1788 }
 0x7d2   : > { %v8599_v3 = vsel %vm577_vm0, 0.0, %v1789_v0 }
 0x7d3   : > { %v1816_v10 = vsel %vm1810_vm8, %v8599_v3, 0.0  ;;  %v1787_v11 = vpop.permute.xlu0 %1786 }
 0x7d4   : > { %1923 = vrot.lane.b32.xlu0 %v8569_v53, %s10546_s25  ;;  %1929 = vrot.lane.b32.xlu1 %v1814_v4, %s10546_s25  ;;  %v8613_v12 = vsel %vm577_vm0, 0.0, %v1787_v11  ;;  %v2072_v11 = vld [vmem:[%s10450_s6 + $0x68] sm:$0xff] }
 0x7d5   : > { %v1815_v6 = vsel %vm1810_vm8, %v8613_v12, 0.0 }
 0x7d8   : > { %1881 = vrot.lane.b32.xlu0 %v1814_v4, %s10557_s1  ;;  %1857 = vrot.lane.b32.xlu1 %v1814_v4, %s10545_s0 }
 0x7da   : > { %v1793_v9 = vpop.permute.xlu1 %1792 }
 0x7db   : > { %v8622_v13 = vsel %vm577_vm0, 0.0, %v1793_v9 }
 0x7dc   : > { %1833 = vrot.lane.b32.xlu0 %v1814_v4, %s10551_s20  ;;  %1975 = vrot.lane.b32.xlu1 %v8593_v8, %s10558_s28  ;;  %v1818_v15 = vsel %vm1810_vm8, %v8622_v13, 0.0 }
 0x7de   : > { %v1791_v33 = vpop.permute.xlu1 %1790 }
 0x7df   : > { %v8645_v18 = vsel %vm577_vm0, 0.0, %v1791_v33  ;;  %vm1475_vm0 = vcmp.gt.f32.partialorder %v8393_v39, %v8527_v19  ;;  %v2060_v39 = vld [vmem:[%s10450_s6 + $0x8] sm:$0xff] }
 0x7e0   : > { %1879 = vrot.lane.b32.xlu0 %v8593_v8, %s10557_s1  ;;  %1927 = vrot.lane.b32.xlu1 %v8593_v8, %s10546_s25  ;;  %v1817_v28 = vsel %vm1810_vm8, %v8645_v18, 0.0  ;;  %v6090_v51 = vsel %vm1475_vm0, 1.0, %v10482_v43 }
 0x7e1   : > { %v7556_v22 = vpack.i.bf16 %v6090_v51, %v6089_v23 }
 0x7e4   : > { %1831 = vrot.lane.b32.xlu0 %v8593_v8, %s10551_s20  ;;  %1981 = vrot.lane.b32.xlu1 %v1816_v10, %s10558_s28 }
 0x7e8   : > { %1885 = vrot.lane.b32.xlu0 %v1816_v10, %s10557_s1  ;;  %1933 = vrot.lane.b32.xlu1 %v1816_v10, %s10546_s25 }
 0x7ec   : > { %1837 = vrot.lane.b32.xlu0 %v1816_v10, %s10551_s20  ;;  %1957 = vrot.lane.b32.xlu1 %v1816_v10, %s10559_s30 }
 0x7f0   : > { %1861 = vrot.lane.b32.xlu0 %v1816_v10, %s10545_s0  ;;  %1979 = vrot.lane.b32.xlu1 %v1815_v6, %s10558_s28 }
 0x7f4   : > { %1909 = vrot.lane.b32.xlu0 %v1816_v10, %s10548_s27  ;;  %1931 = vrot.lane.b32.xlu1 %v1815_v6, %s10546_s25  ;;  %v2071_v10 = vld [vmem:[%s10450_s6 + $0x60] sm:$0xff] }
 0x7f8   : > { %1883 = vrot.lane.b32.xlu0 %v1815_v6, %s10557_s1  ;;  %1889 = vrot.lane.b32.xlu1 %v1818_v15, %s10557_s1 }
 0x7fc   : > { %1835 = vrot.lane.b32.xlu0 %v1815_v6, %s10551_s20  ;;  %1985 = vrot.lane.b32.xlu1 %v1818_v15, %s10558_s28 }
 0x800   : > { %1859 = vrot.lane.b32.xlu0 %v1815_v6, %s10545_s0  ;;  %1937 = vrot.lane.b32.xlu1 %v1818_v15, %s10546_s25 }
 0x804   : > { %1841 = vrot.lane.b32.xlu0 %v1818_v15, %s10551_s20  ;;  %1913 = vrot.lane.b32.xlu1 %v1818_v15, %s10548_s27 }
 0x808   : > { %1865 = vrot.lane.b32.xlu0 %v1818_v15, %s10545_s0  ;;  %7552 = vrot.lane.b32.xlu1 %v7551_v17, %s10551_s20 }
 0x80c   : > { %1961 = vrot.lane.b32.xlu0 %v1818_v15, %s10559_s30  ;;  %1855 = vrot.lane.b32.xlu1 %v8593_v8, %s10545_s0  ;;  %v2073_v15 = vld [vmem:[%s10450_s6 + $0x70] sm:$0xff] }
 0x810   : > { %1905 = vrot.lane.b32.xlu1 %v1814_v4, %s10548_s27  ;;  %1887 = vrot.lane.b32.xlu0 %v1817_v28, %s10557_s1 }
 0x814   : > { %1983 = vrot.lane.b32.xlu1 %v1817_v28, %s10558_s28  ;;  %1839 = vrot.lane.b32.xlu0 %v1817_v28, %s10551_s20 }
 0x818   : > { %1935 = vrot.lane.b32.xlu1 %v1817_v28, %s10546_s25  ;;  %1955 = vrot.lane.b32.xlu0 %v1815_v6, %s10559_s30 }
 0x81c   : > { %1951 = vrot.lane.b32.xlu1 %v8593_v8, %s10559_s30  ;;  %1907 = vrot.lane.b32.xlu0 %v1815_v6, %s10548_s27 }
 0x820   : > { %1863 = vrot.lane.b32.xlu1 %v1817_v28, %s10545_s0  ;;  %1953 = vrot.lane.b32.xlu0 %v1814_v4, %s10559_s30  ;;  %v2069_v4 = vld [vmem:[%s10450_s6 + $0x50] sm:$0xff] }
 0x824   : > { %1959 = vrot.lane.b32.xlu1 %v1817_v28, %s10559_s30  ;;  %1853 = vrot.lane.b32.xlu0 %v8554_v62, %s10545_s0 }
 0x828   : > { %1911 = vrot.lane.b32.xlu1 %v1817_v28, %s10548_s27  ;;  %7557 = vrot.lane.b32.xlu0 %v7556_v22, %s10551_s20 }
 0x82c   : > { %1903 = vrot.lane.b32.xlu1 %v8593_v8, %s10548_s27  ;;  %1851 = vrot.lane.b32.xlu0 %v8569_v53, %s10545_s0 }
 0x830   : > { %1949 = vrot.lane.b32.xlu1 %v8554_v62, %s10559_s30  ;;  %1901 = vrot.lane.b32.xlu0 %v8554_v62, %s10548_s27  ;;  %v2067_v62 = vld [vmem:[%s10450_s6 + $0x40] sm:$0xff] }
 0x834   : > { %1947 = vrot.lane.b32.xlu1 %v8569_v53, %s10559_s30  ;;  %1899 = vrot.lane.b32.xlu0 %v8569_v53, %s10548_s27 }
 0x836   : > { %v8692_v20 = vpop.permute.xlu0 %1877  ;;  %v8694_v19 = vpop.permute.xlu1 %1973 }
 0x838   : > { %2077 = vperm.xlu1 %7530, %v2059_v25   ;;  %2082 = vperm.xlu0 %7529, %v2060_v39  }
 0x83a   : > { %v8702_v31 = vpop.permute.xlu0 %1829  ;;  %v8704_v36 = vpop.permute.xlu1 %1925 }
 0x83c   : > { %2087 = vperm.xlu1 %7530, %v2061_v24   ;;  %2092 = vperm.xlu0 %7529, %v2062_v29  }
 0x83e   : > { %v8712_v40 = vpop.permute.xlu0 %1875  ;;  %v8714_v41 = vpop.permute.xlu1 %1971 }
 0x840   : > { %2097 = vperm.xlu1 %7530, %v2063_v37   ;;  %2102 = vperm.xlu0 %7529, %v2064_v38  }
 0x842   : > { %v8722_v45 = vpop.permute.xlu0 %1827  ;;  %v8724_v46 = vpop.permute.xlu1 %1977 }
 0x844   : > { %2107 = vperm.xlu1 %7530, %v2065_v42   ;;  %2112 = vperm.xlu0 %7529, %v2066_v44  }
 0x846   : > { %v8732_v2 = vpop.permute.xlu0 %1923  ;;  %v8734_v53 = vpop.permute.xlu1 %1929 }
 0x848   : > { %2117 = vperm.xlu1 %7530, %v2067_v62   ;;  %2122 = vperm.xlu0 %7529, %v2068_v63  }
 0x84a   : > { %v1882_v8 = vpop.permute.xlu0 %1881  ;;  %v8742_v0 = vpop.permute.xlu1 %1857 }
 0x84c   : > { %2127 = vperm.xlu1 %7530, %v2069_v4   ;;  %2132 = vperm.xlu0 %7529, %v2070_v5  }
 0x84e   : > { %v1834_v6 = vpop.permute.xlu0 %1833  ;;  %v8750_v9 = vpop.permute.xlu1 %1975 }
 0x850   : > { %2137 = vperm.xlu1 %7530, %v2071_v10   ;;  %2142 = vperm.xlu0 %7529, %v2072_v11  }
 0x852   : > { %v1880_v14 = vpop.permute.xlu0 %1879  ;;  %v8758_v17 = vpop.permute.xlu1 %1927 }
 0x854   : > { %2147 = vperm.xlu1 %7530, %v2073_v15   ;;  %2152 = vperm.xlu0 %7529, %v2074_v16  }
 0x856   : > { %v1832_v33 = vpop.permute.xlu0 %1831  ;;  %v1982_v28 = vpop.permute.xlu1 %1981 }
 0x85a   : > { %v1886_v51 = vpop.permute.xlu0 %1885  ;;  %v1934_v21 = vpop.permute.xlu1 %1933 }
 0x85e   : > { %v1838_v23 = vpop.permute.xlu0 %1837  ;;  %v8760_v22 = vpop.permute.xlu1 %1957 }
 0x862   : > { %v8762_v25 = vpop.permute.xlu0 %1861  ;;  %v1980_v39 = vpop.permute.xlu1 %1979 }
 0x866   : > { %v8764_v24 = vpop.permute.xlu0 %1909  ;;  %v1932_v29 = vpop.permute.xlu1 %1931 }
 0x86a   : > { %v1884_v37 = vpop.permute.xlu0 %1883  ;;  %v1890_v38 = vpop.permute.xlu1 %1889 }
 0x86b   : > { %6454 = vmatprep.subr.mxu1 %v1890_v38 }
 0x86e   : > { %v1836_v42 = vpop.permute.xlu0 %1835  ;;  %v1986_v44 = vpop.permute.xlu1 %1985 }
 0x86f   : > { %6534 = vmatprep.subr.mxu0 %v1986_v44 }
 0x872   : > { %v1860_v62 = vpop.permute.xlu0 %1859  ;;  %v1938_v63 = vpop.permute.xlu1 %1937 }
 0x873   : > { %6535 = vmatpush3.msra.mxu0 %v1938_v63 }
 0x876   : > { %v1842_v4 = vpop.permute.xlu0 %1841  ;;  %v1914_v5 = vpop.permute.xlu1 %1913 }
 0x877   : > { %6455 = vmatpush3.msra.mxu1 %v1842_v4 }
 0x87a   : > { %v1866_v10 = vpop.permute.xlu0 %1865  ;;  %v7553_v11 = vpop.permute.xlu1 %7552 }
 0x87b   : > { %v7555_v15 = vunpack.i.h.bf16 %v7553_v11  ;;  %v7554_v16 = vunpack.i.l.bf16 %v7553_v11 }
 0x87d   : > { %7229 = vmatprep.mubr.msk.f32.mxu0 %vm1492_vm10, %v7554_v16 }
 0x87e   : > { %v1962_v47 = vpop.permute.xlu0 %1961  ;;  %v8767_v43 = vpop.permute.xlu1 %1855  ;;  %7230 = vmatmul.mubr.msk.f32.gmra.mxu0 %vm1492_vm10, %v7555_v15 }
 0x882   : > { %v1888_v38 = vpop.permute.xlu0 %1887  ;;  %v8770_v34 = vpop.permute.xlu1 %1905 }
 0x883   : > { %6456 = vmatprep.subr.mxu1 %v1888_v38  ;;  %v2021_v38 = vld [vmem:[#allocation2 + $0xd0] sm:$0xff] }
 0x886   : > { %v1840_v44 = vpop.permute.xlu0 %1839  ;;  %v1984_v63 = vpop.permute.xlu1 %1983 }
 0x887   : > { %6457 = vmatpush3.msra.mxu1 %v1840_v44  ;;  %6536 = vmatprep.subr.mxu0 %v1984_v63  ;;  %v2028_v44 = vld [vmem:[#allocation2 + $0x108] sm:$0xff]  ;;  %v2026_v63 = vld [vmem:[#allocation2 + $0xf8] sm:$0xff] }
 0x888   : > { %6458 = vmatprep.subr.mxu1 %v1886_v51 }
 0x889   : > { %6459 = vmatpush3.msra.mxu1 %v1838_v23  ;;  %v2016_v23 = vld [vmem:[#allocation2 + $0xa8] sm:$0xff] }
 0x88a   : > { %v1956_v4 = vpop.permute.xlu0 %1955  ;;  %6460 = vmatprep.subr.mxu1 %v1884_v37  ;;  %v1936_v11 = vpop.permute.xlu1 %1935  ;;  %v2019_v37 = vld [vmem:[#allocation2 + $0xc0] sm:$0xff] }
 0x88b   : > { %6461 = vmatpush3.msra.mxu1 %v1836_v42  ;;  %6537 = vmatpush3.msra.mxu0 %v1936_v11  ;;  %v2017_v42 = vld [vmem:[#allocation2 + $0xb0] sm:$0xff] }
 0x88c   : > { %6462 = vmatprep.subr.mxu1 %v1882_v8  ;;  %6538 = vmatprep.subr.mxu0 %v1982_v28  ;;  %v2011_v28 = vld [vmem:[#allocation2 + $0x80] sm:$0xff]  ;;  %v2025_v11 = vld [vmem:[#allocation2 + $0xf0] sm:$0xff] }
 0x88d   : > { %6463 = vmatpush3.msra.mxu1 %v1834_v6  ;;  %6539 = vmatpush3.msra.mxu0 %v1934_v21  ;;  %v2006_v6 = vld [vmem:[#allocation2 + $0x58] sm:$0xff]  ;;  %v2009_v21 = vld [vmem:[#allocation2 + $0x70] sm:$0xff] }
 0x88e   : > { %v1908_v15 = vpop.permute.xlu0 %1907  ;;  %6464 = vmatprep.subr.mxu1 %v1880_v14  ;;  %6540 = vmatprep.subr.mxu0 %v1980_v39  ;;  %v1952_v16 = vpop.permute.xlu1 %1951  ;;  %v2005_v14 = vld [vmem:[#allocation2 + $0x50] sm:$0xff] }
 0x88f   : > { %6465 = vmatpush3.msra.mxu1 %v1832_v33  ;;  %6541 = vmatpush3.msra.mxu0 %v1932_v29  ;;  %v2010_v33 = vld [vmem:[#allocation2 + $0x78] sm:$0xff]  ;;  %v2013_v39 = vld [vmem:[#allocation2 + $0x90] sm:$0xff] }
 0x890   : > { %6466 = vmatprep.subr.mxu1 %v8692_v20  ;;  %6542 = vmatprep.subr.mxu0 %v8724_v46  ;;  %v1997_v46 = vld [vmem:[#allocation2 + $0x10] sm:$0xff]  ;;  %v2018_v29 = vld [vmem:[#allocation2 + $0xb8] sm:$0xff] }
 0x891   : > { %6467 = vmatpush3.msra.mxu1 %v8702_v31  ;;  %6543 = vmatpush3.msra.mxu0 %v8734_v53  ;;  %v2003_v53 = vld [vmem:[#allocation2 + $0x40] sm:$0xff] }
 0x892   : > { %v1954_v51 = vpop.permute.xlu0 %1953  ;;  %6468 = vmatprep.subr.mxu1 %v8712_v40  ;;  %6544 = vmatprep.subr.mxu0 %v8750_v9  ;;  %v1864_v8 = vpop.permute.xlu1 %1863  ;;  %v2007_v9 = vld [vmem:[#allocation2 + $0x60] sm:$0xff] }
 0x893   : > { %6469 = vmatpush3.msra.mxu1 %v8722_v45  ;;  %6545 = vmatpush3.msra.mxu0 %v8758_v17  ;;  %v2012_v17 = vld [vmem:[#allocation2 + $0x88] sm:$0xff] }
 0x894   : > { %6470 = vmatprep.subr.mxu1 %v1866_v10  ;;  %6546 = vmatprep.subr.mxu0 %v8694_v19  ;;  %v2023_v10 = vld [vmem:[#allocation2 + $0xe0] sm:$0xff] }
 0x895   : > { %6471 = vmatpush3.msk.msra.mxu1 %vm1810_vm8, %v8622_v13  ;;  %6547 = vmatpush3.msra.mxu0 %v8704_v36 }
 0x896   : > { %v1854_v20 = vpop.permute.xlu0 %1853  ;;  %6472 = vmatprep.subr.mxu1 %v1864_v8  ;;  %6548 = vmatprep.subr.mxu0 %v8714_v41  ;;  %v1960_v31 = vpop.permute.xlu1 %1959  ;;  %v1998_v41 = vld [vmem:[#allocation2 + $0x18] sm:$0xff]  ;;  %v2029_v8 = vld [vmem:[#allocation2 + $0x110] sm:$0xff] }
 0x897   : > { %6473 = vmatpush3.msk.msra.mxu1 %vm1810_vm8, %v8645_v18  ;;  %6549 = vmatpush3.msra.mxu0 %v8732_v2  ;;  %v1995_v18 = vld [vmem:[#allocation2] sm:$0xff]  ;;  %v2002_v2 = vld [vmem:[#allocation2 + $0x38] sm:$0xff] }
 0x898   : > { %6474 = vmatprep.subr.mxu1 %v8762_v25  ;;  %6550 = vmatprep.subr.mxu0 %v1962_v47  ;;  %v2015_v25 = vld [vmem:[#allocation2 + $0xa0] sm:$0xff] }
 0x899   : > { %6475 = vmatpush3.msk.msra.mxu1 %vm1810_vm8, %v8599_v3  ;;  %6551 = vmatpush3.msra.mxu0 %v1914_v5  ;;  %v2022_v5 = vld [vmem:[#allocation2 + $0xd8] sm:$0xff] }
 0x89a   : > { %v7558_v13 = vpop.permute.xlu0 %7557  ;;  %6476 = vmatprep.subr.mxu1 %v1860_v62  ;;  %6552 = vmatprep.subr.mxu0 %v1960_v31  ;;  %v1912_v19 = vpop.permute.xlu1 %1911  ;;  %v2024_v62 = vld [vmem:[#allocation2 + $0xe8] sm:$0xff]  ;;  %v2034_v31 = vld [vmem:[#allocation2 + $0x138] sm:$0xff] }
 0x89b   : > { %v7560_v36 = vunpack.i.h.bf16 %v7558_v13  ;;  %v7559_v40 = vunpack.i.l.bf16 %v7558_v13  ;;  %6477 = vmatpush3.msk.msra.mxu1 %vm1810_vm8, %v8613_v12  ;;  %6553 = vmatpush3.msra.mxu0 %v1912_v19  ;;  %v2035_v13 = vld [vmem:[#allocation2 + $0x140] sm:$0xff]  ;;  %v2033_v19 = vld [vmem:[#allocation2 + $0x130] sm:$0xff] }
 0x89c   : > { %6478 = vmatprep.subr.mxu1 %v8742_v0  ;;  %6554 = vmatprep.subr.mxu0 %v8760_v22  ;;  %v2008_v0 = vld [vmem:[#allocation2 + $0x68] sm:$0xff]  ;;  %v2014_v22 = vld [vmem:[#allocation2 + $0x98] sm:$0xff] }
 0x89d   : > { %7232 = vmatprep.mubr.msk.f32.mxu0 %vm1492_vm10, %v7559_v40  ;;  %6479 = vmatpush3.msk.msra.mxu1 %vm1810_vm8, %v8572_v55  ;;  %v2038_v40 = vld [vmem:[#allocation2 + $0x158] sm:$0xff] }
 0x89e   : > { %6555 = vmatpush3.msra.mxu0 %v8764_v24  ;;  %v1852_v47 = vpop.permute.xlu0 %1851  ;;  %6480 = vmatprep.subr.mxu1 %v8767_v43  ;;  %v1904_v3 = vpop.permute.xlu1 %1903  ;;  %v2000_v43 = vld [vmem:[#allocation2 + $0x28] sm:$0xff] }
 0x89f   : > { %6556 = vmatprep.subr.mxu0 %v1956_v4  ;;  %7233 = vmatmul.mubr.msk.f32.gmra.mxu0 %vm1492_vm10, %v7560_v36  ;;  %v2020_v24 = vld [vmem:[#allocation2 + $0xc8] sm:$0xff]  ;;  %v2027_v4 = vld [vmem:[#allocation2 + $0x100] sm:$0xff]  ;;  %vm2541_vm10 = vcmask 236544  }
 0x8a0   : > { %6481 = vmatpush3.msk.msra.mxu1 %vm1810_vm8, %v8587_v7  ;;  %6557 = vmatpush3.msra.mxu0 %v1908_v15  ;;  %v2032_v15 = vld [vmem:[#allocation2 + $0x128] sm:$0xff] }
 0x8a1   : > { %6482 = vmatprep.subr.mxu1 %v1854_v20  ;;  %6558 = vmatprep.subr.mxu0 %v1954_v51  ;;  %v2031_v51 = vld [vmem:[#allocation2 + $0x120] sm:$0xff]  ;;  %v2036_v20 = vld [vmem:[#allocation2 + $0x148] sm:$0xff] }
 0x8a2   : > { %6483 = vmatpush3.msk.msra.mxu1 %vm1810_vm8, %v8550_v48  ;;  %6559 = vmatpush3.msra.mxu0 %v8770_v34  ;;  %v1902_v55 = vpop.permute.xlu0 %1901  ;;  %v1950_v12 = vpop.permute.xlu1 %1949  ;;  %v1999_v48 = vld [vmem:[#allocation2 + $0x20] sm:$0xff]  ;;  %v2004_v34 = vld [vmem:[#allocation2 + $0x48] sm:$0xff] }
 0x8a3   : > { %6484 = vmatprep.subr.mxu1 %v1852_v47  ;;  %6560 = vmatprep.subr.mxu0 %v1952_v16  ;;  %v2030_v16 = vld [vmem:[#allocation2 + $0x118] sm:$0xff]  ;;  %v2040_v36 = vld [vmem:[#allocation2 + $0x168] sm:$0xff]  ;;  %v2039_v47 = vld [vmem:[#allocation2 + $0x160] sm:$0xff] }
 0x8a4   : > { %6485 = vmatpush3.msk.msra.mxu1 %vm1810_vm8, %v8561_v1  ;;  %6561 = vmatpush3.msra.mxu0 %v1904_v3  ;;  %v2001_v1 = vld [vmem:[#allocation2 + $0x30] sm:$0xff] }
 0x8a5   : > { %2220 = vmatmul.mubr.f32.vlgmr.msra.gmra.mxu1 %v1995_v18  ;;  %6562 = vmatprep.subr.mxu0 %v1950_v12  ;;  %v2037_v3 = vld [vmem:[#allocation2 + $0x150] sm:$0xff]  ;;  %v2042_v12 = vld [vmem:[#allocation2 + $0x178] sm:$0xff]  ;;  %v2043_v18 = vld [vmem:[#allocation2 + $0x180] sm:$0xff] }
 0x8a6   : > { %6563 = vmatpush3.msra.mxu0 %v1902_v55  ;;  %v1900_v7 = vpop.permute.xlu0 %1899  ;;  %v1948_v45 = vpop.permute.xlu1 %1947  ;;  %2224 = vmatprep.mubr.f32.mxu1 %v2000_v43  ;;  %v2044_v55 = vld [vmem:[#allocation2 + $0x188] sm:$0xff]  ;;  %v2041_v43 = vld [vmem:[#allocation2 + $0x170] sm:$0xff] }
 0x8a7   : > { %6564 = vmatprep.subr.mxu0 %v1948_v45  ;;  %2364 = vmatprep.mubr.f32.mxu0 %v1998_v41  ;;  %v2048_v41 = vld [vmem:[#allocation2 + $0x1a8] sm:$0xff]  ;;  %v2047_v45 = vld [vmem:[#allocation2 + $0x1a0] sm:$0xff] }
 0x8a8   : > { %6565 = vmatpush3.msra.mxu0 %v1900_v7  ;;  %v2046_v7 = vld [vmem:[#allocation2 + $0x198] sm:$0xff] }
 0x8a9   : > { %2225 = vmatmul.mubr.f32.gmra.mxu1 %v1999_v48  ;;  %2365 = vmatmul.mubr.f32.vlgmr.msra.gmra.mxu0 %v1997_v46  ;;  %v2045_v48 = vld [vmem:[#allocation2 + $0x190] sm:$0xff]  ;;  %v2052_v46 = vld [vmem:[#allocation2 + $0x1c8] sm:$0xff] }
 0x8aa   : > { %2229 = vmatprep.mubr.f32.mxu1 %v2004_v34  ;;  %2369 = vmatprep.mubr.f32.mxu0 %v2002_v2  ;;  %v2050_v34 = vld [vmem:[#allocation2 + $0x1b8] sm:$0xff]  ;;  %v2051_v2 = vld [vmem:[#allocation2 + $0x1c0] sm:$0xff] }
 0x8ad   : > { %2230 = vmatmul.mubr.f32.gmra.mxu1 %v2003_v53  ;;  %2370 = vmatmul.mubr.f32.gmra.mxu0 %v2001_v1  ;;  %v2049_v53 = vld [vmem:[#allocation2 + $0x1b0] sm:$0xff]  ;;  %v2056_v1 = vld [vmem:[#allocation2 + $0x1e8] sm:$0xff] }
 0x8ae   : > { %2234 = vmatprep.mubr.f32.mxu1 %v2008_v0  ;;  %2374 = vmatprep.mubr.f32.mxu0 %v2006_v6  ;;  %v2054_v0 = vld [vmem:[#allocation2 + $0x1d8] sm:$0xff]  ;;  %v2055_v6 = vld [vmem:[#allocation2 + $0x1e0] sm:$0xff] }
 0x8b1   : > { %2235 = vmatmul.mubr.f32.gmra.mxu1 %v2007_v9  ;;  %2375 = vmatmul.mubr.f32.gmra.mxu0 %v2005_v14  ;;  %v2053_v9 = vld [vmem:[#allocation2 + $0x1d0] sm:$0xff]  ;;  %v2058_v14 = vld [vmem:[#allocation2 + $0x1f8] sm:$0xff] }
 0x8b2   : > { %2239 = vmatprep.mubr.f32.mxu1 %v2012_v17  ;;  %2379 = vmatprep.mubr.f32.mxu0 %v2010_v33  ;;  %v2057_v17 = vld [vmem:[#allocation2 + $0x1f0] sm:$0xff]  ;;  %v8808_v33 = vpop.f32.mrf.mxu0 }
 0x8b3   : > { %10560 = vst [vmem:[#allocation19_spill] sm:$0xff] %v8808_v33 }
 0x8b5   : > { %2240 = vmatmul.mubr.f32.gmra.mxu1 %v2011_v28  ;;  %2380 = vmatmul.mubr.f32.gmra.mxu0 %v2009_v21  ;;  %v8810_v28 = vpop.f32.mrf.mxu0 }
 0x8b6   : > { %2244 = vmatprep.mubr.f32.mxu1 %v2016_v23  ;;  %2384 = vmatprep.mubr.f32.mxu0 %v2014_v22  ;;  %10561 = vst [vmem:[#allocation20_spill] sm:$0xff] %v8810_v28 }
 0x8b7   : > { %v8812_v21 = vpop.f32.mrf.mxu0 }
 0x8b8   : > { %10562 = vst [vmem:[#allocation21_spill] sm:$0xff] %v8812_v21 }
 0x8b9   : > { %2245 = vmatmul.mubr.f32.gmra.mxu1 %v2015_v25  ;;  %2385 = vmatmul.mubr.f32.gmra.mxu0 %v2013_v39  ;;  %v8814_v23 = vpop.f32.mrf.mxu0 }
 0x8ba   : > { %2249 = vmatprep.mubr.f32.mxu1 %v2020_v24  ;;  %2389 = vmatprep.mubr.f32.mxu0 %v2018_v29  ;;  %10563 = vst [vmem:[#allocation22_spill] sm:$0xff] %v8814_v23 }
 0x8bd   : > { %2250 = vmatmul.mubr.f32.gmra.mxu1 %v2019_v37  ;;  %2390 = vmatmul.mubr.f32.gmra.mxu0 %v2017_v42 }
 0x8be   : > { %2254 = vmatprep.mubr.f32.mxu1 %v2024_v62  ;;  %2394 = vmatprep.mubr.f32.mxu0 %v2022_v5 }
 0x8c1   : > { %2255 = vmatmul.mubr.f32.gmra.mxu1 %v2023_v10  ;;  %2395 = vmatmul.mubr.f32.gmra.mxu0 %v2021_v38  ;;  %v2078_v10 = vpop.permute.xlu1 %2077 }
 0x8c2   : > { %2259 = vmatprep.mubr.f32.mxu1 %v2028_v44  ;;  %2399 = vmatprep.mubr.f32.mxu0 %v2026_v63 }
 0x8c5   : > { %2260 = vmatmul.mubr.f32.gmra.mxu1 %v2027_v4  ;;  %2400 = vmatmul.mubr.f32.gmra.mxu0 %v2025_v11 }
 0x8c6   : > { %2264 = vmatprep.mubr.f32.mxu1 %v2032_v15  ;;  %2404 = vmatprep.mubr.f32.mxu0 %v2030_v16 }
 0x8c9   : > { %2265 = vmatmul.mubr.f32.gmra.mxu1 %v2031_v51  ;;  %2405 = vmatmul.mubr.f32.gmra.mxu0 %v2029_v8  ;;  %v2083_v51 = vpop.permute.xlu0 %2082 }
 0x8ca   : > { %2269 = vmatprep.mubr.f32.mxu1 %v2036_v20  ;;  %2409 = vmatprep.mubr.f32.mxu0 %v2034_v31 }
 0x8cd   : > { %2270 = vmatmul.mubr.f32.gmra.mxu1 %v2035_v13  ;;  %2410 = vmatmul.mubr.f32.gmra.mxu0 %v2033_v19 }
 0x8ce   : > { %2274 = vmatprep.mubr.f32.mxu1 %v2040_v36  ;;  %2414 = vmatprep.mubr.f32.mxu0 %v2038_v40 }
 0x8d1   : > { %2275 = vmatmul.mubr.f32.gmra.mxu1 %v2039_v47  ;;  %2415 = vmatmul.mubr.f32.gmra.mxu0 %v2037_v3 }
 0x8d2   : > { %2279 = vmatprep.mubr.f32.mxu1 %v2044_v55  ;;  %2419 = vmatprep.mubr.f32.mxu0 %v2042_v12  ;;  %v2088_v55 = vpop.permute.xlu1 %2087 }
 0x8d5   : > { %2280 = vmatmul.mubr.f32.gmra.mxu1 %v2043_v18  ;;  %2420 = vmatmul.mubr.f32.gmra.mxu0 %v2041_v43 }
 0x8d6   : > { %2284 = vmatprep.mubr.f32.mxu1 %v2048_v41  ;;  %2424 = vmatprep.mubr.f32.mxu0 %v2046_v7 }
 0x8d9   : > { %2285 = vmatmul.mubr.f32.gmra.mxu1 %v2047_v45  ;;  %2425 = vmatmul.mubr.f32.gmra.mxu0 %v2045_v48 }
 0x8da   : > { %2289 = vmatprep.mubr.f32.mxu1 %v2052_v46  ;;  %2429 = vmatprep.mubr.f32.mxu0 %v2050_v34 }
 0x8dd   : > { %2290 = vmatmul.mubr.f32.gmra.mxu1 %v2051_v2  ;;  %2430 = vmatmul.mubr.f32.gmra.mxu0 %v2049_v53  ;;  %v2093_v2 = vpop.permute.xlu0 %2092 }
 0x8de   : > { %2294 = vmatprep.mubr.f32.mxu1 %v2056_v1  ;;  %2434 = vmatprep.mubr.f32.mxu0 %v2054_v0 }
 0x8e1   : > { %2295 = vmatmul.mubr.f32.gmra.mxu1 %v2055_v6  ;;  %2435 = vmatmul.mubr.f32.gmra.mxu0 %v2053_v9 }
 0x8e2   : > { %2439 = vmatprep.mubr.f32.mxu0 %v2058_v14 }
 0x8e5   : > { %2440 = vmatmul.mubr.f32.gmra.mxu0 %v2057_v17 }
 0x93e   : > { %v8816_v22 = vpop.f32.mrf.mxu0 }
 0x93f   : > { %10564 = vst [vmem:[#allocation23_spill] sm:$0xff] %v8816_v22 }
 0x940   : > { %v8818_v25 = vpop.f32.mrf.mxu0 }
 0x941   : > { %10565 = vst [vmem:[#allocation24_spill] sm:$0xff] %v8818_v25 }
 0x95f   : > { %v8820_v39 = vpop.f32.mrf.mxu0 }
 0x960   : > { %10566 = vst [vmem:[#allocation25_spill] sm:$0xff] %v8820_v39 }
 0x961   : > { %v8822_v29 = vpop.f32.mrf.mxu0 }
 0x962   : > { %10567 = vst [vmem:[#allocation26_spill] sm:$0xff] %v8822_v29 }
 0x965   : > { %v6486_v24 = vpop.f32.mrf.mxu1 }
 0x967   : > { %v6487_v37 = vpop.f32.mrf.mxu1 }
 0x968   : > { %v6488_v42 = vadd.f32 %v6487_v37, %v6486_v24 }
 0x969   : > { %v6489_v62 = vpop.f32.mrf.mxu1  ;;  %v6566_v5 = vpop.f32.mrf.mxu0 }
 0x96a   : > { %v2222_v63 = vadd.f32 %v6488_v42, %v2078_v10  ;;  %v2098_v42 = vpop.permute.xlu1 %2097 }
 0x96b   : > { %v6490_v38 = vpop.f32.mrf.mxu1  ;;  %v6567_v44 = vpop.f32.mrf.mxu0 }
 0x96c   : > { %v6491_v4 = vadd.f32 %v6490_v38, %v6489_v62  ;;  %v6568_v11 = vadd.f32 %v6567_v44, %v6566_v5 }
 0x96d   : > { %v6492_v15 = vpop.f32.mrf.mxu1  ;;  %v6569_v16 = vpop.f32.mrf.mxu0 }
 0x96e   : > { %v2367_v8 = vadd.f32 %v6568_v11, %v2222_v63  ;;  %v2227_v13 = vadd.f32 %v6491_v4, %v2083_v51 }
 0x96f   : > { %v6493_v20 = vpop.f32.mrf.mxu1  ;;  %v6570_v31 = vpop.f32.mrf.mxu0 }
 0x970   : > { %v2445_v19 = vmax.f32 %v2367_v8, 0.0  ;;  %v6494_v36 = vadd.f32 %v6493_v20, %v6492_v15  ;;  %v6571_v40 = vadd.f32 %v6570_v31, %v6569_v16  ;;  %v2103_v16 = vpop.permute.xlu0 %2102 }
 0x971   : > { %v6495_v47 = vpop.f32.mrf.mxu1  ;;  %v6572_v3 = vpop.f32.mrf.mxu0 }
 0x972   : > { %v2372_v12 = vadd.f32 %v6571_v40, %v2227_v13  ;;  %2477 = vrot.lane.b32.xlu1 %v2445_v19, %s10550_s22  ;;  %v2232_v41 = vadd.f32 %v6494_v36, %v2088_v55 }
 0x973   : > { %v6496_v18 = vpop.f32.mrf.mxu1  ;;  %v6573_v43 = vpop.f32.mrf.mxu0 }
 0x974   : > { %v2446_v7 = vmax.f32 %v2372_v12, 0.0  ;;  %v6497_v45 = vadd.f32 %v6496_v18, %v6495_v47  ;;  %v6574_v48 = vadd.f32 %v6573_v43, %v6572_v3  ;;  %v2108_v3 = vpop.permute.xlu1 %2107 }
 0x975   : > { %v6498_v46 = vpop.f32.mrf.mxu1  ;;  %v6575_v34 = vpop.f32.mrf.mxu0 }
 0x976   : > { %v2377_v53 = vadd.f32 %v6574_v48, %v2232_v41  ;;  %2479 = vrot.lane.b32.xlu0 %v2446_v7, %s10550_s22  ;;  %v2237_v6 = vadd.f32 %v6497_v45, %v2093_v2 }
 0x977   : > { %v6499_v1 = vpop.f32.mrf.mxu1  ;;  %v6576_v0 = vpop.f32.mrf.mxu0 }
 0x978   : > { %v2447_v9 = vmax.f32 %v2377_v53, 0.0  ;;  %v6500_v14 = vadd.f32 %v6499_v1, %v6498_v46  ;;  %v6577_v17 = vadd.f32 %v6576_v0, %v6575_v34  ;;  %v2113_v34 = vpop.permute.xlu0 %2112 }
 0x979   : > { %v6501_v24 = vpop.f32.mrf.mxu1  ;;  %v6578_v37 = vpop.f32.mrf.mxu0 }
 0x97a   : > { %v2382_v62 = vadd.f32 %v6577_v17, %v2237_v6  ;;  %2481 = vrot.lane.b32.xlu1 %v2447_v9, %s10550_s22  ;;  %v2242_v38 = vadd.f32 %v6500_v14, %v2098_v42 }
 0x97b   : > { %v6502_v5 = vpop.f32.mrf.mxu1  ;;  %v6579_v10 = vpop.f32.mrf.mxu0 }
 0x97c   : > { %v2448_v44 = vmax.f32 %v2382_v62, 0.0  ;;  %v6503_v63 = vadd.f32 %v6502_v5, %v6501_v24  ;;  %v6580_v4 = vadd.f32 %v6579_v10, %v6578_v37  ;;  %v2118_v37 = vpop.permute.xlu1 %2117 }
 0x97d   : > { %v6504_v11 = vpop.f32.mrf.mxu1  ;;  %v6581_v15 = vpop.f32.mrf.mxu0 }
 0x97e   : > { %v2387_v51 = vadd.f32 %v6580_v4, %v2242_v38  ;;  %2483 = vrot.lane.b32.xlu0 %v2448_v44, %s10550_s22  ;;  %v2247_v31 = vadd.f32 %v6503_v63, %v2103_v16 }
 0x97f   : > { %v6505_v8 = vpop.f32.mrf.mxu1  ;;  %v6582_v20 = vpop.f32.mrf.mxu0 }
 0x980   : > { %v2449_v13 = vmax.f32 %v2387_v51, 0.0  ;;  %v6506_v19 = vadd.f32 %v6505_v8, %v6504_v11  ;;  %v6583_v36 = vadd.f32 %v6582_v20, %v6581_v15  ;;  %v2123_v15 = vpop.permute.xlu0 %2122 }
 0x981   : > { %v6507_v40 = vpop.f32.mrf.mxu1  ;;  %v6584_v47 = vpop.f32.mrf.mxu0 }
 0x982   : > { %v2392_v55 = vadd.f32 %v6583_v36, %v2247_v31  ;;  %2485 = vrot.lane.b32.xlu1 %v2449_v13, %s10550_s22  ;;  %v2252_v43 = vadd.f32 %v6506_v19, %v2108_v3 }
 0x983   : > { %v6508_v12 = vpop.f32.mrf.mxu1  ;;  %v6585_v18 = vpop.f32.mrf.mxu0 }
 0x984   : > { %v2450_v41 = vmax.f32 %v2392_v55, 0.0  ;;  %v6509_v7 = vadd.f32 %v6508_v12, %v6507_v40  ;;  %v6586_v45 = vadd.f32 %v6585_v18, %v6584_v47  ;;  %v2128_v47 = vpop.permute.xlu1 %2127 }
 0x985   : > { %v6510_v48 = vpop.f32.mrf.mxu1  ;;  %v6587_v46 = vpop.f32.mrf.mxu0 }
 0x986   : > { %v2397_v2 = vadd.f32 %v6586_v45, %v2252_v43  ;;  %2487 = vrot.lane.b32.xlu0 %v2450_v41, %s10550_s22  ;;  %v2257_v0 = vadd.f32 %v6509_v7, %v2113_v34 }
 0x987   : > { %v6511_v53 = vpop.f32.mrf.mxu1  ;;  %v6588_v1 = vpop.f32.mrf.mxu0 }
 0x988   : > { %v2451_v6 = vmax.f32 %v2397_v2, 0.0  ;;  %v6512_v9 = vadd.f32 %v6511_v53, %v6510_v48  ;;  %v6589_v14 = vadd.f32 %v6588_v1, %v6587_v46  ;;  %v2133_v46 = vpop.permute.xlu0 %2132 }
 0x989   : > { %v6513_v17 = vpop.f32.mrf.mxu1  ;;  %v6590_v24 = vpop.f32.mrf.mxu0 }
 0x98a   : > { %v2402_v42 = vadd.f32 %v6589_v14, %v2257_v0  ;;  %2489 = vrot.lane.b32.xlu1 %v2451_v6, %s10550_s22  ;;  %v2262_v10 = vadd.f32 %v6512_v9, %v2118_v37 }
 0x98b   : > { %v6514_v62 = vpop.f32.mrf.mxu1  ;;  %v6591_v5 = vpop.f32.mrf.mxu0 }
 0x98c   : > { %v2452_v38 = vmax.f32 %v2402_v42, 0.0  ;;  %v6515_v44 = vadd.f32 %v6514_v62, %v6513_v17  ;;  %v6592_v63 = vadd.f32 %v6591_v5, %v6590_v24  ;;  %v2138_v24 = vpop.permute.xlu1 %2137 }
 0x98d   : > { %v6516_v4 = vpop.f32.mrf.mxu1  ;;  %v6593_v11 = vpop.f32.mrf.mxu0 }
 0x98e   : > { %v2407_v16 = vadd.f32 %v6592_v63, %v2262_v10  ;;  %2491 = vrot.lane.b32.xlu0 %v2452_v38, %s10550_s22  ;;  %v2267_v20 = vadd.f32 %v6515_v44, %v2123_v15 }
 0x98f   : > { %v6517_v51 = vpop.f32.mrf.mxu1  ;;  %v6594_v8 = vpop.f32.mrf.mxu0 }
 0x990   : > { %v2453_v31 = vmax.f32 %v2407_v16, 0.0  ;;  %v6518_v13 = vadd.f32 %v6517_v51, %v6516_v4  ;;  %v6595_v19 = vadd.f32 %v6594_v8, %v6593_v11  ;;  %v2143_v11 = vpop.permute.xlu0 %2142 }
 0x991   : > { %v6519_v36 = vpop.f32.mrf.mxu1  ;;  %v6596_v40 = vpop.f32.mrf.mxu0 }
 0x992   : > { %v2412_v3 = vadd.f32 %v6595_v19, %v2267_v20  ;;  %2493 = vrot.lane.b32.xlu1 %v2453_v31, %s10550_s22  ;;  %v2272_v18 = vadd.f32 %v6518_v13, %v2128_v47 }
 0x993   : > { %v6520_v55 = vpop.f32.mrf.mxu1  ;;  %v6597_v12 = vpop.f32.mrf.mxu0 }
 0x994   : > { %v2454_v43 = vmax.f32 %v2412_v3, 0.0  ;;  %v6521_v41 = vadd.f32 %v6520_v55, %v6519_v36  ;;  %v6598_v7 = vadd.f32 %v6597_v12, %v6596_v40  ;;  %v2148_v40 = vpop.permute.xlu1 %2147 }
 0x995   : > { %v6522_v45 = vpop.f32.mrf.mxu1  ;;  %v6599_v48 = vpop.f32.mrf.mxu0 }
 0x996   : > { %v2417_v34 = vadd.f32 %v6598_v7, %v2272_v18  ;;  %2495 = vrot.lane.b32.xlu0 %v2454_v43, %s10550_s22  ;;  %v2277_v1 = vadd.f32 %v6521_v41, %v2133_v46 }
 0x997   : > { %v6523_v2 = vpop.f32.mrf.mxu1  ;;  %v6600_v53 = vpop.f32.mrf.mxu0 }
 0x998   : > { %v2455_v0 = vmax.f32 %v2417_v34, 0.0  ;;  %v6524_v6 = vadd.f32 %v6523_v2, %v6522_v45  ;;  %v6601_v9 = vadd.f32 %v6600_v53, %v6599_v48  ;;  %v2153_v48 = vpop.permute.xlu0 %2152 }
 0x999   : > { %v6525_v14 = vpop.f32.mrf.mxu1  ;;  %v6602_v17 = vpop.f32.mrf.mxu0 }
 0x99a   : > { %v2422_v37 = vadd.f32 %v6601_v9, %v2277_v1  ;;  %2497 = vrot.lane.b32.xlu1 %v2455_v0, %s10550_s22  ;;  %v2282_v5 = vadd.f32 %v6524_v6, %v2138_v24 }
 0x99b   : > { %v6526_v42 = vpop.f32.mrf.mxu1  ;;  %v6603_v62 = vpop.f32.mrf.mxu0 }
 0x99c   : > { %v2456_v10 = vmax.f32 %v2422_v37, 0.0  ;;  %v6527_v38 = vadd.f32 %v6526_v42, %v6525_v14  ;;  %v6604_v44 = vadd.f32 %v6603_v62, %v6602_v17 }
 0x99d   : > { %v6528_v63 = vpop.f32.mrf.mxu1  ;;  %v6605_v4 = vpop.f32.mrf.mxu0 }
 0x99e   : > { %v2427_v15 = vadd.f32 %v6604_v44, %v2282_v5  ;;  %2499 = vrot.lane.b32.xlu0 %v2456_v10, %s10550_s22  ;;  %v2287_v8 = vadd.f32 %v6527_v38, %v2143_v11 }
 0x99f   : > { %v6529_v16 = vpop.f32.mrf.mxu1  ;;  %v6606_v51 = vpop.f32.mrf.mxu0 }
 0x9a0   : > { %v2457_v20 = vmax.f32 %v2427_v15, 0.0  ;;  %v6530_v31 = vadd.f32 %v6529_v16, %v6528_v63  ;;  %v6607_v13 = vadd.f32 %v6606_v51, %v6605_v4 }
 0x9a1   : > { %v6531_v19 = vpop.f32.mrf.mxu1  ;;  %v6608_v36 = vpop.f32.mrf.mxu0 }
 0x9a2   : > { %v2432_v47 = vadd.f32 %v6607_v13, %v2287_v8  ;;  %2501 = vrot.lane.b32.xlu1 %v2457_v20, %s10550_s22  ;;  %v2292_v12 = vadd.f32 %v6530_v31, %v2148_v40 }
 0x9a3   : > { %v6532_v3 = vpop.f32.mrf.mxu1  ;;  %v6609_v55 = vpop.f32.mrf.mxu0 }
 0x9a4   : > { %v2458_v18 = vmax.f32 %v2432_v47, 0.0  ;;  %v6533_v43 = vadd.f32 %v6532_v3, %v6531_v19  ;;  %v6610_v41 = vadd.f32 %v6609_v55, %v6608_v36 }
 0x9a5   : > { %v6611_v7 = vpop.f32.mrf.mxu0 }
 0x9a6   : > { %v2437_v45 = vadd.f32 %v6610_v41, %v2292_v12  ;;  %2503 = vrot.lane.b32.xlu0 %v2458_v18, %s10550_s22  ;;  %v2297_v34 = vadd.f32 %v6533_v43, %v2153_v48 }
 0x9a7   : > { %v6612_v46 = vpop.f32.mrf.mxu0 }
 0x9a8   : > { %v2459_v2 = vmax.f32 %v2437_v45, 0.0  ;;  %v6613_v53 = vadd.f32 %v6612_v46, %v6611_v7 }
 0x9aa   : > { %v2442_v1 = vadd.f32 %v6613_v53, %v2297_v34  ;;  %2505 = vrot.lane.b32.xlu1 %v2459_v2, %s10550_s22  ;;  %v10568_v34 = vmov 0.0  }
 0x9ab   : > { %v8915_v2 = vsel %vm8058_vm13, 1.0, %v10568_v34 }
 0x9ac   : > { %v2460_v0 = vmax.f32 %v2442_v1, 0.0  ;;  %7235 = vmatprep.subr.msk.mxu1 %vm871_vm3, %v8915_v2  ;;  %7267 = vmatprep.subr.msk.mxu0 %vm871_vm3, %v8915_v2 }
 0x9ad   : > { %7236 = vmatpush3.msk.msra.mxu1 %vm871_vm3, %v8915_v2  ;;  %7268 = vmatpush3.msk.msra.mxu0 %vm871_vm3, %v8915_v2 }
 0x9ae   : > { %2507 = vrot.lane.b32.xlu0 %v2460_v0, %s10550_s22  ;;  %7237 = vmatprep.subr.msk.mxu1 %vm8076_vm14, %v10569_v57 }
 0x9af   : > { %7269 = vmatprep.subr.msk.mxu0 %vm8076_vm14, %v10569_v57  ;;  %7238 = vmatpush3.msk.msra.mxu1 %vm8076_vm14, %v10569_v57 }
 0x9b0   : > { %7239 = vmatprep.subr.msk.mxu1 %vm8118_vm15, %v10569_v57  ;;  %7270 = vmatpush3.msk.msra.mxu0 %vm8076_vm14, %v10569_v57 }
 0x9b1   : > { %7240 = vmatpush3.msk.msra.mxu1 %vm8118_vm15, %v10569_v57  ;;  %7271 = vmatprep.subr.msk.mxu0 %vm8118_vm15, %v10569_v57 }
 0x9b2   : > { %7241 = vmatprep.subr.msk.mxu1 %vm8127_vm1, %v10569_v57  ;;  %7272 = vmatpush3.msk.msra.mxu0 %vm8118_vm15, %v10569_v57 }
 0x9b3   : > { %7242 = vmatpush3.msk.msra.mxu1 %vm8127_vm1, %v10569_v57  ;;  %7273 = vmatprep.subr.msk.mxu0 %vm8127_vm1, %v10569_v57 }
 0x9b4   : > { %7464 = vmatprep.subr.msk.mxu1 %vm871_vm3, %v8915_v2  ;;  %7274 = vmatpush3.msk.msra.mxu0 %vm8127_vm1, %v10569_v57 }
 0x9e4   : > { %v2478_v6 = vpop.permute.xlu1 %2477 }
 0x9e5   : > { %v2525_v9 = vsel %vm749_vm2, -1.0, %v2478_v6 }
 0x9e6   : > { %v8842_v14 = vsel %vm2541_vm10, %v2525_v9, -1.0 }
 0x9e7   : > { %2638 = vrot.lane.b32.xlu1 %v8842_v14, %s10550_s22 }
 0x9e8   : > { %v2480_v17 = vpop.permute.xlu0 %2479 }
 0x9e9   : > { %v2526_v24 = vsel %vm749_vm2, -1.0, %v2480_v17 }
 0x9ea   : > { %v8848_v37 = vsel %vm2541_vm10, %v2526_v24, -1.0 }
 0x9eb   : > { %2640 = vrot.lane.b32.xlu0 %v8848_v37, %s10550_s22 }
 0x9ec   : > { %v2482_v42 = vpop.permute.xlu1 %2481 }
 0x9ed   : > { %v2527_v62 = vsel %vm749_vm2, -1.0, %v2482_v42 }
 0x9ee   : > { %v8854_v5 = vsel %vm2541_vm10, %v2527_v62, -1.0 }
 0x9ef   : > { %2642 = vrot.lane.b32.xlu1 %v8854_v5, %s10550_s22 }
 0x9f0   : > { %v2484_v10 = vpop.permute.xlu0 %2483 }
 0x9f1   : > { %v2528_v38 = vsel %vm749_vm2, -1.0, %v2484_v10 }
 0x9f2   : > { %v8860_v44 = vsel %vm2541_vm10, %v2528_v38, -1.0 }
 0x9f3   : > { %2644 = vrot.lane.b32.xlu0 %v8860_v44, %s10550_s22 }
 0x9f4   : > { %v2486_v63 = vpop.permute.xlu1 %2485 }
 0x9f5   : > { %v2529_v4 = vsel %vm749_vm2, -1.0, %v2486_v63 }
 0x9f6   : > { %v8866_v11 = vsel %vm2541_vm10, %v2529_v4, -1.0 }
 0x9f7   : > { %2646 = vrot.lane.b32.xlu1 %v8866_v11, %s10550_s22 }
 0x9f8   : > { %v2488_v15 = vpop.permute.xlu0 %2487 }
 0x9f9   : > { %v2530_v16 = vsel %vm749_vm2, -1.0, %v2488_v15 }
 0x9fa   : > { %v8872_v51 = vsel %vm2541_vm10, %v2530_v16, -1.0 }
 0x9fb   : > { %2648 = vrot.lane.b32.xlu0 %v8872_v51, %s10550_s22 }
 0x9fc   : > { %v2490_v8 = vpop.permute.xlu1 %2489 }
 0x9fd   : > { %v2531_v20 = vsel %vm749_vm2, -1.0, %v2490_v8 }
 0x9fe   : > { %v8878_v31 = vsel %vm2541_vm10, %v2531_v20, -1.0 }
 0x9ff   : > { %2650 = vrot.lane.b32.xlu1 %v8878_v31, %s10550_s22 }
 0xa00   : > { %v2492_v13 = vpop.permute.xlu0 %2491 }
 0xa01   : > { %v2532_v19 = vsel %vm749_vm2, -1.0, %v2492_v13 }
 0xa02   : > { %v8884_v36 = vsel %vm2541_vm10, %v2532_v19, -1.0 }
 0xa03   : > { %2652 = vrot.lane.b32.xlu0 %v8884_v36, %s10550_s22 }
 0xa04   : > { %v2494_v40 = vpop.permute.xlu1 %2493 }
 0xa05   : > { %v2533_v47 = vsel %vm749_vm2, -1.0, %v2494_v40 }
 0xa06   : > { %v8890_v3 = vsel %vm2541_vm10, %v2533_v47, -1.0 }
 0xa07   : > { %2654 = vrot.lane.b32.xlu1 %v8890_v3, %s10550_s22 }
 0xa08   : > { %v2496_v55 = vpop.permute.xlu0 %2495 }
 0xa09   : > { %v2534_v12 = vsel %vm749_vm2, -1.0, %v2496_v55 }
 0xa0a   : > { %v8896_v18 = vsel %vm2541_vm10, %v2534_v12, -1.0 }
 0xa0b   : > { %2656 = vrot.lane.b32.xlu0 %v8896_v18, %s10550_s22 }
 0xa0c   : > { %v2498_v43 = vpop.permute.xlu1 %2497 }
 0xa0d   : > { %v2535_v41 = vsel %vm749_vm2, -1.0, %v2498_v43 }
 0xa0e   : > { %v8902_v7 = vsel %vm2541_vm10, %v2535_v41, -1.0 }
 0xa0f   : > { %2658 = vrot.lane.b32.xlu1 %v8902_v7, %s10550_s22 }
 0xa10   : > { %v2500_v45 = vpop.permute.xlu0 %2499 }
 0xa11   : > { %v2536_v48 = vsel %vm749_vm2, -1.0, %v2500_v45 }
 0xa12   : > { %v8908_v46 = vsel %vm2541_vm10, %v2536_v48, -1.0 }
 0xa13   : > { %2660 = vrot.lane.b32.xlu0 %v8908_v46, %s10550_s22 }
 0xa14   : > { %v2502_v53 = vpop.permute.xlu1 %2501 }
 0xa15   : > { %v2537_v1 = vsel %vm749_vm2, -1.0, %v2502_v53 }
 0xa16   : > { %v8927_v0 = vsel %vm2541_vm10, %v2537_v1, -1.0 }
 0xa17   : > { %2662 = vrot.lane.b32.xlu1 %v8927_v0, %s10550_s22 }
 0xa18   : > { %v2504_v6 = vpop.permute.xlu0 %2503 }
 0xa19   : > { %v2538_v9 = vsel %vm749_vm2, -1.0, %v2504_v6 }
 0xa1a   : > { %v8954_v17 = vsel %vm2541_vm10, %v2538_v9, -1.0 }
 0xa1b   : > { %2664 = vrot.lane.b32.xlu0 %v8954_v17, %s10550_s22 }
 0xa1c   : > { %v2506_v24 = vpop.permute.xlu1 %2505 }
 0xa1d   : > { %v2539_v42 = vsel %vm749_vm2, -1.0, %v2506_v24 }
 0xa1e   : > { %v8977_v62 = vsel %vm2541_vm10, %v2539_v42, -1.0 }
 0xa1f   : > { %2666 = vrot.lane.b32.xlu1 %v8977_v62, %s10550_s22 }
 0xa20   : > { %v2508_v10 = vpop.permute.xlu0 %2507 }
 0xa21   : > { %v2540_v38 = vsel %vm749_vm2, -1.0, %v2508_v10 }
 0xa22   : > { %v8983_v63 = vsel %vm2541_vm10, %v2540_v38, -1.0 }
 0xa23   : > { %2668 = vrot.lane.b32.xlu0 %v8983_v63, %s10550_s22  ;;  %2574 = vrot.lane.b32.xlu1 %v8842_v14, %s10551_s20  ;;  %s6321_s22 = sshll.u32 %s10679_s24, 7 }
 0xa24   : > { %s9175_s29 = scalar_lea.vmem %s10460_s16, %s6321_s22 }
 0xa27   : > { %2576 = vrot.lane.b32.xlu0 %v8848_v37, %s10551_s20  ;;  %2578 = vrot.lane.b32.xlu1 %v8854_v5, %s10551_s20 }
 0xa2b   : > { %2580 = vrot.lane.b32.xlu0 %v8860_v44, %s10551_s20  ;;  %2584 = vrot.lane.b32.xlu1 %v8872_v51, %s10551_s20 }
 0xa2f   : > { %2582 = vrot.lane.b32.xlu0 %v8866_v11, %s10551_s20  ;;  %2586 = vrot.lane.b32.xlu1 %v8878_v31, %s10551_s20 }
 0xa33   : > { %2588 = vrot.lane.b32.xlu0 %v8884_v36, %s10551_s20  ;;  %2592 = vrot.lane.b32.xlu1 %v8896_v18, %s10551_s20 }
 0xa37   : > { %2590 = vrot.lane.b32.xlu0 %v8890_v3, %s10551_s20 }
 0xa59   : > { %v2639_v4 = vpop.permute.xlu1 %2638 }
 0xa5a   : > { %vm2686_vm13 = vcmp.gt.f32.partialorder %v8842_v14, %v2639_v4 }
 0xa5b   : > { %v6129_v16 = vsel %vm2686_vm13, 1.0, %v10568_v34 }
 0xa5d   : > { %v2641_v15 = vpop.permute.xlu0 %2640 }
 0xa5e   : > { %vm2687_vm2 = vcmp.gt.f32.partialorder %v8848_v37, %v2641_v15 }
 0xa5f   : > { %v6130_v8 = vsel %vm2687_vm2, 1.0, %v10568_v34 }
 0xa60   : > { %v7561_v20 = vpack.i.bf16 %v6130_v8, %v6129_v16 }
 0xa61   : > { %v2643_v13 = vpop.permute.xlu1 %2642 }
 0xa62   : > { %7562 = vrot.lane.b32.xlu1 %v7561_v20, %s10551_s20  ;;  %vm2688_vm12 = vcmp.gt.f32.partialorder %v8854_v5, %v2643_v13 }
 0xa63   : > { %v6131_v40 = vsel %vm2688_vm12, 1.0, %v10568_v34 }
 0xa65   : > { %v2645_v19 = vpop.permute.xlu0 %2644 }
 0xa66   : > { %vm2689_vm4 = vcmp.gt.f32.partialorder %v8860_v44, %v2645_v19  ;;  %2594 = vrot.lane.b32.xlu1 %v8902_v7, %s10551_s20 }
 0xa67   : > { %v6132_v47 = vsel %vm2689_vm4, 1.0, %v10568_v34 }
 0xa68   : > { %v7566_v55 = vpack.i.bf16 %v6132_v47, %v6131_v40 }
 0xa69   : > { %v2647_v12 = vpop.permute.xlu1 %2646 }
 0xa6a   : > { %7567 = vrot.lane.b32.xlu0 %v7566_v55, %s10551_s20  ;;  %vm2690_vm7 = vcmp.gt.f32.partialorder %v8866_v11, %v2647_v12 }
 0xa6b   : > { %v6133_v41 = vsel %vm2690_vm7, 1.0, %v10568_v34 }
 0xa6d   : > { %v2649_v43 = vpop.permute.xlu0 %2648 }
 0xa6e   : > { %vm2691_vm9 = vcmp.gt.f32.partialorder %v8872_v51, %v2649_v43  ;;  %2596 = vrot.lane.b32.xlu0 %v8908_v46, %s10551_s20 }
 0xa6f   : > { %v6134_v45 = vsel %vm2691_vm9, 1.0, %v10568_v34  ;;  %vm2734_vm9 = vcmask 244736  }
 0xa70   : > { %v7571_v48 = vpack.i.bf16 %v6134_v45, %v6133_v41 }
 0xa71   : > { %v2651_v53 = vpop.permute.xlu1 %2650 }
 0xa72   : > { %7572 = vrot.lane.b32.xlu1 %v7571_v48, %s10551_s20  ;;  %vm2692_vm6 = vcmp.gt.f32.partialorder %v8878_v31, %v2651_v53 }
 0xa73   : > { %v6135_v6 = vsel %vm2692_vm6, 1.0, %v10568_v34 }
 0xa75   : > { %v2653_v1 = vpop.permute.xlu0 %2652 }
 0xa76   : > { %vm2693_vm0 = vcmp.gt.f32.partialorder %v8884_v36, %v2653_v1  ;;  %2600 = vrot.lane.b32.xlu1 %v8954_v17, %s10551_s20 }
 0xa77   : > { %v6136_v9 = vsel %vm2693_vm0, 1.0, %v10568_v34 }
 0xa78   : > { %v7576_v24 = vpack.i.bf16 %v6136_v9, %v6135_v6 }
 0xa79   : > { %v2655_v42 = vpop.permute.xlu1 %2654 }
 0xa7a   : > { %7577 = vrot.lane.b32.xlu0 %v7576_v24, %s10551_s20  ;;  %vm2694_vm11 = vcmp.gt.f32.partialorder %v8890_v3, %v2655_v42 }
 0xa7b   : > { %v6137_v38 = vsel %vm2694_vm11, 1.0, %v10568_v34  ;;  %vm3156_vm11 = vcmask 121856  }
 0xa7d   : > { %v2657_v10 = vpop.permute.xlu0 %2656 }
 0xa7e   : > { %vm2695_vm10 = vcmp.gt.f32.partialorder %v8896_v18, %v2657_v10  ;;  %2598 = vrot.lane.b32.xlu0 %v8927_v0, %s10551_s20 }
 0xa7f   : > { %v6138_v4 = vsel %vm2695_vm10, 1.0, %v10568_v34  ;;  %vm3694_vm10 = vcmask 23552  }
 0xa80   : > { %v7581_v15 = vpack.i.bf16 %v6138_v4, %v6137_v38 }
 0xa81   : > { %v2659_v16 = vpop.permute.xlu1 %2658 }
 0xa82   : > { %7582 = vrot.lane.b32.xlu1 %v7581_v15, %s10551_s20  ;;  %vm2696_vm13 = vcmp.gt.f32.partialorder %v8902_v7, %v2659_v16 }
 0xa83   : > { %v6139_v20 = vsel %vm2696_vm13, 1.0, %v10568_v34 }
 0xa85   : > { %v2661_v8 = vpop.permute.xlu0 %2660 }
 0xa86   : > { %vm2697_vm2 = vcmp.gt.f32.partialorder %v8908_v46, %v2661_v8  ;;  %2602 = vrot.lane.b32.xlu1 %v8977_v62, %s10551_s20 }
 0xa87   : > { %v6140_v13 = vsel %vm2697_vm2, 1.0, %v10568_v34 }
 0xa88   : > { %v7586_v19 = vpack.i.bf16 %v6140_v13, %v6139_v20 }
 0xa89   : > { %v2663_v40 = vpop.permute.xlu1 %2662 }
 0xa8a   : > { %7587 = vrot.lane.b32.xlu0 %v7586_v19, %s10551_s20  ;;  %vm2698_vm12 = vcmp.gt.f32.partialorder %v8927_v0, %v2663_v40 }
 0xa8b   : > { %v6141_v55 = vsel %vm2698_vm12, 1.0, %v10568_v34 }
 0xa8d   : > { %v2665_v47 = vpop.permute.xlu0 %2664 }
 0xa8e   : > { %vm2699_vm4 = vcmp.gt.f32.partialorder %v8954_v17, %v2665_v47  ;;  %2604 = vrot.lane.b32.xlu0 %v8983_v63, %s10551_s20 }
 0xa8f   : > { %v6142_v12 = vsel %vm2699_vm4, 1.0, %v10568_v34 }
 0xa90   : > { %v7591_v43 = vpack.i.bf16 %v6142_v12, %v6141_v55 }
 0xa91   : > { %v2667_v41 = vpop.permute.xlu1 %2666 }
 0xa92   : > { %7592 = vrot.lane.b32.xlu1 %v7591_v43, %s10551_s20  ;;  %vm2700_vm7 = vcmp.gt.f32.partialorder %v8977_v62, %v2667_v41 }
 0xa93   : > { %v6143_v1 = vsel %vm2700_vm7, 1.0, %v10568_v34  ;;  %vm4659_vm7 = vcmask 220160  }
 0xa95   : > { %v2669_v45 = vpop.permute.xlu0 %2668  ;;  %v2575_v48 = vpop.permute.xlu1 %2574 }
 0xa96   : > { %vm2701_vm6 = vcmp.gt.f32.partialorder %v8983_v63, %v2669_v45  ;;  %v2622_v53 = vmax.f32 %v8842_v14, %v2575_v48 }
 0xa97   : > { %v6144_v6 = vsel %vm2701_vm6, 1.0, %v10568_v34 }
 0xa98   : > { %v7596_v9 = vpack.i.bf16 %v6144_v6, %v6143_v1  ;;  %7243 = vmatprep.mubr.msk.f32.mxu1 %vm2734_vm9, %v2622_v53  ;;  %v3173_v6 = vmul.u32 2, %v7920_v26 }
 0xa99   : > { %v2577_v24 = vpop.permute.xlu0 %2576  ;;  %v2579_v42 = vpop.permute.xlu1 %2578 }
 0xa9a   : > { %v2623_v10 = vmax.f32 %v8848_v37, %v2577_v24  ;;  %v2624_v38 = vmax.f32 %v8854_v5, %v2579_v42  ;;  %7597 = vrot.lane.b32.xlu0 %v7596_v9, %s10551_s20  ;;  %v10570_v42 = vmov 0 }
 0xa9c   : > { %7244 = vmatmul.mubr.msk.f32.vlgmr.msra.gmra.mxu1 %vm2734_vm9, %v2623_v10 }
 0xa9d   : > { %v2581_v4 = vpop.permute.xlu0 %2580  ;;  %7246 = vmatprep.mubr.msk.f32.mxu1 %vm2734_vm9, %v2624_v38  ;;  %v2585_v14 = vpop.permute.xlu1 %2584  ;;  %7468 = vmatpush3.msk.msra.mxu1 %vm871_vm3, %v8915_v2  ;;  %vm3285_vm3 = vcmask 1046528  }
 0xa9e   : > { %v2625_v15 = vmax.f32 %v8860_v44, %v2581_v4  ;;  %7465 = vmatprep.subr.msk.mxu1 %vm8076_vm14, %v10569_v57  ;;  %v2627_v58 = vmax.f32 %v8872_v51, %v2585_v14 }
 0xa9f   : > { %7469 = vmatpush3.msk.msra.mxu1 %vm8076_vm14, %v10569_v57 }
 0xaa0   : > { %7247 = vmatmul.mubr.msk.f32.gmra.mxu1 %vm2734_vm9, %v2625_v15  ;;  %7466 = vmatprep.subr.msk.mxu1 %vm8118_vm15, %v10569_v57 }
 0xaa1   : > { %v2583_v37 = vpop.permute.xlu0 %2582  ;;  %v2587_v5 = vpop.permute.xlu1 %2586  ;;  %7470 = vmatpush3.msk.msra.mxu1 %vm8118_vm15, %v10569_v57  ;;  %vm9125_vm15 = vcmp.eq.s32.totalorder %v7922_v27, %v3173_v6 }
 0xaa2   : > { %v2626_v44 = vmax.f32 %v8866_v11, %v2583_v37  ;;  %7467 = vmatprep.subr.msk.mxu1 %vm8127_vm1, %v10569_v57  ;;  %v2628_v2 = vmax.f32 %v8878_v31, %v2587_v5 }
 0xaa3   : > { %7471 = vmatpush3.msk.msra.mxu1 %vm8127_vm1, %v10569_v57 }
 0xaa4   : > { %7249 = vmatprep.mubr.msk.f32.mxu1 %vm2734_vm9, %v2626_v44 }
 0xaa5   : > { %v2589_v16 = vpop.permute.xlu0 %2588  ;;  %7250 = vmatmul.mubr.msk.f32.gmra.mxu1 %vm2734_vm9, %v2627_v58  ;;  %v2593_v11 = vpop.permute.xlu1 %2592 }
 0xaa6   : > { %v2629_v60 = vmax.f32 %v8884_v36, %v2589_v16  ;;  %7252 = vmatprep.mubr.msk.f32.mxu1 %vm2734_vm9, %v2628_v2  ;;  %v2631_v61 = vmax.f32 %v8896_v18, %v2593_v11 }
 0xaa9   : > { %v2591_v8 = vpop.permute.xlu0 %2590  ;;  %7253 = vmatmul.mubr.msk.f32.gmra.mxu1 %vm2734_vm9, %v2629_v60 }
 0xaaa   : > { %v2630_v51 = vmax.f32 %v8890_v3, %v2591_v8 }
 0xaac   : > { %7255 = vmatprep.mubr.msk.f32.mxu1 %vm2734_vm9, %v2630_v51 }
 0xaad   : > { %7256 = vmatmul.mubr.msk.f32.gmra.mxu1 %vm2734_vm9, %v2631_v61  ;;  %v6187_v61 = vadd.s32 4294967295, %v3173_v6 }
 0xaaf   : > { %vm9161_vm0 = vcmp.eq.s32.totalorder %v7922_v27, %v6187_v61 }
 0xad4   : > { %v7563_v31 = vpop.permute.xlu1 %7562 }
 0xad5   : > { %v7565_v20 = vunpack.i.h.bf16 %v7563_v31  ;;  %v7564_v13 = vunpack.i.l.bf16 %v7563_v31  ;;  %v10579_v31 = vmov 0 }
 0xad6   : > { %v10580_v31 = vsel %vm9161_vm0, 4294967295, %v10579_v31 }
 0xad7   : > { %7275 = vmatprep.mubr.msk.f32.mxu0 %vm2734_vm9, %v7564_v13  ;;  %10581 = vst [vmem:[#allocation30_spill] sm:$0xff] %v10580_v31 }
 0xad8   : > { %v2595_v36 = vpop.permute.xlu1 %2594  ;;  %7276 = vmatmul.mubr.msk.f32.vlgmr.msra.gmra.mxu0 %vm2734_vm9, %v7565_v20 }
 0xad9   : > { %v2632_v19 = vmax.f32 %v8902_v7, %v2595_v36 }
 0xadb   : > { %7258 = vmatprep.mubr.msk.f32.mxu1 %vm2734_vm9, %v2632_v19 }
 0xadc   : > { %v7568_v40 = vpop.permute.xlu0 %7567 }
 0xadd   : > { %v7570_v3 = vunpack.i.h.bf16 %v7568_v40  ;;  %v7569_v47 = vunpack.i.l.bf16 %v7568_v40 }
 0xadf   : > { %7278 = vmatprep.mubr.msk.f32.mxu0 %vm2734_vm9, %v7569_v47 }
 0xae0   : > { %v2597_v18 = vpop.permute.xlu0 %2596  ;;  %7279 = vmatmul.mubr.msk.f32.gmra.mxu0 %vm2734_vm9, %v7570_v3 }
 0xae1   : > { %v2633_v55 = vmax.f32 %v8908_v46, %v2597_v18  ;;  %v3174_v46 = vmul.u32 2, %v8114_v59  ;;  %v10573_v59 = vmov 0 }
 0xae2   : > { %v10574_v59 = vsel %vm9125_vm15, 4294967295, %v10573_v59 }
 0xae3   : > { %7259 = vmatmul.mubr.msk.f32.gmra.mxu1 %vm2734_vm9, %v2633_v55  ;;  %vm9116_vm14 = vcmp.eq.s32.totalorder %v7922_v27, %v3174_v46  ;;  %10575 = vst [vmem:[#allocation28_spill] sm:$0xff] %v10574_v59  ;;  %v6188_v8 = vadd.s32 4294967295, %v3174_v46 }
 0xae4   : > { %v7573_v12 = vpop.permute.xlu1 %7572  ;;  %v10571_v42 = vsel %vm9116_vm14, 4294967295, %v10570_v42  ;;  %v6186_v10 = vsel %vm9116_vm14, 1.0, %v10568_v34 }
 0xae5   : > { %v7575_v43 = vunpack.i.h.bf16 %v7573_v12  ;;  %v7574_v41 = vunpack.i.l.bf16 %v7573_v12  ;;  %10572 = vst [vmem:[#allocation27_spill] sm:$0xff] %v10571_v42  ;;  %7327 = vmatprep.subr.msk.mxu0 %vm3285_vm3, %v6186_v10  ;;  %vm9151_vm1 = vcmp.eq.s32.totalorder %v7922_v27, %v6188_v8 }
 0xae6   : > { %7328 = vmatpush3.msk.msra.mxu0 %vm3285_vm3, %v6186_v10  ;;  %v6190_v51 = vsel %vm9151_vm1, 1.0, %v10568_v34 }
 0xae7   : > { %7281 = vmatprep.mubr.msk.f32.mxu0 %vm2734_vm9, %v7574_v41  ;;  %7329 = vmatprep.subr.msk.mxu0 %vm9125_vm15, %v10569_v57 }
 0xae8   : > { %7282 = vmatmul.mubr.msk.f32.gmra.mxu0 %vm2734_vm9, %v7575_v43  ;;  %v2601_v53 = vpop.permute.xlu1 %2600  ;;  %7299 = vmatprep.subr.msk.mxu1 %vm3285_vm3, %v6190_v51 }
 0xae9   : > { %v2635_v24 = vmax.f32 %v8954_v17, %v2601_v53  ;;  %7330 = vmatpush3.msk.msra.mxu0 %vm9125_vm15, %v10569_v57 }
 0xaec   : > { %v7578_v7 = vpop.permute.xlu0 %7577 }
 0xaed   : > { %v7580_v45 = vunpack.i.h.bf16 %v7578_v7  ;;  %v7579_v48 = vunpack.i.l.bf16 %v7578_v7 }
 0xaef   : > { %7284 = vmatprep.mubr.msk.f32.mxu0 %vm2734_vm9, %v7579_v48 }
 0xaf0   : > { %v2599_v1 = vpop.permute.xlu0 %2598  ;;  %7285 = vmatmul.mubr.msk.f32.gmra.mxu0 %vm2734_vm9, %v7580_v45 }
 0xaf1   : > { %v2634_v9 = vmax.f32 %v8927_v0, %v2599_v1 }
 0xaf3   : > { %7261 = vmatprep.mubr.msk.f32.mxu1 %vm2734_vm9, %v2634_v9 }
 0xaf4   : > { %7262 = vmatmul.mubr.msk.f32.gmra.mxu1 %vm2734_vm9, %v2635_v24  ;;  %v7583_v26 = vpop.permute.xlu1 %7582 }
 0xaf5   : > { %v7585_v0 = vunpack.i.h.bf16 %v7583_v26  ;;  %v7584_v17 = vunpack.i.l.bf16 %v7583_v26 }
 0xaf7   : > { %7287 = vmatprep.mubr.msk.f32.mxu0 %vm2734_vm9, %v7584_v17 }
 0xaf8   : > { %v2603_v38 = vpop.permute.xlu1 %2602  ;;  %7288 = vmatmul.mubr.msk.f32.gmra.mxu0 %vm2734_vm9, %v7585_v0 }
 0xaf9   : > { %v2636_v4 = vmax.f32 %v8977_v62, %v2603_v38 }
 0xafb   : > { %7264 = vmatprep.mubr.msk.f32.mxu1 %vm2734_vm9, %v2636_v4 }
 0xafc   : > { %v7588_v14 = vpop.permute.xlu0 %7587 }
 0xafd   : > { %v7590_v15 = vunpack.i.h.bf16 %v7588_v14  ;;  %v7589_v37 = vunpack.i.l.bf16 %v7588_v14 }
 0xaff   : > { %7290 = vmatprep.mubr.msk.f32.mxu0 %vm2734_vm9, %v7589_v37 }
 0xb00   : > { %v2605_v5 = vpop.permute.xlu0 %2604  ;;  %7291 = vmatmul.mubr.msk.f32.gmra.mxu0 %vm2734_vm9, %v7590_v15 }
 0xb01   : > { %v2637_v44 = vmax.f32 %v8983_v63, %v2605_v5  ;;  %v10576_v63 = vmov 0 }
 0xb02   : > { %v10577_v63 = vsel %vm9151_vm1, 4294967295, %v10576_v63 }
 0xb03   : > { %7265 = vmatmul.mubr.msk.f32.gmra.mxu1 %vm2734_vm9, %v2637_v44  ;;  %10578 = vst [vmem:[#allocation29_spill] sm:$0xff] %v10577_v63  ;;  %v4082_v63 = vld [vmem:[#allocation4 + $0x18] sm:$0xff] }
 0xb04   : > { %v7593_v58 = vpop.permute.xlu1 %7592 }
 0xb05   : > { %v7595_v2 = vunpack.i.h.bf16 %v7593_v58  ;;  %v7594_v16 = vunpack.i.l.bf16 %v7593_v58 }
 0xb07   : > { %7293 = vmatprep.mubr.msk.f32.mxu0 %vm2734_vm9, %v7594_v16 }
 0xb08   : > { %7294 = vmatmul.mubr.msk.f32.gmra.mxu0 %vm2734_vm9, %v7595_v2 }
 0xb0c   : > { %v7598_v62 = vpop.permute.xlu0 %7597 }
 0xb0d   : > { %v7600_v60 = vunpack.i.h.bf16 %v7598_v62  ;;  %v7599_v11 = vunpack.i.l.bf16 %v7598_v62 }
 0xb0f   : > { %7296 = vmatprep.mubr.msk.f32.mxu1 %vm2734_vm9, %v7599_v11 }
 0xb10   : > { %7297 = vmatmul.mubr.msk.f32.vlgmr.msra.gmra.mxu1 %vm2734_vm9, %v7600_v60 }
 0xb11   : > { %7300 = vmatpush3.msk.msra.mxu1 %vm3285_vm3, %v6190_v51 }
 0xb12   : > { %7301 = vmatprep.subr.msk.mxu1 %vm9161_vm0, %v10569_v57 }
 0xb13   : > { %7302 = vmatpush3.msk.msra.mxu1 %vm9161_vm0, %v10569_v57 }
 0xb5c   : > { %v7245_v20 = vpop.f32.mrf.mxu1 }
 0xb5d   : > { %3158 = vst.msk [vmem:[%s9175_s29 + $0x8] sm:$0xff] %vm3156_vm11, %v7245_v20 }
 0xb5e   : > { %v2852_v13 = vpop.f32.mrf.mxu1 }
 0xb5f   : > { %3157 = vst.msk [vmem:[%s9175_s29] sm:$0xff] %vm3156_vm11, %v2852_v13 }
 0xb60   : > { %v7248_v36 = vpop.f32.mrf.mxu1 }
 0xb61   : > { %3160 = vst.msk [vmem:[%s9175_s29 + $0x18] sm:$0xff] %vm3156_vm11, %v7248_v36 }
 0xb62   : > { %v2862_v19 = vpop.f32.mrf.mxu1 }
 0xb63   : > { %3159 = vst.msk [vmem:[%s9175_s29 + $0x10] sm:$0xff] %vm3156_vm11, %v2862_v19 }
 0xb65   : > { %v7251_v40 = vpop.f32.mrf.mxu1 }
 0xb66   : > { %3162 = vst.msk [vmem:[%s9175_s29 + $0x28] sm:$0xff] %vm3156_vm11, %v7251_v40 }
 0xb67   : > { %v2872_v3 = vpop.f32.mrf.mxu1 }
 0xb68   : > { %3161 = vst.msk [vmem:[%s9175_s29 + $0x20] sm:$0xff] %vm3156_vm11, %v2872_v3 }
 0xb69   : > { %v7254_v47 = vpop.f32.mrf.mxu1 }
 0xb6a   : > { %3164 = vst.msk [vmem:[%s9175_s29 + $0x38] sm:$0xff] %vm3156_vm11, %v7254_v47 }
 0xb6b   : > { %v2882_v18 = vpop.f32.mrf.mxu1 }
 0xb6c   : > { %3163 = vst.msk [vmem:[%s9175_s29 + $0x30] sm:$0xff] %vm3156_vm11, %v2882_v18 }
 0xb6d   : > { %v9193_v55 = vpop.f32.mrf.mxu1 }
 0xb6e   : > { %3166 = vst.msk [vmem:[%s9175_s29 + $0x48] sm:$0xff] %vm3156_vm11, %v9193_v55 }
 0xb6f   : > { %v9198_v12 = vpop.f32.mrf.mxu1 }
 0xb70   : > { %3165 = vst.msk [vmem:[%s9175_s29 + $0x40] sm:$0xff] %vm3156_vm11, %v9198_v12 }
 0xb98   : > { %v7277_v43 = vpop.f32.mrf.mxu0 }
 0xb99   : > { %v3206_v41 = vsub.f32 1.0, %v7277_v43  ;;  %v3190_v53 = vmul.f32 %v7277_v43, %v7245_v20 }
 0xb9a   : > { %v3077_v7 = vpop.f32.mrf.mxu0 }
 0xb9b   : > { %v3189_v45 = vmul.f32 %v3077_v7, %v2852_v13  ;;  %v3205_v48 = vsub.f32 1.0, %v3077_v7  ;;  %v3222_v46 = vmul.f32 %v7245_v20, %v3206_v41 }
 0xb9d   : > { %v3221_v1 = vmul.f32 %v3205_v48, %v2852_v13  ;;  %7331 = vmatprep.mubr.msk.f32.mxu0 %vm3156_vm11, %v3189_v45 }
 0xb9e   : > { %7332 = vmatmul.mubr.msk.f32.vlgmr.msra.gmra.mxu0 %vm3156_vm11, %v3190_v53 }
 0xb9f   : > { %7303 = vmatprep.mubr.msk.f32.mxu1 %vm3156_vm11, %v3221_v1 }
 0xba0   : > { %v7280_v6 = vpop.f32.mrf.mxu0  ;;  %7304 = vmatmul.mubr.msk.f32.vlgmr.msra.gmra.mxu1 %vm3156_vm11, %v3222_v46 }
 0xba1   : > { %v3208_v9 = vsub.f32 1.0, %v7280_v6  ;;  %v3192_v17 = vmul.f32 %v7280_v6, %v7248_v36 }
 0xba2   : > { %v3087_v24 = vpop.f32.mrf.mxu0 }
 0xba3   : > { %v3191_v10 = vmul.f32 %v3087_v24, %v2862_v19  ;;  %v3207_v26 = vsub.f32 1.0, %v3087_v24  ;;  %v7260_v0 = vpop.f32.mrf.mxu1  ;;  %v3224_v14 = vmul.f32 %v7248_v36, %v3208_v9 }
 0xba4   : > { %3168 = vst.msk [vmem:[%s9175_s29 + $0x58] sm:$0xff] %vm3156_vm11, %v7260_v0 }
 0xba5   : > { %v3223_v38 = vmul.f32 %v3207_v26, %v2862_v19  ;;  %v2902_v4 = vpop.f32.mrf.mxu1  ;;  %7334 = vmatprep.mubr.msk.f32.mxu0 %vm3156_vm11, %v3191_v10 }
 0xba6   : > { %3167 = vst.msk [vmem:[%s9175_s29 + $0x50] sm:$0xff] %vm3156_vm11, %v2902_v4  ;;  %7335 = vmatmul.mubr.msk.f32.gmra.mxu0 %vm3156_vm11, %v3192_v17 }
 0xba7   : > { %7306 = vmatprep.mubr.msk.f32.mxu1 %vm3156_vm11, %v3223_v38 }
 0xba8   : > { %v7283_v15 = vpop.f32.mrf.mxu0  ;;  %7307 = vmatmul.mubr.msk.f32.gmra.mxu1 %vm3156_vm11, %v3224_v14 }
 0xba9   : > { %v3210_v37 = vsub.f32 1.0, %v7283_v15  ;;  %v3194_v2 = vmul.f32 %v7283_v15, %v7251_v40 }
 0xbaa   : > { %v3097_v5 = vpop.f32.mrf.mxu0 }
 0xbab   : > { %v3193_v44 = vmul.f32 %v3097_v5, %v2872_v3  ;;  %v3209_v58 = vsub.f32 1.0, %v3097_v5  ;;  %v3226_v62 = vmul.f32 %v7251_v40, %v3210_v37 }
 0xbad   : > { %v3225_v16 = vmul.f32 %v3209_v58, %v2872_v3  ;;  %7337 = vmatprep.mubr.msk.f32.mxu0 %vm3156_vm11, %v3193_v44 }
 0xbae   : > { %7338 = vmatmul.mubr.msk.f32.gmra.mxu0 %vm3156_vm11, %v3194_v2 }
 0xbaf   : > { %7309 = vmatprep.mubr.msk.f32.mxu1 %vm3156_vm11, %v3225_v16 }
 0xbb0   : > { %v7286_v60 = vpop.f32.mrf.mxu0  ;;  %7310 = vmatmul.mubr.msk.f32.gmra.mxu1 %vm3156_vm11, %v3226_v62 }
 0xbb1   : > { %v3212_v11 = vsub.f32 1.0, %v7286_v60  ;;  %v3196_v20 = vmul.f32 %v7286_v60, %v7254_v47 }
 0xbb2   : > { %v3107_v8 = vpop.f32.mrf.mxu0 }
 0xbb3   : > { %v3195_v51 = vmul.f32 %v3107_v8, %v2882_v18  ;;  %v3211_v61 = vsub.f32 1.0, %v3107_v8  ;;  %v3228_v19 = vmul.f32 %v7254_v47, %v3212_v11 }
 0xbb4   : > { %v7263_v13 = vpop.f32.mrf.mxu1 }
 0xbb5   : > { %v3227_v36 = vmul.f32 %v3211_v61, %v2882_v18  ;;  %3170 = vst.msk [vmem:[%s9175_s29 + $0x68] sm:$0xff] %vm3156_vm11, %v7263_v13  ;;  %7340 = vmatprep.mubr.msk.f32.mxu0 %vm3156_vm11, %v3195_v51 }
 0xbb6   : > { %v2912_v40 = vpop.f32.mrf.mxu1  ;;  %7341 = vmatmul.mubr.msk.f32.gmra.mxu0 %vm3156_vm11, %v3196_v20 }
 0xbb7   : > { %3169 = vst.msk [vmem:[%s9175_s29 + $0x60] sm:$0xff] %vm3156_vm11, %v2912_v40  ;;  %7312 = vmatprep.mubr.msk.f32.mxu1 %vm3156_vm11, %v3227_v36 }
 0xbb8   : > { %v7289_v3 = vpop.f32.mrf.mxu0  ;;  %7313 = vmatmul.mubr.msk.f32.gmra.mxu1 %vm3156_vm11, %v3228_v19 }
 0xbb9   : > { %v3214_v43 = vsub.f32 1.0, %v7289_v3  ;;  %v3198_v45 = vmul.f32 %v7289_v3, %v9193_v55 }
 0xbba   : > { %v3117_v41 = vpop.f32.mrf.mxu0 }
 0xbbb   : > { %v3197_v7 = vmul.f32 %v3117_v41, %v9198_v12  ;;  %v3213_v18 = vsub.f32 1.0, %v3117_v41  ;;  %v3230_v48 = vmul.f32 %v9193_v55, %v3214_v43 }
 0xbbd   : > { %v3229_v47 = vmul.f32 %v3213_v18, %v9198_v12  ;;  %7343 = vmatprep.mubr.msk.f32.mxu0 %vm3156_vm11, %v3197_v7 }
 0xbbe   : > { %7344 = vmatmul.mubr.msk.f32.gmra.mxu0 %vm3156_vm11, %v3198_v45 }
 0xbbf   : > { %7315 = vmatprep.mubr.msk.f32.mxu1 %vm3156_vm11, %v3229_v47 }
 0xbc0   : > { %v7292_v53 = vpop.f32.mrf.mxu0  ;;  %7316 = vmatmul.mubr.msk.f32.gmra.mxu1 %vm3156_vm11, %v3230_v48 }
 0xbc1   : > { %v3216_v1 = vsub.f32 1.0, %v7292_v53  ;;  %v3200_v10 = vmul.f32 %v7292_v53, %v7260_v0 }
 0xbc2   : > { %v3127_v46 = vpop.f32.mrf.mxu0 }
 0xbc3   : > { %v3199_v6 = vmul.f32 %v3127_v46, %v2902_v4  ;;  %v3215_v9 = vsub.f32 1.0, %v3127_v46  ;;  %v7266_v24 = vpop.f32.mrf.mxu1  ;;  %v3232_v55 = vmul.f32 %v7260_v0, %v3216_v1 }
 0xbc4   : > { %3172 = vst.msk [vmem:[%s9175_s29 + $0x78] sm:$0xff] %vm3156_vm11, %v7266_v24 }
 0xbc5   : > { %v3231_v12 = vmul.f32 %v3215_v9, %v2902_v4  ;;  %v2922_v26 = vpop.f32.mrf.mxu1  ;;  %7346 = vmatprep.mubr.msk.f32.mxu0 %vm3156_vm11, %v3199_v6 }
 0xbc6   : > { %3171 = vst.msk [vmem:[%s9175_s29 + $0x70] sm:$0xff] %vm3156_vm11, %v2922_v26  ;;  %7347 = vmatmul.mubr.msk.f32.gmra.mxu0 %vm3156_vm11, %v3200_v10 }
 0xbc7   : > { %7318 = vmatprep.mubr.msk.f32.mxu1 %vm3156_vm11, %v3231_v12 }
 0xbc8   : > { %v7295_v17 = vpop.f32.mrf.mxu0  ;;  %7319 = vmatmul.mubr.msk.f32.gmra.mxu1 %vm3156_vm11, %v3232_v55 }
 0xbc9   : > { %v3218_v38 = vsub.f32 1.0, %v7295_v17  ;;  %v3202_v5 = vmul.f32 %v7295_v17, %v7263_v13 }
 0xbca   : > { %v3137_v14 = vpop.f32.mrf.mxu0 }
 0xbcb   : > { %v3201_v15 = vmul.f32 %v3137_v14, %v2912_v40  ;;  %v3217_v37 = vsub.f32 1.0, %v3137_v14  ;;  %v3234_v4 = vmul.f32 %v7263_v13, %v3218_v38 }
 0xbcd   : > { %v3233_v44 = vmul.f32 %v3217_v37, %v2912_v40  ;;  %7349 = vmatprep.mubr.msk.f32.mxu0 %vm3156_vm11, %v3201_v15 }
 0xbce   : > { %7350 = vmatmul.mubr.msk.f32.gmra.mxu0 %vm3156_vm11, %v3202_v5 }
 0xbcf   : > { %7321 = vmatprep.mubr.msk.f32.mxu1 %vm3156_vm11, %v3233_v44 }
 0xbd0   : > { %v7298_v0 = vpop.f32.mrf.mxu1  ;;  %7322 = vmatmul.mubr.msk.f32.gmra.mxu1 %vm3156_vm11, %v3234_v4 }
 0xbd1   : > { %v3220_v58 = vsub.f32 1.0, %v7298_v0  ;;  %v3204_v60 = vmul.f32 %v7298_v0, %v7266_v24 }
 0xbd2   : > { %v3147_v2 = vpop.f32.mrf.mxu1 }
 0xbd3   : > { %v3203_v16 = vmul.f32 %v3147_v2, %v2922_v26  ;;  %v3219_v62 = vsub.f32 1.0, %v3147_v2  ;;  %v3236_v8 = vmul.f32 %v7266_v24, %v3220_v58 }
 0xbd5   : > { %v3235_v11 = vmul.f32 %v3219_v62, %v2922_v26  ;;  %7352 = vmatprep.mubr.msk.f32.mxu0 %vm3156_vm11, %v3203_v16 }
 0xbd6   : > { %7353 = vmatmul.mubr.msk.f32.gmra.mxu0 %vm3156_vm11, %v3204_v60 }
 0xbd7   : > { %7324 = vmatprep.mubr.msk.f32.mxu1 %vm3156_vm11, %v3235_v11  ;;  %4360 = vmatprep.mubr.f32.mxu0 %v4082_v63 }
 0xbd8   : > { %7325 = vmatmul.mubr.msk.f32.gmra.mxu1 %vm3156_vm11, %v3236_v8 }
 0xc5e   : > { %v7333_v51 = vpop.f32.mrf.mxu0 }
 0xc60   : > { %v7305_v61 = vpop.f32.mrf.mxu1  ;;  %v3551_v13 = vpop.f32.mrf.mxu0 }
 0xc61   : > { %v3557_v20 = vadd.f32 %v7333_v51, %v7305_v61 }
 0xc62   : > { %v3355_v36 = vpop.f32.mrf.mxu1 }
 0xc63   : > { %v3552_v19 = vadd.f32 %v3551_v13, %v3355_v36  ;;  %3648 = vrot.lane.b32.xlu1 %v3557_v20, %s10513_s18 }
 0xc65   : > { %3646 = vrot.lane.b32.xlu0 %v3552_v19, %s10513_s18 }
 0xc66   : > { %v7336_v40 = vpop.f32.mrf.mxu0 }
 0xc68   : > { %v7308_v3 = vpop.f32.mrf.mxu1  ;;  %v3561_v41 = vpop.f32.mrf.mxu0 }
 0xc69   : > { %v3567_v43 = vadd.f32 %v7336_v40, %v7308_v3 }
 0xc6a   : > { %v3365_v7 = vpop.f32.mrf.mxu1 }
 0xc6b   : > { %v3562_v18 = vadd.f32 %v3561_v41, %v3365_v7  ;;  %3652 = vrot.lane.b32.xlu1 %v3567_v43, %s10513_s18 }
 0xc6d   : > { %3650 = vrot.lane.b32.xlu0 %v3562_v18, %s10513_s18 }
 0xc6e   : > { %v7339_v45 = vpop.f32.mrf.mxu0 }
 0xc70   : > { %v7311_v47 = vpop.f32.mrf.mxu1  ;;  %v3571_v53 = vpop.f32.mrf.mxu0 }
 0xc71   : > { %v3577_v48 = vadd.f32 %v7339_v45, %v7311_v47 }
 0xc72   : > { %v3375_v1 = vpop.f32.mrf.mxu1 }
 0xc73   : > { %v3572_v46 = vadd.f32 %v3571_v53, %v3375_v1  ;;  %3656 = vrot.lane.b32.xlu1 %v3577_v48, %s10513_s18 }
 0xc75   : > { %3654 = vrot.lane.b32.xlu0 %v3572_v46, %s10513_s18 }
 0xc76   : > { %v7342_v6 = vpop.f32.mrf.mxu0 }
 0xc78   : > { %v7314_v9 = vpop.f32.mrf.mxu1  ;;  %v3581_v10 = vpop.f32.mrf.mxu0 }
 0xc79   : > { %v3587_v24 = vadd.f32 %v7342_v6, %v7314_v9 }
 0xc7a   : > { %v3385_v12 = vpop.f32.mrf.mxu1 }
 0xc7b   : > { %v3582_v26 = vadd.f32 %v3581_v10, %v3385_v12  ;;  %3660 = vrot.lane.b32.xlu1 %v3587_v24, %s10513_s18 }
 0xc7d   : > { %3658 = vrot.lane.b32.xlu0 %v3582_v26, %s10513_s18 }
 0xc7e   : > { %v7345_v55 = vpop.f32.mrf.mxu0 }
 0xc80   : > { %v7317_v17 = vpop.f32.mrf.mxu1  ;;  %v3591_v14 = vpop.f32.mrf.mxu0 }
 0xc81   : > { %v3597_v38 = vadd.f32 %v7345_v55, %v7317_v17 }
 0xc82   : > { %v3395_v15 = vpop.f32.mrf.mxu1 }
 0xc83   : > { %v3592_v37 = vadd.f32 %v3591_v14, %v3395_v15  ;;  %3664 = vrot.lane.b32.xlu1 %v3597_v38, %s10513_s18 }
 0xc85   : > { %3662 = vrot.lane.b32.xlu0 %v3592_v37, %s10513_s18 }
 0xc86   : > { %v7348_v5 = vpop.f32.mrf.mxu0 }
 0xc88   : > { %v7320_v44 = vpop.f32.mrf.mxu1  ;;  %v3601_v0 = vpop.f32.mrf.mxu0 }
 0xc89   : > { %v3607_v4 = vadd.f32 %v7348_v5, %v7320_v44 }
 0xc8a   : > { %v3405_v58 = vpop.f32.mrf.mxu1 }
 0xc8b   : > { %v3602_v2 = vadd.f32 %v3601_v0, %v3405_v58  ;;  %3668 = vrot.lane.b32.xlu1 %v3607_v4, %s10513_s18 }
 0xc8d   : > { %3666 = vrot.lane.b32.xlu0 %v3602_v2, %s10513_s18 }
 0xc8e   : > { %v7351_v16 = vpop.f32.mrf.mxu0 }
 0xc90   : > { %v7323_v62 = vpop.f32.mrf.mxu1  ;;  %v3611_v11 = vpop.f32.mrf.mxu0 }
 0xc91   : > { %v3617_v60 = vadd.f32 %v7351_v16, %v7323_v62 }
 0xc92   : > { %v3415_v8 = vpop.f32.mrf.mxu1 }
 0xc93   : > { %v3612_v51 = vadd.f32 %v3611_v11, %v3415_v8  ;;  %3672 = vrot.lane.b32.xlu1 %v3617_v60, %s10513_s18 }
 0xc95   : > { %3670 = vrot.lane.b32.xlu0 %v3612_v51, %s10513_s18 }
 0xc96   : > { %v7354_v61 = vpop.f32.mrf.mxu0 }
 0xc98   : > { %v7326_v20 = vpop.f32.mrf.mxu1  ;;  %v3621_v36 = vpop.f32.mrf.mxu0 }
 0xc99   : > { %v3627_v13 = vadd.f32 %v7354_v61, %v7326_v20 }
 0xc9a   : > { %v3425_v19 = vpop.f32.mrf.mxu1 }
 0xc9b   : > { %v3622_v40 = vadd.f32 %v3621_v36, %v3425_v19  ;;  %3676 = vrot.lane.b32.xlu1 %v3627_v13, %s10513_s18 }
 0xc9d   : > { %3674 = vrot.lane.b32.xlu0 %v3622_v40, %s10513_s18 }
 0xcd5   : > { %v3649_v3 = vpop.permute.xlu1 %3648 }
 0xcd6   : > { %v9268_v43 = vsel %vm3694_vm10, 0.0, %v3649_v3 }
 0xcd7   : > { %v9272_v41 = vsel %vm1810_vm8, %v9268_v43, 0.0  ;;  %v3647_v7 = vpop.permute.xlu0 %3646 }
 0xcd8   : > { %v9275_v18 = vsel %vm3694_vm10, 0.0, %v3647_v7  ;;  %3745 = vrot.lane.b32.xlu1 %v9272_v41, %s10551_s20  ;;  %3793 = vrot.lane.b32.xlu0 %v9272_v41, %s10545_s0 }
 0xcd9   : > { %v9283_v45 = vsel %vm1810_vm8, %v9275_v18, 0.0 }
 0xcdc   : > { %3841 = vrot.lane.b32.xlu1 %v9272_v41, %s10557_s1  ;;  %3743 = vrot.lane.b32.xlu0 %v9283_v45, %s10551_s20 }
 0xcdd   : > { %v3653_v47 = vpop.permute.xlu1 %3652 }
 0xcde   : > { %v9290_v48 = vsel %vm3694_vm10, 0.0, %v3653_v47 }
 0xcdf   : > { %v9294_v53 = vsel %vm1810_vm8, %v9290_v48, 0.0  ;;  %v3651_v1 = vpop.permute.xlu0 %3650 }
 0xce0   : > { %v9297_v46 = vsel %vm3694_vm10, 0.0, %v3651_v1  ;;  %3839 = vrot.lane.b32.xlu1 %v9283_v45, %s10557_s1  ;;  %3797 = vrot.lane.b32.xlu0 %v9294_v53, %s10545_s0 }
 0xce1   : > { %v9305_v6 = vsel %vm1810_vm8, %v9297_v46, 0.0 }
 0xce4   : > { %3791 = vrot.lane.b32.xlu1 %v9283_v45, %s10545_s0  ;;  %3747 = vrot.lane.b32.xlu0 %v9305_v6, %s10551_s20 }
 0xce5   : > { %v3657_v9 = vpop.permute.xlu1 %3656 }
 0xce6   : > { %v9312_v24 = vsel %vm3694_vm10, 0.0, %v3657_v9 }
 0xce7   : > { %v3655_v10 = vpop.permute.xlu0 %3654  ;;  %v9320_v12 = vsel %vm1810_vm8, %v9312_v24, 0.0 }
 0xce8   : > { %3749 = vrot.lane.b32.xlu1 %v9294_v53, %s10551_s20  ;;  %3843 = vrot.lane.b32.xlu0 %v9305_v6, %s10557_s1  ;;  %v9323_v26 = vsel %vm3694_vm10, 0.0, %v3655_v10 }
 0xce9   : > { %v9331_v55 = vsel %vm1810_vm8, %v9323_v26, 0.0 }
 0xcec   : > { %3845 = vrot.lane.b32.xlu1 %v9294_v53, %s10557_s1  ;;  %3801 = vrot.lane.b32.xlu0 %v9320_v12, %s10545_s0 }
 0xced   : > { %v3661_v17 = vpop.permute.xlu1 %3660 }
 0xcee   : > { %v9338_v38 = vsel %vm3694_vm10, 0.0, %v3661_v17 }
 0xcef   : > { %v9346_v14 = vsel %vm1810_vm8, %v9338_v38, 0.0  ;;  %v3659_v15 = vpop.permute.xlu0 %3658 }
 0xcf0   : > { %3795 = vrot.lane.b32.xlu1 %v9305_v6, %s10545_s0  ;;  %3751 = vrot.lane.b32.xlu0 %v9331_v55, %s10551_s20  ;;  %v9353_v37 = vsel %vm3694_vm10, 0.0, %v3659_v15 }
 0xcf1   : > { %v9361_v5 = vsel %vm1810_vm8, %v9353_v37, 0.0 }
 0xcf4   : > { %3753 = vrot.lane.b32.xlu1 %v9320_v12, %s10551_s20  ;;  %3847 = vrot.lane.b32.xlu0 %v9331_v55, %s10557_s1 }
 0xcf5   : > { %v3665_v44 = vpop.permute.xlu1 %3664 }
 0xcf6   : > { %v9368_v4 = vsel %vm3694_vm10, 0.0, %v3665_v44 }
 0xcf7   : > { %v3720_v0 = vsel %vm1810_vm8, %v9368_v4, 0.0  ;;  %v3663_v58 = vpop.permute.xlu0 %3662 }
 0xcf8   : > { %3849 = vrot.lane.b32.xlu1 %v9320_v12, %s10557_s1  ;;  %3805 = vrot.lane.b32.xlu0 %v9346_v14, %s10545_s0  ;;  %v9383_v2 = vsel %vm3694_vm10, 0.0, %v3663_v58 }
 0xcf9   : > { %v3719_v16 = vsel %vm1810_vm8, %v9383_v2, 0.0 }
 0xcfc   : > { %3799 = vrot.lane.b32.xlu1 %v9331_v55, %s10545_s0  ;;  %4045 = vrot.lane.b32.xlu0 %v9346_v14, %s10558_s28 }
 0xcfd   : > { %v3669_v62 = vpop.permute.xlu1 %3668 }
 0xcfe   : > { %v9399_v60 = vsel %vm3694_vm10, 0.0, %v3669_v62 }
 0xcff   : > { %v3722_v11 = vsel %vm1810_vm8, %v9399_v60, 0.0  ;;  %v3667_v8 = vpop.permute.xlu0 %3666 }
 0xd00   : > { %3757 = vrot.lane.b32.xlu1 %v9346_v14, %s10551_s20  ;;  %3755 = vrot.lane.b32.xlu0 %v9361_v5, %s10551_s20  ;;  %v9410_v51 = vsel %vm3694_vm10, 0.0, %v3667_v8 }
 0xd01   : > { %v3721_v61 = vsel %vm1810_vm8, %v9410_v51, 0.0 }
 0xd04   : > { %3853 = vrot.lane.b32.xlu1 %v9346_v14, %s10557_s1  ;;  %3851 = vrot.lane.b32.xlu0 %v9361_v5, %s10557_s1 }
 0xd05   : > { %v3673_v20 = vpop.permute.xlu1 %3672 }
 0xd06   : > { %v9423_v13 = vsel %vm3694_vm10, 0.0, %v3673_v20 }
 0xd07   : > { %v3724_v36 = vsel %vm1810_vm8, %v9423_v13, 0.0  ;;  %v3671_v19 = vpop.permute.xlu0 %3670 }
 0xd08   : > { %3949 = vrot.lane.b32.xlu1 %v9346_v14, %s10546_s25  ;;  %3809 = vrot.lane.b32.xlu0 %v3720_v0, %s10545_s0  ;;  %v9434_v7 = vsel %vm3694_vm10, 0.0, %v3671_v19 }
 0xd09   : > { %v3723_v9 = vsel %vm1810_vm8, %v9434_v7, 0.0 }
 0xd0c   : > { %3901 = vrot.lane.b32.xlu1 %v9346_v14, %s10548_s27  ;;  %4049 = vrot.lane.b32.xlu0 %v3720_v0, %s10558_s28 }
 0xd0d   : > { %v3677_v40 = vpop.permute.xlu1 %3676 }
 0xd0f   : > { %v3675_v3 = vpop.permute.xlu0 %3674 }
 0xd10   : > { %3803 = vrot.lane.b32.xlu1 %v9361_v5, %s10545_s0  ;;  %4001 = vrot.lane.b32.xlu0 %v3720_v0, %s10559_s30  ;;  %v9498_v52 = vsel %vm3694_vm10, 0.0, %v3675_v3 }
 0xd11   : > { %v3725_v39 = vsel %vm1810_vm8, %v9498_v52, 0.0 }
 0xd14   : > { %3947 = vrot.lane.b32.xlu1 %v9361_v5, %s10546_s25  ;;  %3759 = vrot.lane.b32.xlu0 %v3719_v16, %s10551_s20 }
 0xd18   : > { %3899 = vrot.lane.b32.xlu1 %v9361_v5, %s10548_s27  ;;  %3855 = vrot.lane.b32.xlu0 %v3719_v16, %s10557_s1 }
 0xd1c   : > { %3761 = vrot.lane.b32.xlu1 %v3720_v0, %s10551_s20  ;;  %4047 = vrot.lane.b32.xlu0 %v3719_v16, %s10558_s28 }
 0xd20   : > { %3857 = vrot.lane.b32.xlu1 %v3720_v0, %s10557_s1  ;;  %3999 = vrot.lane.b32.xlu0 %v3719_v16, %s10559_s30 }
 0xd24   : > { %3953 = vrot.lane.b32.xlu1 %v3720_v0, %s10546_s25  ;;  %3813 = vrot.lane.b32.xlu0 %v3722_v11, %s10545_s0 }
 0xd28   : > { %3905 = vrot.lane.b32.xlu1 %v3720_v0, %s10548_s27  ;;  %4053 = vrot.lane.b32.xlu0 %v3722_v11, %s10558_s28 }
 0xd2c   : > { %3807 = vrot.lane.b32.xlu1 %v3719_v16, %s10545_s0  ;;  %4005 = vrot.lane.b32.xlu0 %v3722_v11, %s10559_s30 }
 0xd30   : > { %3951 = vrot.lane.b32.xlu1 %v3719_v16, %s10546_s25  ;;  %3763 = vrot.lane.b32.xlu0 %v3721_v61, %s10551_s20 }
 0xd34   : > { %3903 = vrot.lane.b32.xlu1 %v3719_v16, %s10548_s27  ;;  %3859 = vrot.lane.b32.xlu0 %v3721_v61, %s10557_s1  ;;  %v9463_v16 = vsel %vm3694_vm10, 0.0, %v3677_v40 }
 0xd35   : > { %v3726_v8 = vsel %vm1810_vm8, %v9463_v16, 0.0 }
 0xd38   : > { %3765 = vrot.lane.b32.xlu1 %v3722_v11, %s10551_s20  ;;  %4051 = vrot.lane.b32.xlu0 %v3721_v61, %s10558_s28 }
 0xd3c   : > { %3861 = vrot.lane.b32.xlu1 %v3722_v11, %s10557_s1  ;;  %4003 = vrot.lane.b32.xlu0 %v3721_v61, %s10559_s30 }
 0xd40   : > { %3957 = vrot.lane.b32.xlu1 %v3722_v11, %s10546_s25  ;;  %3817 = vrot.lane.b32.xlu0 %v3724_v36, %s10545_s0 }
 0xd44   : > { %3909 = vrot.lane.b32.xlu1 %v3722_v11, %s10548_s27  ;;  %4057 = vrot.lane.b32.xlu0 %v3724_v36, %s10558_s28 }
 0xd48   : > { %3811 = vrot.lane.b32.xlu1 %v3721_v61, %s10545_s0  ;;  %4009 = vrot.lane.b32.xlu0 %v3724_v36, %s10559_s30 }
 0xd4a   : > { %v9438_v47 = vpop.permute.xlu1 %3745  ;;  %v9440_v1 = vpop.permute.xlu0 %3793 }
 0xd4b   : > { %10582 = vst [vmem:[#allocation31_spill] sm:$0xff] %v9440_v1 }
 0xd4c   : > { %3955 = vrot.lane.b32.xlu1 %v3721_v61, %s10546_s25  ;;  %3767 = vrot.lane.b32.xlu0 %v3723_v9, %s10551_s20 }
 0xd4e   : > { %v9446_v10 = vpop.permute.xlu1 %3841  ;;  %v9448_v17 = vpop.permute.xlu0 %3743 }
 0xd4f   : > { %10583 = vst [vmem:[#allocation32_spill] sm:$0xff] %v9446_v10 }
 0xd50   : > { %3907 = vrot.lane.b32.xlu1 %v3721_v61, %s10548_s27  ;;  %3863 = vrot.lane.b32.xlu0 %v3723_v9, %s10557_s1 }
 0xd52   : > { %v9452_v15 = vpop.permute.xlu1 %3839  ;;  %v9454_v44 = vpop.permute.xlu0 %3797 }
 0xd53   : > { %10584 = vst [vmem:[#allocation33_spill] sm:$0xff] %v9452_v15 }
 0xd54   : > { %3769 = vrot.lane.b32.xlu1 %v3724_v36, %s10551_s20  ;;  %4055 = vrot.lane.b32.xlu0 %v3723_v9, %s10558_s28 }
 0xd56   : > { %v9458_v0 = vpop.permute.xlu1 %3791  ;;  %v9460_v58 = vpop.permute.xlu0 %3747 }
 0xd57   : > { %10585 = vst [vmem:[#allocation34_spill] sm:$0xff] %v9458_v0 }
 0xd58   : > { %3865 = vrot.lane.b32.xlu1 %v3724_v36, %s10557_s1  ;;  %4007 = vrot.lane.b32.xlu0 %v3723_v9, %s10559_s30 }
 0xd5a   : > { %v9467_v62 = vpop.permute.xlu1 %3749  ;;  %v9469_v11 = vpop.permute.xlu0 %3843 }
 0xd5c   : > { %3961 = vrot.lane.b32.xlu1 %v3724_v36, %s10546_s25  ;;  %3821 = vrot.lane.b32.xlu0 %v3726_v8, %s10545_s0 }
 0xd5e   : > { %v9475_v61 = vpop.permute.xlu1 %3845  ;;  %v9477_v20 = vpop.permute.xlu0 %3801 }
 0xd60   : > { %3913 = vrot.lane.b32.xlu1 %v3724_v36, %s10548_s27  ;;  %3965 = vrot.lane.b32.xlu0 %v3726_v8, %s10546_s25 }
 0xd62   : > { %v9481_v19 = vpop.permute.xlu1 %3795  ;;  %v9483_v40 = vpop.permute.xlu0 %3751 }
 0xd63   : > { %10586 = vst [vmem:[#allocation35_spill] sm:$0xff] %v9481_v19 }
 0xd64   : > { %3815 = vrot.lane.b32.xlu1 %v3723_v9, %s10545_s0  ;;  %3917 = vrot.lane.b32.xlu0 %v3726_v8, %s10548_s27 }
 0xd66   : > { %v9487_v30 = vpop.permute.xlu1 %3753  ;;  %v9489_v35 = vpop.permute.xlu0 %3847 }
 0xd68   : > { %3959 = vrot.lane.b32.xlu1 %v3723_v9, %s10546_s25  ;;  %4061 = vrot.lane.b32.xlu0 %v3726_v8, %s10558_s28 }
 0xd6a   : > { %v9493_v32 = vpop.permute.xlu1 %3849  ;;  %v9495_v36 = vpop.permute.xlu0 %3805 }
 0xd6c   : > { %3911 = vrot.lane.b32.xlu1 %v3723_v9, %s10548_s27  ;;  %4013 = vrot.lane.b32.xlu0 %v3726_v8, %s10559_s30 }
 0xd6e   : > { %v9502_v50 = vpop.permute.xlu1 %3799  ;;  %v9504_v49 = vpop.permute.xlu0 %4045 }
 0xd6f   : > { %10587 = vst [vmem:[#allocation36_spill] sm:$0xff] %v9504_v49 }
 0xd70   : > { %3773 = vrot.lane.b32.xlu1 %v3726_v8, %s10551_s20  ;;  %3771 = vrot.lane.b32.xlu0 %v3725_v39, %s10551_s20 }
 0xd72   : > { %v9510_v29 = vpop.permute.xlu1 %3757  ;;  %v9512_v22 = vpop.permute.xlu0 %3755 }
 0xd74   : > { %3869 = vrot.lane.b32.xlu1 %v3726_v8, %s10557_s1  ;;  %3867 = vrot.lane.b32.xlu0 %v3725_v39, %s10557_s1 }
 0xd76   : > { %v9516_v3 = vpop.permute.xlu1 %3853  ;;  %v9518_v9 = vpop.permute.xlu0 %3851 }
 0xd78   : > { %3819 = vrot.lane.b32.xlu1 %v3725_v39, %s10545_s0  ;;  %3997 = vrot.lane.b32.xlu0 %v9346_v14, %s10559_s30  ;;  %v4080_v14 = vld [vmem:[#allocation4 + $0x8] sm:$0xff] }
 0xd79   : > { %4255 = vmatprep.mubr.f32.mxu1 %v4080_v14 }
 0xd7a   : > { %v9523_v25 = vpop.permute.xlu1 %3949  ;;  %v9525_v21 = vpop.permute.xlu0 %3809 }
 0xd7b   : > { %10588 = vst [vmem:[#allocation37_spill] sm:$0xff] %v9523_v25  ;;  %v4143_v25 = vld [vmem:[%s10452_s8] sm:$0xff] }
 0xd7c   : > { %3945 = vrot.lane.b32.xlu1 %v9320_v12, %s10546_s25  ;;  %4043 = vrot.lane.b32.xlu0 %v9361_v5, %s10558_s28 }
 0xd7e   : > { %v9531_v8 = vpop.permute.xlu1 %3901  ;;  %v9533_v23 = vpop.permute.xlu0 %4049 }
 0xd7f   : > { %10589 = vst [vmem:[#allocation38_spill] sm:$0xff] %v9531_v8  ;;  %10590 = vst [vmem:[#allocation39_spill] sm:$0xff] %v9533_v23 }
 0xd80   : > { %3897 = vrot.lane.b32.xlu1 %v9320_v12, %s10548_s27  ;;  %3995 = vrot.lane.b32.xlu0 %v9361_v5, %s10559_s30 }
 0xd82   : > { %v9539_v33 = vpop.permute.xlu1 %3803  ;;  %v9541_v28 = vpop.permute.xlu0 %4001 }
 0xd83   : > { %10591 = vst [vmem:[#allocation40_spill] sm:$0xff] %v9541_v28 }
 0xd84   : > { %3943 = vrot.lane.b32.xlu1 %v9331_v55, %s10546_s25  ;;  %4041 = vrot.lane.b32.xlu0 %v9320_v12, %s10558_s28 }
 0xd86   : > { %v9547_v31 = vpop.permute.xlu1 %3947  ;;  %v9549_v59 = vpop.permute.xlu0 %3759 }
 0xd87   : > { %10592 = vst [vmem:[#allocation41_spill] sm:$0xff] %v9547_v31 }
 0xd88   : > { %3895 = vrot.lane.b32.xlu1 %v9331_v55, %s10548_s27  ;;  %3993 = vrot.lane.b32.xlu0 %v9320_v12, %s10559_s30 }
 0xd8a   : > { %v9555_v5 = vpop.permute.xlu1 %3899  ;;  %v9557_v14 = vpop.permute.xlu0 %3855 }
 0xd8b   : > { %10593 = vst [vmem:[#allocation42_spill] sm:$0xff] %v9555_v5 }
 0xd8c   : > { %3941 = vrot.lane.b32.xlu1 %v9294_v53, %s10546_s25  ;;  %4039 = vrot.lane.b32.xlu0 %v9331_v55, %s10558_s28 }
 0xd8e   : > { %v9563_v42 = vpop.permute.xlu1 %3761  ;;  %v9565_v57 = vpop.permute.xlu0 %4047 }
 0xd8f   : > { %10594 = vst [vmem:[#allocation43_spill] sm:$0xff] %v9565_v57 }
 0xd90   : > { %3963 = vrot.lane.b32.xlu1 %v3725_v39, %s10546_s25  ;;  %3991 = vrot.lane.b32.xlu0 %v9331_v55, %s10559_s30 }
 0xd92   : > { %v9570_v63 = vpop.permute.xlu1 %3857  ;;  %v9572_v12 = vpop.permute.xlu0 %3999 }
 0xd93   : > { %10595 = vst [vmem:[#allocation44_spill] sm:$0xff] %v9572_v12 }
 0xd94   : > { %3915 = vrot.lane.b32.xlu1 %v3725_v39, %s10548_s27  ;;  %4059 = vrot.lane.b32.xlu0 %v3725_v39, %s10558_s28 }
 0xd96   : > { %v9576_v56 = vpop.permute.xlu1 %3953  ;;  %v9578_v34 = vpop.permute.xlu0 %3813 }
 0xd97   : > { %10596 = vst [vmem:[#allocation45_spill] sm:$0xff] %v9576_v56  ;;  %v4149_v56 = vld [vmem:[%s10452_s8 + $0x30] sm:$0xff] }
 0xd98   : > { %3893 = vrot.lane.b32.xlu1 %v9294_v53, %s10548_s27  ;;  %4011 = vrot.lane.b32.xlu0 %v3725_v39, %s10559_s30 }
 0xd9a   : > { %v9583_v27 = vpop.permute.xlu1 %3905  ;;  %v9585_v55 = vpop.permute.xlu0 %4053 }
 0xd9b   : > { %10597 = vst [vmem:[#allocation46_spill] sm:$0xff] %v9583_v27  ;;  %10598 = vst [vmem:[#allocation47_spill] sm:$0xff] %v9585_v55  ;;  %v4147_v27 = vld [vmem:[%s10452_s8 + $0x20] sm:$0xff] }
 0xd9c   : > { %3939 = vrot.lane.b32.xlu1 %v9305_v6, %s10546_s25  ;;  %4037 = vrot.lane.b32.xlu0 %v9294_v53, %s10558_s28 }
 0xd9e   : > { %v9591_v54 = vpop.permute.xlu1 %3807  ;;  %v9593_v49 = vpop.permute.xlu0 %4005 }
 0xd9f   : > { %10599 = vst [vmem:[#allocation48_spill] sm:$0xff] %v9593_v49 }
 0xda0   : > { %3891 = vrot.lane.b32.xlu1 %v9305_v6, %s10548_s27  ;;  %3989 = vrot.lane.b32.xlu0 %v9294_v53, %s10559_s30 }
 0xda2   : > { %v9599_v39 = vpop.permute.xlu1 %3951  ;;  %v9601_v12 = vpop.permute.xlu0 %3763 }
 0xda3   : > { %10600 = vst [vmem:[#allocation49_spill] sm:$0xff] %v9599_v39 }
 0xda4   : > { %3937 = vrot.lane.b32.xlu1 %v9272_v41, %s10546_s25  ;;  %4035 = vrot.lane.b32.xlu0 %v9305_v6, %s10558_s28 }
 0xda6   : > { %v9607_v5 = vpop.permute.xlu1 %3903  ;;  %v9609_v57 = vpop.permute.xlu0 %3859 }
 0xda7   : > { %10601 = vst [vmem:[#allocation50_spill] sm:$0xff] %v9607_v5 }
 0xda8   : > { %3889 = vrot.lane.b32.xlu1 %v9272_v41, %s10548_s27  ;;  %3987 = vrot.lane.b32.xlu0 %v9305_v6, %s10559_s30 }
 0xdaa   : > { %v9615_v53 = vpop.permute.xlu1 %3765  ;;  %v9617_v31 = vpop.permute.xlu0 %4051 }
 0xdab   : > { %10602 = vst [vmem:[#allocation51_spill] sm:$0xff] %v9617_v31  ;;  %v4145_v31 = vld [vmem:[%s10452_s8 + $0x10] sm:$0xff] }
 0xdac   : > { %3935 = vrot.lane.b32.xlu1 %v9283_v45, %s10546_s25  ;;  %4033 = vrot.lane.b32.xlu0 %v9272_v41, %s10558_s28 }
 0xdae   : > { %v9623_v28 = vpop.permute.xlu1 %3861  ;;  %v9625_v8 = vpop.permute.xlu0 %4003 }
 0xdaf   : > { %10603 = vst [vmem:[#allocation52_spill] sm:$0xff] %v9625_v8  ;;  %v4144_v8 = vld [vmem:[%s10452_s8 + $0x8] sm:$0xff] }
 0xdb0   : > { %3887 = vrot.lane.b32.xlu1 %v9283_v45, %s10548_s27  ;;  %3985 = vrot.lane.b32.xlu0 %v9272_v41, %s10559_s30 }
 0xdb2   : > { %v9631_v6 = vpop.permute.xlu1 %3957  ;;  %v3818_v23 = vpop.permute.xlu0 %3817 }
 0xdb3   : > { %10604 = vst [vmem:[#allocation53_spill] sm:$0xff] %v9631_v6 }
 0xdb4   : > { %4031 = vrot.lane.b32.xlu1 %v9283_v45, %s10558_s28  ;;  %3983 = vrot.lane.b32.xlu0 %v9283_v45, %s10559_s30  ;;  %v4146_v45 = vld [vmem:[%s10452_s8 + $0x18] sm:$0xff] }
 0xdb6   : > { %v9643_v5 = vpop.permute.xlu1 %3909  ;;  %v9645_v41 = vpop.permute.xlu0 %4057 }
 0xdb7   : > { %10605 = vst [vmem:[#allocation54_spill] sm:$0xff] %v9643_v5  ;;  %10606 = vst [vmem:[#allocation55_spill] sm:$0xff] %v9645_v41 }
 0xdb8   : > { %4153 = vperm.xlu1 %7530, %v4143_v25   ;;  %4158 = vperm.xlu0 %7529, %v4144_v8   ;;  %v4148_v25 = vld [vmem:[%s10452_s8 + $0x28] sm:$0xff] }
 0xdba   : > { %v9653_v39 = vpop.permute.xlu1 %3811  ;;  %v9655_v49 = vpop.permute.xlu0 %4009 }
 0xdbb   : > { %10607 = vst [vmem:[#allocation56_spill] sm:$0xff] %v9655_v49 }
 0xdbc   : > { %4163 = vperm.xlu1 %7530, %v4145_v31   ;;  %4168 = vperm.xlu0 %7529, %v4146_v45   ;;  %v4150_v31 = vld [vmem:[%s10452_s8 + $0x38] sm:$0xff] }
 0xdbe   : > { %v9663_v8 = vpop.permute.xlu1 %3955  ;;  %v3768_v55 = vpop.permute.xlu0 %3767 }
 0xdbf   : > { %10608 = vst [vmem:[#allocation57_spill] sm:$0xff] %v9663_v8 }
 0xdc0   : > { %4173 = vperm.xlu1 %7530, %v4147_v27   ;;  %4178 = vperm.xlu0 %7529, %v4148_v25  }
 0xdc2   : > { %v9671_v45 = vpop.permute.xlu1 %3907  ;;  %v3864_v49 = vpop.permute.xlu0 %3863 }
 0xdc3   : > { %10609 = vst [vmem:[#allocation58_spill] sm:$0xff] %v9671_v45 }
 0xdc4   : > { %4183 = vperm.xlu1 %7530, %v4149_v56   ;;  %4188 = vperm.xlu0 %7529, %v4150_v31  }
 0xdc6   : > { %v3770_v5 = vpop.permute.xlu1 %3769  ;;  %v9673_v41 = vpop.permute.xlu0 %4055 }
 0xdc7   : > { %10610 = vst [vmem:[#allocation59_spill] sm:$0xff] %v9673_v41 }
 0xdca   : > { %v3866_v8 = vpop.permute.xlu1 %3865  ;;  %v9675_v6 = vpop.permute.xlu0 %4007 }
 0xdcb   : > { %10611 = vst [vmem:[#allocation60_spill] sm:$0xff] %v9675_v6 }
 0xdce   : > { %v9677_v27 = vpop.permute.xlu1 %3961  ;;  %v3822_v25 = vpop.permute.xlu0 %3821 }
 0xdcf   : > { %10612 = vst [vmem:[#allocation61_spill] sm:$0xff] %v9677_v27 }
 0xdd2   : > { %v9679_v0 = vpop.permute.xlu1 %3913  ;;  %v9681_v15 = vpop.permute.xlu0 %3965 }
 0xdd3   : > { %10613 = vst [vmem:[#allocation62_spill] sm:$0xff] %v9679_v0 }
 0xdd6   : > { %v3816_v1 = vpop.permute.xlu1 %3815  ;;  %v9683_v10 = vpop.permute.xlu0 %3917 }
 0xdda   : > { %v9685_v45 = vpop.permute.xlu1 %3959  ;;  %v9687_v56 = vpop.permute.xlu0 %4061 }
 0xdde   : > { %v9689_v31 = vpop.permute.xlu1 %3911  ;;  %v9691_v41 = vpop.permute.xlu0 %4013 }
 0xddf   : > { %10614 = vst [vmem:[#allocation63_spill] sm:$0xff] %v9689_v31 }
 0xde2   : > { %v3774_v19 = vpop.permute.xlu1 %3773  ;;  %v3772_v6 = vpop.permute.xlu0 %3771 }
 0xde3   : > { %6690 = vmatprep.subr.mxu1 %v3774_v19 }
 0xde4   : > { %6691 = vmatpush3.msk.msra.mxu1 %vm1810_vm8, %v9463_v16  ;;  %v4098_v16 = vld [vmem:[#allocation4 + $0x98] sm:$0xff] }
 0xde5   : > { %6692 = vmatprep.subr.mxu1 %v3772_v6  ;;  %v10635_v6 = vld [vmem:[#allocation49_spill] sm:$0xff] }
 0xde6   : > { %v3870_v0 = vpop.permute.xlu1 %3869  ;;  %6693 = vmatpush3.msk.msra.mxu1 %vm1810_vm8, %v9498_v52  ;;  %v3868_v27 = vpop.permute.xlu0 %3867 }
 0xde7   : > { %6694 = vmatprep.subr.mxu1 %v3770_v5  ;;  %6746 = vmatprep.subr.mxu0 %v3870_v0  ;;  %v10625_v0 = vld [vmem:[#allocation54_spill] sm:$0xff]  ;;  %v10631_v5 = vld [vmem:[#allocation45_spill] sm:$0xff] }
 0xde8   : > { %6695 = vmatpush3.msk.msra.mxu1 %vm1810_vm8, %v9423_v13  ;;  %6747 = vmatpush3.msra.mxu0 %v3822_v25 }
 0xde9   : > { %6696 = vmatprep.subr.mxu1 %v3768_v55  ;;  %6748 = vmatprep.subr.mxu0 %v3868_v27  ;;  %v4111_v55 = vld [vmem:[#allocation4 + $0x100] sm:$0xff]  ;;  %v10638_v27 = vld [vmem:[#allocation52_spill] sm:$0xff] }
 0xdea   : > { %v3820_v31 = vpop.permute.xlu1 %3819  ;;  %6697 = vmatpush3.msk.msra.mxu1 %vm1810_vm8, %v9434_v7  ;;  %v9701_v19 = vpop.permute.xlu0 %3997  ;;  %v4089_v7 = vld [vmem:[#allocation4 + $0x50] sm:$0xff] }
 0xdeb   : > { %6698 = vmatprep.subr.mxu1 %v9615_v53  ;;  %6749 = vmatpush3.msra.mxu0 %v3820_v31  ;;  %v10634_v53 = vld [vmem:[#allocation48_spill] sm:$0xff]  ;;  %v10639_v31 = vld [vmem:[#allocation37_spill] sm:$0xff] }
 0xdec   : > { %6699 = vmatpush3.msk.msra.mxu1 %vm1810_vm8, %v9399_v60  ;;  %6750 = vmatprep.subr.mxu0 %v3866_v8  ;;  %v4095_v60 = vld [vmem:[#allocation4 + $0x80] sm:$0xff]  ;;  %v4105_v8 = vld [vmem:[#allocation4 + $0xd0] sm:$0xff] }
 0xded   : > { %6700 = vmatprep.subr.mxu1 %v9601_v12  ;;  %6751 = vmatpush3.msra.mxu0 %v3818_v23  ;;  %v10633_v12 = vld [vmem:[#allocation46_spill] sm:$0xff] }
 0xdee   : > { %v9707_v52 = vpop.permute.xlu1 %3945  ;;  %6701 = vmatpush3.msk.msra.mxu1 %vm1810_vm8, %v9410_v51  ;;  %6752 = vmatprep.subr.mxu0 %v3864_v49  ;;  %v9711_v13 = vpop.permute.xlu0 %4043  ;;  %v4090_v51 = vld [vmem:[#allocation4 + $0x58] sm:$0xff] }
 0xdef   : > { %6702 = vmatprep.subr.mxu1 %v9563_v42  ;;  %6753 = vmatpush3.msra.mxu0 %v3816_v1  ;;  %v4087_v42 = vld [vmem:[#allocation4 + $0x40] sm:$0xff] }
 0xdf0   : > { %6703 = vmatpush3.msk.msra.mxu1 %vm1810_vm8, %v9368_v4  ;;  %6754 = vmatprep.subr.mxu0 %v9623_v28 }
 0xdf1   : > { %6704 = vmatprep.subr.mxu1 %v9549_v59  ;;  %6755 = vmatpush3.msra.mxu0 %v9578_v34  ;;  %v10617_v59 = vld [vmem:[#allocation31_spill] sm:$0xff] }
 0xdf2   : > { %v9719_v23 = vpop.permute.xlu1 %3897  ;;  %6705 = vmatpush3.msk.msra.mxu1 %vm1810_vm8, %v9383_v2  ;;  %6756 = vmatprep.subr.mxu0 %v9609_v57  ;;  %v9724_v49 = vpop.permute.xlu0 %3995  ;;  %v10616_v57 = vld [vmem:[#allocation32_spill] sm:$0xff] }
 0xdf3   : > { %6706 = vmatprep.subr.mxu1 %v9510_v29  ;;  %6757 = vmatpush3.msra.mxu0 %v9653_v39  ;;  %v4088_v29 = vld [vmem:[#allocation4 + $0x48] sm:$0xff]  ;;  %v4106_v39 = vld [vmem:[#allocation4 + $0xd8] sm:$0xff] }
 0xdf4   : > { %6707 = vmatpush3.msk.msra.mxu1 %vm1810_vm8, %v9338_v38  ;;  %6758 = vmatprep.subr.mxu0 %v9570_v63  ;;  %v10620_v38 = vld [vmem:[#allocation61_spill] sm:$0xff]  ;;  %v10632_v63 = vld [vmem:[#allocation47_spill] sm:$0xff] }
 0xdf5   : > { %6708 = vmatprep.subr.mxu1 %v9512_v22  ;;  %6759 = vmatpush3.msra.mxu0 %v9525_v21 }
 0xdf6   : > { %v9733_v28 = vpop.permute.xlu1 %3943  ;;  %6709 = vmatpush3.msk.msra.mxu1 %vm1810_vm8, %v9353_v37  ;;  %6760 = vmatprep.subr.mxu0 %v9557_v14  ;;  %v9738_v34 = vpop.permute.xlu0 %4041  ;;  %v10621_v37 = vld [vmem:[#allocation62_spill] sm:$0xff] }
 0xdf7   : > { %6710 = vmatprep.subr.mxu1 %v9487_v30  ;;  %6761 = vmatpush3.msra.mxu0 %v9591_v54 }
 0xdf8   : > { %6711 = vmatpush3.msk.msra.mxu1 %vm1810_vm8, %v9312_v24  ;;  %6762 = vmatprep.subr.mxu0 %v9516_v3  ;;  %v10619_v24 = vld [vmem:[#allocation34_spill] sm:$0xff] }
 0xdf9   : > { %6712 = vmatprep.subr.mxu1 %v9483_v40  ;;  %6763 = vmatpush3.msra.mxu0 %v9495_v36  ;;  %v10629_v40 = vld [vmem:[#allocation58_spill] sm:$0xff]  ;;  %v10630_v36 = vld [vmem:[#allocation60_spill] sm:$0xff] }
 0xdfa   : > { %v9747_v21 = vpop.permute.xlu1 %3895  ;;  %6713 = vmatpush3.msk.msra.mxu1 %vm1810_vm8, %v9323_v26  ;;  %6764 = vmatprep.subr.mxu0 %v9518_v9  ;;  %v9752_v22 = vpop.permute.xlu0 %3993  ;;  %v4096_v26 = vld [vmem:[#allocation4 + $0x88] sm:$0xff] }
 0xdfb   : > { %6714 = vmatprep.subr.mxu1 %v9467_v62  ;;  %6765 = vmatpush3.msra.mxu0 %v9539_v33  ;;  %v10626_v62 = vld [vmem:[#allocation56_spill] sm:$0xff] }
 0xdfc   : > { %6715 = vmatpush3.msk.msra.mxu1 %vm1810_vm8, %v9290_v48  ;;  %6766 = vmatprep.subr.mxu0 %v9493_v32  ;;  %v4079_v32 = vld [vmem:[#allocation4] sm:$0xff]  ;;  %v4081_v48 = vld [vmem:[#allocation4 + $0x10] sm:$0xff]  ;;  %v4112_v9 = vld [vmem:[#allocation4 + $0x108] sm:$0xff] }
 0xdfd   : > { %6716 = vmatprep.subr.mxu1 %v9460_v58  ;;  %6767 = vmatpush3.msra.mxu0 %v9477_v20  ;;  %v4103_v58 = vld [vmem:[#allocation4 + $0xc0] sm:$0xff]  ;;  %v4097_v20 = vld [vmem:[#allocation4 + $0x90] sm:$0xff] }
 0xdfe   : > { %v9761_v54 = vpop.permute.xlu1 %3941  ;;  %6717 = vmatpush3.msk.msra.mxu1 %vm1810_vm8, %v9297_v46  ;;  %6768 = vmatprep.subr.mxu0 %v9489_v35  ;;  %v9766_v30 = vpop.permute.xlu0 %4039  ;;  %v10618_v46 = vld [vmem:[#allocation33_spill] sm:$0xff] }
 0xdff   : > { %6718 = vmatprep.subr.mxu1 %v9438_v47  ;;  %6769 = vmatpush3.msra.mxu0 %v9502_v50  ;;  %v10615_v50 = vld [vmem:[#allocation35_spill] sm:$0xff] }
 0xe00   : > { %6719 = vmatpush3.msk.msra.mxu1 %vm1810_vm8, %v9268_v43  ;;  %6770 = vmatprep.subr.mxu0 %v9475_v61  ;;  %v10622_v47 = vld [vmem:[#allocation63_spill] sm:$0xff] }
 0xe01   : > { %6720 = vmatprep.subr.mxu1 %v9448_v17  ;;  %6771 = vmatpush3.msra.mxu0 %v9454_v44  ;;  %v10623_v17 = vld [vmem:[#allocation53_spill] sm:$0xff]  ;;  %v10624_v44 = vld [vmem:[#allocation55_spill] sm:$0xff] }
 0xe02   : > { %v3964_v33 = vpop.permute.xlu1 %3963  ;;  %6721 = vmatpush3.msk.msra.mxu1 %vm1810_vm8, %v9275_v18  ;;  %6772 = vmatprep.subr.mxu0 %v9469_v11  ;;  %v9778_v35 = vpop.permute.xlu0 %3991  ;;  %v10627_v11 = vld [vmem:[#allocation57_spill] sm:$0xff]  ;;  %v10628_v61 = vld [vmem:[#allocation59_spill] sm:$0xff]  ;;  %vm4684_vm8 = vcmask 1042432  }
 0xe03   : > { %4256 = vmatmul.mubr.f32.vlgmr.msra.gmra.mxu1 %v4079_v32  ;;  %6773 = vmatpush3.msra.mxu0 %v10615_v50  ;;  %v10641_v50 = vld [vmem:[#allocation38_spill] sm:$0xff] }
 0xe04   : > { %6802 = vmatprep.subr.mxu1 %v9681_v15  ;;  %6774 = vmatprep.subr.mxu0 %v10616_v57  ;;  %v4114_v57 = vld [vmem:[#allocation4 + $0x118] sm:$0xff] }
 0xe05   : > { %6803 = vmatpush3.msra.mxu1 %v9683_v10  ;;  %6775 = vmatpush3.msra.mxu0 %v10617_v59  ;;  %v4104_v10 = vld [vmem:[#allocation4 + $0xc8] sm:$0xff]  ;;  %v10643_v59 = vld [vmem:[#allocation41_spill] sm:$0xff] }
 0xe06   : > { %6804 = vmatprep.subr.mxu1 %v3964_v33  ;;  %v3916_v43 = vpop.permute.xlu1 %3915  ;;  %4260 = vmatprep.mubr.f32.mxu1 %v4088_v29  ;;  %v4060_v18 = vpop.permute.xlu0 %4059  ;;  %v10640_v33 = vld [vmem:[#allocation39_spill] sm:$0xff] }
 0xe07   : > { %6776 = vmatprep.subr.mxu0 %v10618_v46  ;;  %4261 = vmatmul.mubr.f32.gmra.mxu1 %v4087_v42  ;;  %v4119_v29 = vld [vmem:[#allocation4 + $0x140] sm:$0xff]  ;;  %v10642_v42 = vld [vmem:[#allocation40_spill] sm:$0xff] }
 0xe08   : > { %6777 = vmatpush3.msra.mxu0 %v10619_v24  ;;  %6805 = vmatpush3.msra.mxu1 %v3916_v43  ;;  %v10644_v43 = vld [vmem:[#allocation43_spill] sm:$0xff]  ;;  %v10646_v46 = vld [vmem:[#allocation44_spill] sm:$0xff] }
 0xe09   : > { %4361 = vmatmul.mubr.f32.vlgmr.msra.gmra.mxu0 %v4081_v48  ;;  %6806 = vmatprep.subr.mxu1 %v10620_v38  ;;  %v10645_v48 = vld [vmem:[#allocation42_spill] sm:$0xff] }
 0xe0a   : > { %6858 = vmatprep.subr.mxu0 %v9687_v56  ;;  %6807 = vmatpush3.msra.mxu1 %v10621_v37  ;;  %v9790_v4 = vpop.permute.xlu1 %3893  ;;  %v4012_v2 = vpop.permute.xlu0 %4011  ;;  %v4120_v56 = vld [vmem:[#allocation4 + $0x148] sm:$0xff] }
 0xe0b   : > { %6859 = vmatpush3.msra.mxu0 %v9691_v41  ;;  %4265 = vmatprep.mubr.f32.mxu1 %v4096_v26  ;;  %v10636_v41 = vld [vmem:[#allocation51_spill] sm:$0xff]  ;;  %v4128_v26 = vld [vmem:[#allocation4 + $0x188] sm:$0xff] }
 0xe0c   : > { %6808 = vmatprep.subr.mxu1 %v9685_v45  ;;  %6860 = vmatprep.subr.mxu0 %v4060_v18  ;;  %v10637_v45 = vld [vmem:[#allocation50_spill] sm:$0xff]  ;;  %v4113_v18 = vld [vmem:[#allocation4 + $0x110] sm:$0xff]  ;;  %v10647_v37 = vld [vmem:[#allocation36_spill] sm:$0xff] }
 0xe0d   : > { %4266 = vmatmul.mubr.f32.gmra.mxu1 %v4095_v60  ;;  %4365 = vmatprep.mubr.f32.mxu0 %v4090_v51  ;;  %v4122_v60 = vld [vmem:[#allocation4 + $0x158] sm:$0xff]  ;;  %v4121_v51 = vld [vmem:[#allocation4 + $0x150] sm:$0xff] }
 0xe0e   : > { %6809 = vmatpush3.msra.mxu1 %v10622_v47  ;;  %6861 = vmatpush3.msra.mxu0 %v4012_v2  ;;  %v9795_v1 = vpop.permute.xlu1 %3939  ;;  %v9798_v15 = vpop.permute.xlu0 %4037  ;;  %v4127_v2 = vld [vmem:[#allocation4 + $0x180] sm:$0xff]  ;;  %v4086_v47 = vld [vmem:[#allocation4 + $0x38] sm:$0xff] }
 0xe0f   : > { %4366 = vmatmul.mubr.f32.gmra.mxu0 %v4089_v7  ;;  %6810 = vmatprep.subr.mxu1 %v10623_v17  ;;  %v4136_v7 = vld [vmem:[#allocation4 + $0x1c8] sm:$0xff]  ;;  %v4085_v17 = vld [vmem:[#allocation4 + $0x30] sm:$0xff] }
 0xe10   : > { %6862 = vmatprep.subr.mxu0 %v10624_v44  ;;  %6811 = vmatpush3.msra.mxu1 %v10625_v0  ;;  %v4094_v44 = vld [vmem:[#allocation4 + $0x78] sm:$0xff]  ;;  %v4099_v0 = vld [vmem:[#allocation4 + $0xa0] sm:$0xff] }
 0xe11   : > { %6863 = vmatpush3.msra.mxu0 %v10626_v62  ;;  %4270 = vmatprep.mubr.f32.mxu1 %v4104_v10  ;;  %v4091_v10 = vld [vmem:[#allocation4 + $0x60] sm:$0xff]  ;;  %v4102_v62 = vld [vmem:[#allocation4 + $0xb8] sm:$0xff] }
 0xe12   : > { %6812 = vmatprep.subr.mxu1 %v10627_v11  ;;  %6864 = vmatprep.subr.mxu0 %v10628_v61  ;;  %v9807_v3 = vpop.permute.xlu1 %3891  ;;  %v9810_v14 = vpop.permute.xlu0 %3989  ;;  %v4107_v11 = vld [vmem:[#allocation4 + $0xe0] sm:$0xff]  ;;  %v4101_v61 = vld [vmem:[#allocation4 + $0xb0] sm:$0xff] }
 0xe13   : > { %4271 = vmatmul.mubr.f32.gmra.mxu1 %v4103_v58  ;;  %4370 = vmatprep.mubr.f32.mxu0 %v4098_v16  ;;  %v4093_v58 = vld [vmem:[#allocation4 + $0x70] sm:$0xff]  ;;  %v4108_v16 = vld [vmem:[#allocation4 + $0xe8] sm:$0xff] }
 0xe14   : > { %6813 = vmatpush3.msra.mxu1 %v10629_v40  ;;  %6865 = vmatpush3.msra.mxu0 %v10630_v36  ;;  %v4110_v40 = vld [vmem:[#allocation4 + $0xf8] sm:$0xff]  ;;  %v4115_v36 = vld [vmem:[#allocation4 + $0x120] sm:$0xff] }
 0xe15   : > { %4371 = vmatmul.mubr.f32.gmra.mxu0 %v4097_v20  ;;  %6814 = vmatprep.subr.mxu1 %v10631_v5  ;;  %v4116_v20 = vld [vmem:[#allocation4 + $0x128] sm:$0xff]  ;;  %v4118_v5 = vld [vmem:[#allocation4 + $0x138] sm:$0xff] }
 0xe16   : > { %6866 = vmatprep.subr.mxu0 %v10632_v63  ;;  %6815 = vmatpush3.msra.mxu1 %v10633_v12  ;;  %v3938_v25 = vpop.permute.xlu1 %3937  ;;  %v4036_v32 = vpop.permute.xlu0 %4035  ;;  %v4117_v63 = vld [vmem:[#allocation4 + $0x130] sm:$0xff]  ;;  %v4132_v12 = vld [vmem:[#allocation4 + $0x1a8] sm:$0xff] }
 0xe17   : > { %6867 = vmatpush3.msra.mxu0 %v10634_v53  ;;  %4275 = vmatprep.mubr.f32.mxu1 %v4112_v9  ;;  %v4124_v9 = vld [vmem:[#allocation4 + $0x168] sm:$0xff]  ;;  %v4125_v53 = vld [vmem:[#allocation4 + $0x170] sm:$0xff] }
 0xe18   : > { %6816 = vmatprep.subr.mxu1 %v10635_v6  ;;  %6868 = vmatprep.subr.mxu0 %v10636_v41  ;;  %v4140_v6 = vld [vmem:[#allocation4 + $0x1e8] sm:$0xff]  ;;  %v4134_v41 = vld [vmem:[#allocation4 + $0x1b8] sm:$0xff] }
 0xe19   : > { %4276 = vmatmul.mubr.f32.gmra.mxu1 %v4111_v55  ;;  %4375 = vmatprep.mubr.f32.mxu0 %v4106_v39  ;;  %v4126_v55 = vld [vmem:[#allocation4 + $0x178] sm:$0xff]  ;;  %v4131_v39 = vld [vmem:[#allocation4 + $0x1a0] sm:$0xff] }
 0xe1a   : > { %6817 = vmatpush3.msra.mxu1 %v10637_v45  ;;  %6869 = vmatpush3.msra.mxu0 %v10638_v27  ;;  %v3890_v24 = vpop.permute.xlu1 %3889  ;;  %v3988_v38 = vpop.permute.xlu0 %3987  ;;  %v4133_v45 = vld [vmem:[#allocation4 + $0x1b0] sm:$0xff]  ;;  %v4142_v27 = vld [vmem:[#allocation4 + $0x1f8] sm:$0xff] }
 0xe1b   : > { %4376 = vmatmul.mubr.f32.gmra.mxu0 %v4105_v8  ;;  %6818 = vmatprep.subr.mxu1 %v10639_v31  ;;  %v4139_v8 = vld [vmem:[#allocation4 + $0x1e0] sm:$0xff] }
 0xe1c   : > { %6870 = vmatprep.subr.mxu0 %v10640_v33  ;;  %6819 = vmatpush3.msra.mxu1 %v10641_v50  ;;  %v10649_v33 = vld [vmem:[#allocation9_spill] sm:$0xff] }
 0xe1d   : > { %6871 = vmatpush3.msra.mxu0 %v10642_v42  ;;  %4280 = vmatprep.mubr.f32.mxu1 %v4120_v56  ;;  %v10648_v56 = vld [vmem:[#allocation13_spill] sm:$0xff] }
 0xe1e   : > { %6820 = vmatprep.subr.mxu1 %v10643_v59  ;;  %6872 = vmatprep.subr.mxu0 %v10644_v43  ;;  %v4620_v31 = vmul.u32 2, %v10648_v56  ;;  %v10653_v59 = vld [vmem:[#allocation14_spill] sm:$0xff] }
 0xe1f   : > { %4281 = vmatmul.mubr.f32.gmra.mxu1 %v4119_v29  ;;  %4380 = vmatprep.mubr.f32.mxu0 %v4114_v57  ;;  %v10652_v29 = vmov 0.0   ;;  %v4619_v43 = vmul.u32 2, %v10653_v59 }
 0xe20   : > { %6821 = vmatpush3.msra.mxu1 %v10645_v48  ;;  %6873 = vmatpush3.msra.mxu0 %v10646_v46  ;;  %vm9849_vm13 = vcmp.eq.s32.totalorder %v10649_v33, %v4620_v31  ;;  %v10656_v46 = vmov 1.0  }
 0xe21   : > { %4381 = vmatmul.mubr.f32.gmra.mxu0 %v4113_v18  ;;  %6822 = vmatprep.subr.mxu1 %v9707_v52  ;;  %v3936_v52 = vpop.permute.xlu1 %3935  ;;  %v6244_v57 = vsel %vm9849_vm13, 1.0, %v10652_v29  ;;  %v9867_v18 = vadd.s32 4294967295, %v4619_v43  ;;  %vm9870_vm12 = vcmp.eq.s32.totalorder %v10649_v33, %v4619_v43 }
 0xe22   : > { %6874 = vmatprep.subr.mxu0 %v10647_v37  ;;  %6823 = vmatpush3.msra.mxu1 %v9719_v23  ;;  %v4034_v23 = vpop.permute.xlu0 %4033 }
 0xe23   : > { %6875 = vmatpush3.msra.mxu0 %v9701_v19  ;;  %4285 = vmatprep.mubr.f32.mxu1 %v4128_v26  ;;  %v4135_v19 = vld [vmem:[#allocation4 + $0x1c0] sm:$0xff]  ;;  %vm4629_vm4 = vcmp.eq.s32.totalorder %v10649_v33, %v9867_v18 }
 0xe24   : > { %6824 = vmatprep.subr.mxu1 %v9733_v28  ;;  %6876 = vmatprep.subr.mxu0 %v9711_v13  ;;  %v4130_v28 = vld [vmem:[#allocation4 + $0x198] sm:$0xff]  ;;  %v4129_v13 = vld [vmem:[#allocation4 + $0x190] sm:$0xff] }
 0xe25   : > { %4286 = vmatmul.mubr.f32.gmra.mxu1 %v4127_v2  ;;  %4385 = vmatprep.mubr.f32.mxu0 %v4122_v60 }
 0xe26   : > { %6825 = vmatpush3.msra.mxu1 %v9747_v21  ;;  %6877 = vmatpush3.msra.mxu0 %v9724_v49  ;;  %v3888_v49 = vpop.permute.xlu1 %3887  ;;  %v4138_v21 = vld [vmem:[#allocation4 + $0x1d8] sm:$0xff] }
 0xe27   : > { %4386 = vmatmul.mubr.f32.gmra.mxu0 %v4121_v51  ;;  %6826 = vmatprep.subr.mxu1 %v9761_v54  ;;  %v4083_v54 = vld [vmem:[#allocation4 + $0x20] sm:$0xff] }
 0xe28   : > { %6878 = vmatprep.subr.mxu0 %v9738_v34  ;;  %6827 = vmatpush3.msra.mxu1 %v9790_v4  ;;  %v3986_v34 = vpop.permute.xlu0 %3985  ;;  %v4092_v4 = vld [vmem:[#allocation4 + $0x68] sm:$0xff] }
 0xe29   : > { %6879 = vmatpush3.msra.mxu0 %v9752_v22  ;;  %4290 = vmatprep.mubr.f32.mxu1 %v4136_v7  ;;  %v4084_v22 = vld [vmem:[#allocation4 + $0x28] sm:$0xff] }
 0xe2a   : > { %6828 = vmatprep.subr.mxu1 %v9795_v1  ;;  %6880 = vmatprep.subr.mxu0 %v9766_v30  ;;  %v4137_v30 = vld [vmem:[#allocation4 + $0x1d0] sm:$0xff] }
 0xe2b   : > { %4291 = vmatmul.mubr.f32.gmra.mxu1 %v4135_v19  ;;  %4390 = vmatprep.mubr.f32.mxu0 %v4130_v28 }
 0xe2c   : > { %6829 = vmatpush3.msra.mxu1 %v9807_v3  ;;  %6881 = vmatpush3.msra.mxu0 %v9778_v35  ;;  %v4032_v35 = vpop.permute.xlu1 %4031  ;;  %v3984_v1 = vpop.permute.xlu0 %3983  ;;  %v4109_v3 = vld [vmem:[#allocation4 + $0xf0] sm:$0xff] }
 0xe2d   : > { %4391 = vmatmul.mubr.f32.gmra.mxu0 %v4129_v13  ;;  %6830 = vmatprep.subr.mxu1 %v3938_v25  ;;  %v4141_v25 = vld [vmem:[#allocation4 + $0x1f0] sm:$0xff] }
 0xe2e   : > { %6882 = vmatprep.subr.mxu0 %v9798_v15  ;;  %6831 = vmatpush3.msra.mxu1 %v3890_v24  ;;  %v4100_v15 = vld [vmem:[#allocation4 + $0xa8] sm:$0xff] }
 0xe2f   : > { %6883 = vmatpush3.msra.mxu0 %v9810_v14  ;;  %6832 = vmatprep.subr.mxu1 %v3936_v52  ;;  %v4123_v14 = vld [vmem:[#allocation4 + $0x160] sm:$0xff] }
 0xe30   : > { %6884 = vmatprep.subr.mxu0 %v4036_v32  ;;  %4395 = vmatprep.mubr.f32.mxu0 %v4138_v21  ;;  %v9846_v32 = vadd.s32 4294967295, %v4620_v31 }
 0xe31   : > { %6833 = vmatpush3.msra.mxu1 %v3888_v49  ;;  %4465 = vmatprep.mubr.f32.mxu1 %v4084_v22 }
 0xe32   : > { %6885 = vmatpush3.msra.mxu0 %v3988_v38  ;;  %4466 = vmatmul.mubr.f32.vlgmr.msra.gmra.mxu1 %v4083_v54  ;;  %vm4630_vm2 = vcmp.eq.s32.totalorder %v10649_v33, %v9846_v32 }
 0xe33   : > { %4396 = vmatmul.mubr.f32.gmra.mxu0 %v4137_v30  ;;  %6886 = vmatprep.subr.mxu0 %v4034_v23  ;;  %v6248_v42 = vsel %vm4630_vm2, 1.0, %v10652_v29 }
 0xe34   : > { %6887 = vmatpush3.msra.mxu0 %v3986_v34  ;;  %4470 = vmatprep.mubr.f32.mxu1 %v4092_v4 }
 0xe35   : > { %6888 = vmatprep.subr.mxu0 %v4032_v35  ;;  %4570 = vmatprep.mubr.f32.mxu0 %v4086_v47 }
 0xe36   : > { %4471 = vmatmul.mubr.f32.gmra.mxu1 %v4091_v10  ;;  %6889 = vmatpush3.msra.mxu0 %v3984_v1 }
 0xe37   : > { %4571 = vmatmul.mubr.f32.vlgmr.msra.gmra.mxu0 %v4085_v17  ;;  %4475 = vmatprep.mubr.f32.mxu1 %v4100_v15 }
 0xe38   : > { %4575 = vmatprep.mubr.f32.mxu0 %v4094_v44  ;;  %7375 = vmatprep.subr.msk.mxu0 %vm4684_vm8, %v6244_v57 }
 0xe39   : > { %7376 = vmatpush3.msk.msra.mxu0 %vm4684_vm8, %v6244_v57  ;;  %7355 = vmatprep.subr.msk.mxu1 %vm4684_vm8, %v6248_v42 }
 0xe3a   : > { %4476 = vmatmul.mubr.f32.gmra.mxu1 %v4099_v0  ;;  %7377 = vmatprep.subr.msk.mxu0 %vm9870_vm12, %v10656_v46 }
 0xe3b   : > { %4576 = vmatmul.mubr.f32.gmra.mxu0 %v4093_v58  ;;  %4480 = vmatprep.mubr.f32.mxu1 %v4108_v16 }
 0xe3c   : > { %4580 = vmatprep.mubr.f32.mxu0 %v4102_v62  ;;  %7356 = vmatpush3.msk.msra.mxu1 %vm4684_vm8, %v6248_v42 }
 0xe3d   : > { %7378 = vmatpush3.msk.msra.mxu0 %vm9870_vm12, %v10656_v46  ;;  %7357 = vmatprep.subr.msk.mxu1 %vm4629_vm4, %v10656_v46 }
 0xe3e   : > { %4481 = vmatmul.mubr.f32.gmra.mxu1 %v4107_v11  ;;  %7379 = vmatprep.subr.msk.mxu0 %vm9116_vm14, %v10656_v46 }
 0xe3f   : > { %4581 = vmatmul.mubr.f32.gmra.mxu0 %v4101_v61  ;;  %4485 = vmatprep.mubr.f32.mxu1 %v4116_v20 }
 0xe40   : > { %4585 = vmatprep.mubr.f32.mxu0 %v4110_v40  ;;  %7358 = vmatpush3.msk.msra.mxu1 %vm4629_vm4, %v10656_v46 }
 0xe41   : > { %7380 = vmatpush3.msk.msra.mxu0 %vm9116_vm14, %v10656_v46  ;;  %7359 = vmatprep.subr.msk.mxu1 %vm9151_vm1, %v10656_v46 }
 0xe42   : > { %4486 = vmatmul.mubr.f32.gmra.mxu1 %v4115_v36  ;;  %7381 = vmatprep.subr.msk.mxu0 %vm9125_vm15, %v10656_v46 }
 0xe43   : > { %4586 = vmatmul.mubr.f32.gmra.mxu0 %v4109_v3  ;;  %4490 = vmatprep.mubr.f32.mxu1 %v4124_v9 }
 0xe44   : > { %4590 = vmatprep.mubr.f32.mxu0 %v4118_v5  ;;  %7360 = vmatpush3.msk.msra.mxu1 %vm9151_vm1, %v10656_v46 }
 0xe45   : > { %7382 = vmatpush3.msk.msra.mxu0 %vm9125_vm15, %v10656_v46  ;;  %7361 = vmatprep.subr.msk.mxu1 %vm9161_vm0, %v10656_v46 }
 0xe46   : > { %4491 = vmatmul.mubr.f32.gmra.mxu1 %v4123_v14  ;;  %v4154_v14 = vpop.permute.xlu1 %4153 }
 0xe47   : > { %4591 = vmatmul.mubr.f32.gmra.mxu0 %v4117_v63  ;;  %4495 = vmatprep.mubr.f32.mxu1 %v4132_v12 }
 0xe48   : > { %4595 = vmatprep.mubr.f32.mxu0 %v4126_v55  ;;  %7362 = vmatpush3.msk.msra.mxu1 %vm9161_vm0, %v10656_v46 }
 0xe4a   : > { %4496 = vmatmul.mubr.f32.gmra.mxu1 %v4131_v39 }
 0xe4b   : > { %4596 = vmatmul.mubr.f32.gmra.mxu0 %v4125_v53  ;;  %4500 = vmatprep.mubr.f32.mxu1 %v4140_v6 }
 0xe4c   : > { %4600 = vmatprep.mubr.f32.mxu0 %v4134_v41 }
 0xe4e   : > { %4501 = vmatmul.mubr.f32.gmra.mxu1 %v4139_v8 }
 0xe4f   : > { %4601 = vmatmul.mubr.f32.gmra.mxu0 %v4133_v45 }
 0xe50   : > { %4605 = vmatprep.mubr.f32.mxu0 %v4142_v27  ;;  %v4159_v27 = vpop.permute.xlu0 %4158 }
 0xe53   : > { %4606 = vmatmul.mubr.f32.gmra.mxu0 %v4141_v25 }
 0xec3   : > { %v6722_v2 = vpop.f32.mrf.mxu1 }
 0xec5   : > { %v6723_v60 = vpop.f32.mrf.mxu1 }
 0xec6   : > { %v6724_v40 = vadd.f32 %v6723_v60, %v6722_v2 }
 0xec7   : > { %v6725_v51 = vpop.f32.mrf.mxu1 }
 0xec8   : > { %v4258_v12 = vadd.f32 %v6724_v40, %v4154_v14 }
 0xec9   : > { %v6778_v52 = vpop.f32.mrf.mxu0  ;;  %v6726_v7 = vpop.f32.mrf.mxu1 }
 0xeca   : > { %v6727_v55 = vadd.f32 %v6726_v7, %v6725_v51  ;;  %v10661_v7 = vld [vmem:[#allocation20_spill] sm:$0xff] }
 0xecb   : > { %v6779_v23 = vpop.f32.mrf.mxu0 }
 0xecc   : > { %v6780_v9 = vadd.f32 %v6779_v23, %v6778_v52  ;;  %v4263_v31 = vadd.f32 %v6727_v55, %v4159_v27  ;;  %v4164_v52 = vpop.permute.xlu1 %4163 }
 0xecd   : > { %v6728_v19 = vpop.f32.mrf.mxu1 }
 0xece   : > { %v4363_v41 = vadd.f32 %v6780_v9, %v4258_v12 }
 0xecf   : > { %v6781_v28 = vpop.f32.mrf.mxu0  ;;  %v6729_v13 = vpop.f32.mrf.mxu1 }
 0xed0   : > { %v6730_v25 = vadd.f32 %v6729_v13, %v6728_v19 }
 0xed1   : > { %v6782_v49 = vpop.f32.mrf.mxu0 }
 0xed2   : > { %v6783_v8 = vadd.f32 %v6782_v49, %v6781_v28 }
 0xed3   : > { %v6731_v34 = vpop.f32.mrf.mxu1 }
 0xed4   : > { %v4368_v23 = vadd.f32 %v6783_v8, %v4263_v31 }
 0xed5   : > { %v6784_v21 = vpop.f32.mrf.mxu0  ;;  %v6732_v22 = vpop.f32.mrf.mxu1 }
 0xed6   : > { %v6733_v9 = vadd.f32 %v6732_v22, %v6731_v34 }
 0xed7   : > { %v6785_v54 = vpop.f32.mrf.mxu0 }
 0xed8   : > { %v6786_v2 = vadd.f32 %v6785_v54, %v6784_v21 }
 0xed9   : > { %v9914_v30 = vpop.f32.mrf.mxu1 }
 0xedb   : > { %v6787_v4 = vpop.f32.mrf.mxu0  ;;  %v9916_v35 = vpop.f32.mrf.mxu1 }
 0xedc   : > { %v6736_v34 = vadd.f32 %v9916_v35, %v9914_v30 }
 0xedd   : > { %v6788_v47 = vpop.f32.mrf.mxu0 }
 0xede   : > { %v6789_v21 = vadd.f32 %v6788_v47, %v6787_v4 }
 0xedf   : > { %v9918_v1 = vpop.f32.mrf.mxu1 }
 0xee1   : > { %v9920_v10 = vpop.f32.mrf.mxu0  ;;  %v9922_v17 = vpop.f32.mrf.mxu1 }
 0xee3   : > { %v9924_v15 = vpop.f32.mrf.mxu0 }
 0xee4   : > { %v6792_v4 = vadd.f32 %v9924_v15, %v9920_v10 }
 0xee5   : > { %v9926_v44 = vpop.f32.mrf.mxu1 }
 0xee7   : > { %v9928_v0 = vpop.f32.mrf.mxu0  ;;  %v9930_v58 = vpop.f32.mrf.mxu1 }
 0xee9   : > { %v9932_v16 = vpop.f32.mrf.mxu0 }
 0xeeb   : > { %v9934_v62 = vpop.f32.mrf.mxu1 }
 0xeed   : > { %v9936_v11 = vpop.f32.mrf.mxu0  ;;  %v9938_v61 = vpop.f32.mrf.mxu1 }
 0xeef   : > { %v9940_v20 = vpop.f32.mrf.mxu0 }
 0xef2   : > { %v6834_v36 = vpop.f32.mrf.mxu1 }
 0xef3   : > { %v9942_v3 = vpop.f32.mrf.mxu0 }
 0xef4   : > { %v6835_v5 = vpop.f32.mrf.mxu1 }
 0xef5   : > { %v9944_v63 = vpop.f32.mrf.mxu0  ;;  %v6836_v39 = vadd.f32 %v6835_v5, %v6834_v36  ;;  %v4643_v36 = vsub.f32 1.0, %v10661_v7  ;;  %v4268_v5 = vadd.f32 %v6730_v25, %v4164_v52 }
 0xef6   : > { %v6837_v53 = vpop.f32.mrf.mxu1 }
 0xef7   : > { %v6890_v6 = vpop.f32.mrf.mxu0  ;;  %v4468_v57 = vadd.f32 %v6836_v39, %v4363_v41  ;;  %v4373_v55 = vadd.f32 %v6786_v2, %v4268_v5 }
 0xef8   : > { %v6838_v45 = vpop.f32.mrf.mxu1 }
 0xef9   : > { %v6891_v56 = vpop.f32.mrf.mxu0  ;;  %v6839_v42 = vadd.f32 %v6838_v45, %v6837_v53  ;;  %v4169_v53 = vpop.permute.xlu0 %4168  ;;  %v10662_v45 = vld [vmem:[#allocation19_spill] sm:$0xff] }
 0xefa   : > { %v6892_v59 = vadd.f32 %v6891_v56, %v6890_v6  ;;  %v6840_v43 = vpop.f32.mrf.mxu1  ;;  %v4644_v27 = vsub.f32 1.0, %v10662_v45  ;;  %v4273_v25 = vadd.f32 %v6733_v9, %v4169_v53 }
 0xefb   : > { %v6893_v60 = vpop.f32.mrf.mxu0  ;;  %v4473_v49 = vadd.f32 %v6839_v42, %v4368_v23  ;;  %v10663_v23 = vld [vmem:[#allocation22_spill] sm:$0xff] }
 0xefc   : > { %v4573_v40 = vadd.f32 %v6892_v59, %v4468_v57  ;;  %v6841_v51 = vpop.f32.mrf.mxu1  ;;  %v4378_v2 = vadd.f32 %v6789_v21, %v4273_v25 }
 0xefd   : > { %v6894_v28 = vpop.f32.mrf.mxu0  ;;  %v6842_v19 = vadd.f32 %v6841_v51, %v6840_v43  ;;  %v4174_v43 = vpop.permute.xlu1 %4173 }
 0xefe   : > { %v4611_v14 = vmax.f32 %v4573_v40, 0.0  ;;  %v6895_v13 = vadd.f32 %v6894_v28, %v6893_v60  ;;  %v6843_v12 = vpop.f32.mrf.mxu1  ;;  %v4645_v40 = vsub.f32 1.0, %v10663_v23  ;;  %v4278_v51 = vadd.f32 %v6736_v34, %v4174_v43 }
 0xeff   : > { %v6896_v39 = vpop.f32.mrf.mxu0  ;;  %v4478_v56 = vadd.f32 %v6842_v19, %v4373_v55  ;;  %v4179_v19 = vpop.permute.xlu0 %4178 }
 0xf00   : > { %v4635_v54 = vmul.f32 %v4611_v14, %v10661_v7  ;;  %v4651_v6 = vmul.f32 %v4643_v36, %v4611_v14  ;;  %v4578_v41 = vadd.f32 %v6895_v13, %v4473_v49  ;;  %v6844_v8 = vpop.f32.mrf.mxu1  ;;  %v6739_v7 = vadd.f32 %v9922_v17, %v9918_v1 }
 0xf01   : > { %v6897_v22 = vpop.f32.mrf.mxu0  ;;  %v6845_v57 = vadd.f32 %v6844_v8, %v6843_v12  ;;  %v4383_v15 = vadd.f32 %v6792_v4, %v4278_v51  ;;  %v6795_v13 = vadd.f32 %v9932_v16, %v9928_v0  ;;  %v6798_v0 = vadd.f32 %v9940_v20, %v9936_v11  ;;  %v4184_v34 = vpop.permute.xlu1 %4183 }
 0xf02   : > { %v4612_v31 = vmax.f32 %v4578_v41, 0.0  ;;  %v6898_v42 = vadd.f32 %v6897_v22, %v6896_v39  ;;  %v6846_v59 = vpop.f32.mrf.mxu1  ;;  %7363 = vmatprep.mubr.msk.f32.mxu1 %vm4659_vm7, %v4651_v6  ;;  %7383 = vmatprep.mubr.msk.f32.mxu0 %vm4659_vm7, %v4635_v54  ;;  %v10664_v39 = vld [vmem:[#allocation21_spill] sm:$0xff]  ;;  %v4283_v21 = vadd.f32 %v6739_v7, %v4179_v19  ;;  %v6742_v54 = vadd.f32 %v9930_v58, %v9926_v44  ;;  %v10666_v7 = vld [vmem:[#allocation23_spill] sm:$0xff] }
 0xf03   : > { %v6899_v47 = vpop.f32.mrf.mxu0  ;;  %v4483_v5 = vadd.f32 %v6845_v57, %v4378_v2  ;;  %v4646_v53 = vsub.f32 1.0, %v10664_v39  ;;  %v10665_v57 = vld [vmem:[#allocation24_spill] sm:$0xff]  ;;  %v6745_v4 = vadd.f32 %v9938_v61, %v9934_v62 }
 0xf04   : > { %v4636_v60 = vmul.f32 %v10662_v45, %v4612_v31  ;;  %v4652_v52 = vmul.f32 %v4644_v27, %v4612_v31  ;;  %v4583_v30 = vadd.f32 %v6898_v42, %v4478_v56  ;;  %v6847_v35 = vpop.f32.mrf.mxu1  ;;  %v4388_v22 = vadd.f32 %v6795_v13, %v4283_v21 }
 0xf05   : > { %v6900_v36 = vpop.f32.mrf.mxu0  ;;  %v6848_v28 = vadd.f32 %v6847_v35, %v6846_v59  ;;  %v4647_v42 = vsub.f32 1.0, %v10665_v57  ;;  %v4288_v59 = vadd.f32 %v6742_v54, %v4184_v34  ;;  %v4189_v35 = vpop.permute.xlu0 %4188 }
 0xf06   : > { %v4613_v9 = vmax.f32 %v4583_v30, 0.0  ;;  %v6901_v49 = vadd.f32 %v6900_v36, %v6899_v47  ;;  %v6849_v10 = vpop.f32.mrf.mxu1  ;;  %7364 = vmatmul.mubr.msk.f32.vlgmr.msra.gmra.mxu1 %vm4659_vm7, %v4652_v52  ;;  %7384 = vmatmul.mubr.msk.f32.vlgmr.msra.gmra.mxu0 %vm4659_vm7, %v4636_v60  ;;  %v4648_v36 = vsub.f32 1.0, %v10666_v7 }
 0xf07   : > { %v6902_v14 = vpop.f32.mrf.mxu0  ;;  %v4488_v41 = vadd.f32 %v6848_v28, %v4383_v15  ;;  %v4393_v20 = vadd.f32 %v6798_v0, %v4288_v59 }
 0xf08   : > { %v4637_v12 = vmul.f32 %v4613_v9, %v10663_v23  ;;  %v4653_v55 = vmul.f32 %v4645_v40, %v4613_v9  ;;  %v4588_v1 = vadd.f32 %v6901_v49, %v4483_v5  ;;  %v6850_v17 = vpop.f32.mrf.mxu1  ;;  %v6801_v23 = vadd.f32 %v9944_v63, %v9942_v3 }
 0xf09   : > { %v6903_v6 = vpop.f32.mrf.mxu0  ;;  %v6851_v45 = vadd.f32 %v6850_v17, %v6849_v10  ;;  %v4293_v5 = vadd.f32 %v6745_v4, %v4189_v35 }
 0xf0a   : > { %v4614_v8 = vmax.f32 %v4588_v1, 0.0  ;;  %v6904_v27 = vadd.f32 %v6903_v6, %v6902_v14  ;;  %v6852_v25 = vpop.f32.mrf.mxu1  ;;  %7366 = vmatprep.mubr.msk.f32.mxu1 %vm4659_vm7, %v4653_v55  ;;  %7386 = vmatprep.mubr.msk.f32.mxu0 %vm4659_vm7, %v4637_v12  ;;  %v10667_v55 = vld [vmem:[#allocation26_spill] sm:$0xff] }
 0xf0b   : > { %v6905_v16 = vpop.f32.mrf.mxu0  ;;  %v4493_v43 = vadd.f32 %v6851_v45, %v4388_v22  ;;  %v4398_v19 = vadd.f32 %v6801_v23, %v4293_v5  ;;  %v4649_v1 = vsub.f32 1.0, %v10667_v55 }
 0xf0c   : > { %v4638_v56 = vmul.f32 %v10664_v39, %v4614_v8  ;;  %v4654_v31 = vmul.f32 %v4646_v53, %v4614_v8  ;;  %v4593_v44 = vadd.f32 %v6904_v27, %v4488_v41  ;;  %v6853_v58 = vpop.f32.mrf.mxu1  ;;  %v10668_v41 = vld [vmem:[#allocation25_spill] sm:$0xff] }
 0xf0d   : > { %v6906_v47 = vpop.f32.mrf.mxu0  ;;  %v6854_v60 = vadd.f32 %v6853_v58, %v6852_v25  ;;  %v4650_v8 = vsub.f32 1.0, %v10668_v41 }
 0xf0e   : > { %v4615_v2 = vmax.f32 %v4593_v44, 0.0  ;;  %v6907_v52 = vadd.f32 %v6906_v47, %v6905_v16  ;;  %v6855_v11 = vpop.f32.mrf.mxu1  ;;  %7367 = vmatmul.mubr.msk.f32.gmra.mxu1 %vm4659_vm7, %v4654_v31  ;;  %7387 = vmatmul.mubr.msk.f32.gmra.mxu0 %vm4659_vm7, %v4638_v56 }
 0xf0f   : > { %v6908_v30 = vpop.f32.mrf.mxu0  ;;  %v4498_v28 = vadd.f32 %v6854_v60, %v4393_v20 }
 0xf10   : > { %v4639_v40 = vmul.f32 %v4615_v2, %v10665_v57  ;;  %v4655_v51 = vmul.f32 %v4647_v42, %v4615_v2  ;;  %v4598_v62 = vadd.f32 %v6907_v52, %v4493_v43  ;;  %v6856_v61 = vpop.f32.mrf.mxu1 }
 0xf11   : > { %v6909_v9 = vpop.f32.mrf.mxu0  ;;  %v6857_v10 = vadd.f32 %v6856_v61, %v6855_v11 }
 0xf12   : > { %v4616_v49 = vmax.f32 %v4598_v62, 0.0  ;;  %v6910_v15 = vadd.f32 %v6909_v9, %v6908_v30  ;;  %7369 = vmatprep.mubr.msk.f32.mxu1 %vm4659_vm7, %v4655_v51  ;;  %7389 = vmatprep.mubr.msk.f32.mxu0 %vm4659_vm7, %v4639_v40 }
 0xf13   : > { %v6911_v14 = vpop.f32.mrf.mxu0  ;;  %v4503_v17 = vadd.f32 %v6857_v10, %v4398_v19 }
 0xf14   : > { %v4640_v3 = vmul.f32 %v10666_v7, %v4616_v49  ;;  %v4656_v63 = vmul.f32 %v4648_v36, %v4616_v49  ;;  %v4603_v13 = vadd.f32 %v6910_v15, %v4498_v28 }
 0xf15   : > { %v6912_v12 = vpop.f32.mrf.mxu0 }
 0xf16   : > { %v4617_v39 = vmax.f32 %v4603_v13, 0.0  ;;  %v6913_v53 = vadd.f32 %v6912_v12, %v6911_v14  ;;  %7370 = vmatmul.mubr.msk.f32.gmra.mxu1 %vm4659_vm7, %v4656_v63  ;;  %7390 = vmatmul.mubr.msk.f32.gmra.mxu0 %vm4659_vm7, %v4640_v3 }
 0xf18   : > { %v4641_v21 = vmul.f32 %v4617_v39, %v10667_v55  ;;  %v4657_v54 = vmul.f32 %v4649_v1, %v4617_v39  ;;  %v4608_v6 = vadd.f32 %v6913_v53, %v4503_v17 }
 0xf1a   : > { %v4618_v45 = vmax.f32 %v4608_v6, 0.0  ;;  %7372 = vmatprep.mubr.msk.f32.mxu1 %vm4659_vm7, %v4657_v54  ;;  %7392 = vmatprep.mubr.msk.f32.mxu0 %vm4659_vm7, %v4641_v21 }
 0xf1c   : > { %v4642_v27 = vmul.f32 %v10668_v41, %v4618_v45  ;;  %v4658_v25 = vmul.f32 %v4650_v8, %v4618_v45  ;;  %v5150_v41 = vld [vmem:[%s10453_s9 + $0x8] sm:$0xff]  ;;  %v5152_v8 = vld [vmem:[%s10453_s9 + $0x18] sm:$0xff] }
 0xf1d   : > { %v5166_v45 = vld [vmem:[%s10454_s10 + $0x8] sm:$0xff] }
 0xf1e   : > { %7373 = vmatmul.mubr.msk.f32.gmra.mxu1 %vm4659_vm7, %v4658_v25  ;;  %7393 = vmatmul.mubr.msk.f32.gmra.mxu0 %vm4659_vm7, %v4642_v27  ;;  %v5165_v27 = vld [vmem:[%s10454_s10] sm:$0xff]  ;;  %v5168_v25 = vld [vmem:[%s10454_s10 + $0x18] sm:$0xff] }
 0xf1f   : > { %5253 = vmatprep.mubr.f32.mxu1 %v5150_v41  ;;  %5338 = vmatprep.mubr.f32.mxu0 %v5152_v8 }
 0xfc6   : > { %v7365_v0 = vpop.f32.mrf.mxu1  ;;  %v7385_v16 = vpop.f32.mrf.mxu0 }
 0xfc7   : > { %v4892_v34 = vadd.f32 %v7385_v16, %v7365_v0  ;;  %v5167_v0 = vld [vmem:[%s10454_s10 + $0x10] sm:$0xff] }
 0xfc8   : > { %v4754_v22 = vpop.f32.mrf.mxu1  ;;  %v4886_v56 = vpop.f32.mrf.mxu0 }
 0xfc9   : > { %v4887_v31 = vadd.f32 %v4886_v56, %v4754_v22  ;;  %4935 = vrot.lane.b32.xlu1 %v4892_v34, %s10513_s18 }
 0xfcb   : > { %4933 = vrot.lane.b32.xlu0 %v4887_v31, %s10513_s18 }
 0xfce   : > { %v7368_v44 = vpop.f32.mrf.mxu1  ;;  %v7388_v58 = vpop.f32.mrf.mxu0 }
 0xfcf   : > { %v4902_v57 = vadd.f32 %v7388_v58, %v7368_v44 }
 0xfd0   : > { %v4764_v42 = vpop.f32.mrf.mxu1  ;;  %v4896_v59 = vpop.f32.mrf.mxu0 }
 0xfd1   : > { %v4897_v4 = vadd.f32 %v4896_v59, %v4764_v42  ;;  %4939 = vrot.lane.b32.xlu1 %v4902_v57, %s10513_s18 }
 0xfd3   : > { %4937 = vrot.lane.b32.xlu0 %v4897_v4, %s10513_s18 }
 0xfd6   : > { %v7371_v47 = vpop.f32.mrf.mxu1  ;;  %v7391_v43 = vpop.f32.mrf.mxu0 }
 0xfd7   : > { %v4912_v2 = vadd.f32 %v7391_v43, %v7371_v47 }
 0xfd8   : > { %v4774_v60 = vpop.f32.mrf.mxu1  ;;  %v4906_v52 = vpop.f32.mrf.mxu0 }
 0xfd9   : > { %v4907_v11 = vadd.f32 %v4906_v52, %v4774_v60  ;;  %4943 = vrot.lane.b32.xlu1 %v4912_v2, %s10513_s18 }
 0xfdb   : > { %4941 = vrot.lane.b32.xlu0 %v4907_v11, %s10513_s18 }
 0xfde   : > { %v7374_v20 = vpop.f32.mrf.mxu1  ;;  %v7394_v30 = vpop.f32.mrf.mxu0 }
 0xfdf   : > { %v4922_v35 = vadd.f32 %v7394_v30, %v7374_v20 }
 0xfe0   : > { %v4784_v23 = vpop.f32.mrf.mxu1  ;;  %v4916_v40 = vpop.f32.mrf.mxu0 }
 0xfe1   : > { %v4917_v51 = vadd.f32 %v4916_v40, %v4784_v23  ;;  %4947 = vrot.lane.b32.xlu1 %v4922_v35, %s10513_s18 }
 0xfe3   : > { %4945 = vrot.lane.b32.xlu0 %v4917_v51, %s10513_s18 }
0x103b   : > { %v4936_v62 = vpop.permute.xlu1 %4935 }
0x103c   : > { %v10003_v61 = vsel %vm3694_vm10, 0.0, %v4936_v62 }
0x103d   : > { %v10007_v7 = vsel %vm1085_vm5, %v10003_v61, 0.0  ;;  %v4934_v36 = vpop.permute.xlu0 %4933 }
0x103e   : > { %5031 = vrot.lane.b32.xlu1 %v10007_v7, %s10557_s1  ;;  %5127 = vrot.lane.b32.xlu0 %v10007_v7, %s10558_s28  ;;  %v10014_v5 = vsel %vm3694_vm10, 0.0, %v4934_v36 }
0x103f   : > { %v10022_v28 = vsel %vm1085_vm5, %v10014_v5, 0.0 }
0x1042   : > { %4983 = vrot.lane.b32.xlu1 %v10007_v7, %s10551_s20  ;;  %5079 = vrot.lane.b32.xlu0 %v10007_v7, %s10546_s25 }
0x1043   : > { %v4940_v9 = vpop.permute.xlu1 %4939 }
0x1044   : > { %v10025_v49 = vsel %vm3694_vm10, 0.0, %v4940_v9 }
0x1045   : > { %v4968_v10 = vsel %vm1085_vm5, %v10025_v49, 0.0  ;;  %v4938_v15 = vpop.permute.xlu0 %4937 }
0x1046   : > { %5125 = vrot.lane.b32.xlu0 %v10022_v28, %s10558_s28  ;;  %5029 = vrot.lane.b32.xlu1 %v10022_v28, %s10557_s1  ;;  %v10037_v14 = vsel %vm3694_vm10, 0.0, %v4938_v15 }
0x1047   : > { %v4967_v19 = vsel %vm1085_vm5, %v10037_v14, 0.0 }
0x104a   : > { %5131 = vrot.lane.b32.xlu0 %v4968_v10, %s10558_s28  ;;  %4981 = vrot.lane.b32.xlu1 %v10022_v28, %s10551_s20 }
0x104b   : > { %v4944_v3 = vpop.permute.xlu1 %4943 }
0x104c   : > { %v10047_v63 = vsel %vm3694_vm10, 0.0, %v4944_v3 }
0x104d   : > { %v4970_v13 = vsel %vm1085_vm5, %v10047_v63, 0.0  ;;  %v4942_v12 = vpop.permute.xlu0 %4941 }
0x104e   : > { %5083 = vrot.lane.b32.xlu0 %v4968_v10, %s10546_s25  ;;  %5077 = vrot.lane.b32.xlu1 %v10022_v28, %s10546_s25  ;;  %v10058_v55 = vsel %vm3694_vm10, 0.0, %v4942_v12 }
0x104f   : > { %v4969_v1 = vsel %vm1085_vm5, %v10058_v55, 0.0 }
0x1052   : > { %5035 = vrot.lane.b32.xlu1 %v4968_v10, %s10557_s1  ;;  %5129 = vrot.lane.b32.xlu0 %v4967_v19, %s10558_s28 }
0x1053   : > { %v4948_v17 = vpop.permute.xlu1 %4947 }
0x1054   : > { %v10069_v39 = vsel %vm3694_vm10, 0.0, %v4948_v17 }
0x1055   : > { %v4972_v53 = vsel %vm1085_vm5, %v10069_v39, 0.0  ;;  %v4946_v21 = vpop.permute.xlu0 %4945 }
0x1056   : > { %4987 = vrot.lane.b32.xlu1 %v4968_v10, %s10551_s20  ;;  %5081 = vrot.lane.b32.xlu0 %v4967_v19, %s10546_s25  ;;  %v10084_v54 = vsel %vm3694_vm10, 0.0, %v4946_v21 }
0x1057   : > { %v4971_v6 = vsel %vm1085_vm5, %v10084_v54, 0.0 }
0x105a   : > { %5135 = vrot.lane.b32.xlu0 %v4970_v13, %s10558_s28  ;;  %5033 = vrot.lane.b32.xlu1 %v4967_v19, %s10557_s1 }
0x105e   : > { %5087 = vrot.lane.b32.xlu0 %v4970_v13, %s10546_s25  ;;  %4985 = vrot.lane.b32.xlu1 %v4967_v19, %s10551_s20 }
0x1062   : > { %5063 = vrot.lane.b32.xlu0 %v4970_v13, %s10548_s27  ;;  %5039 = vrot.lane.b32.xlu1 %v4970_v13, %s10557_s1 }
0x1066   : > { %4991 = vrot.lane.b32.xlu1 %v4970_v13, %s10551_s20  ;;  %5133 = vrot.lane.b32.xlu0 %v4969_v1, %s10558_s28 }
0x106a   : > { %5015 = vrot.lane.b32.xlu1 %v4970_v13, %s10545_s0  ;;  %5085 = vrot.lane.b32.xlu0 %v4969_v1, %s10546_s25 }
0x106e   : > { %5111 = vrot.lane.b32.xlu1 %v4970_v13, %s10559_s30  ;;  %5013 = vrot.lane.b32.xlu0 %v4969_v1, %s10545_s0 }
0x1072   : > { %4995 = vrot.lane.b32.xlu0 %v4972_v53, %s10551_s20  ;;  %5037 = vrot.lane.b32.xlu1 %v4969_v1, %s10557_s1 }
0x1076   : > { %5139 = vrot.lane.b32.xlu0 %v4972_v53, %s10558_s28  ;;  %4989 = vrot.lane.b32.xlu1 %v4969_v1, %s10551_s20 }
0x107a   : > { %5091 = vrot.lane.b32.xlu0 %v4972_v53, %s10546_s25  ;;  %5043 = vrot.lane.b32.xlu1 %v4972_v53, %s10557_s1 }
0x107e   : > { %5067 = vrot.lane.b32.xlu0 %v4972_v53, %s10548_s27  ;;  %5019 = vrot.lane.b32.xlu1 %v4972_v53, %s10545_s0 }
0x1082   : > { %5109 = vrot.lane.b32.xlu0 %v4969_v1, %s10559_s30  ;;  %5115 = vrot.lane.b32.xlu1 %v4972_v53, %s10559_s30 }
0x1086   : > { %5009 = vrot.lane.b32.xlu0 %v4967_v19, %s10545_s0  ;;  %5041 = vrot.lane.b32.xlu1 %v4971_v6, %s10557_s1 }
0x108a   : > { %5137 = vrot.lane.b32.xlu0 %v4971_v6, %s10558_s28  ;;  %4993 = vrot.lane.b32.xlu1 %v4971_v6, %s10551_s20 }
0x108e   : > { %5089 = vrot.lane.b32.xlu0 %v4971_v6, %s10546_s25  ;;  %5011 = vrot.lane.b32.xlu1 %v4968_v10, %s10545_s0 }
0x1092   : > { %5059 = vrot.lane.b32.xlu0 %v4968_v10, %s10548_s27  ;;  %5061 = vrot.lane.b32.xlu1 %v4969_v1, %s10548_s27 }
0x1096   : > { %5017 = vrot.lane.b32.xlu0 %v4971_v6, %s10545_s0  ;;  %5107 = vrot.lane.b32.xlu1 %v4968_v10, %s10559_s30 }
0x109a   : > { %5113 = vrot.lane.b32.xlu0 %v4971_v6, %s10559_s30  ;;  %5007 = vrot.lane.b32.xlu1 %v10007_v7, %s10545_s0 }
0x109e   : > { %5105 = vrot.lane.b32.xlu0 %v4967_v19, %s10559_s30  ;;  %5065 = vrot.lane.b32.xlu1 %v4971_v6, %s10548_s27 }
0x10a2   : > { %5005 = vrot.lane.b32.xlu0 %v10022_v28, %s10545_s0  ;;  %5057 = vrot.lane.b32.xlu1 %v4967_v19, %s10548_s27 }
0x10a6   : > { %5055 = vrot.lane.b32.xlu0 %v10007_v7, %s10548_s27  ;;  %5103 = vrot.lane.b32.xlu1 %v10007_v7, %s10559_s30 }
0x10aa   : > { %5053 = vrot.lane.b32.xlu0 %v10022_v28, %s10548_s27  ;;  %5101 = vrot.lane.b32.xlu1 %v10022_v28, %s10559_s30 }
0x10ae   : > { %5176 = vperm.xlu0 %7529, %v5166_v45   ;;  %5171 = vperm.xlu1 %7530, %v5165_v27  }
0x10b0   : > { %v10134_v16 = vpop.permute.xlu1 %5031  ;;  %v10136_v34 = vpop.permute.xlu0 %5127 }
0x10b2   : > { %5186 = vperm.xlu0 %7529, %v5168_v25   ;;  %5181 = vperm.xlu1 %7530, %v5167_v0  }
0x10b4   : > { %v10138_v22 = vpop.permute.xlu1 %4983  ;;  %v10140_v56 = vpop.permute.xlu0 %5079 }
0x10b8   : > { %v10142_v31 = vpop.permute.xlu1 %5029  ;;  %v10144_v44 = vpop.permute.xlu0 %5125 }
0x10bc   : > { %v10146_v58 = vpop.permute.xlu1 %4981  ;;  %v5132_v57 = vpop.permute.xlu0 %5131 }
0x10c0   : > { %v10148_v42 = vpop.permute.xlu1 %5077  ;;  %v5084_v59 = vpop.permute.xlu0 %5083 }
0x10c4   : > { %v5036_v4 = vpop.permute.xlu1 %5035  ;;  %v5130_v47 = vpop.permute.xlu0 %5129 }
0x10c8   : > { %v4988_v43 = vpop.permute.xlu1 %4987  ;;  %v5082_v2 = vpop.permute.xlu0 %5081 }
0x10cc   : > { %v5034_v60 = vpop.permute.xlu1 %5033  ;;  %v5136_v52 = vpop.permute.xlu0 %5135 }
0x10d0   : > { %v4986_v11 = vpop.permute.xlu1 %4985  ;;  %v5088_v20 = vpop.permute.xlu0 %5087 }
0x10d4   : > { %v5040_v30 = vpop.permute.xlu1 %5039  ;;  %v10150_v35 = vpop.permute.xlu0 %5063 }
0x10d8   : > { %v4992_v23 = vpop.permute.xlu1 %4991  ;;  %v5134_v40 = vpop.permute.xlu0 %5133 }
0x10dc   : > { %v5016_v51 = vpop.permute.xlu1 %5015  ;;  %v5086_v62 = vpop.permute.xlu0 %5085 }
0x10e0   : > { %v10152_v7 = vpop.permute.xlu1 %5111  ;;  %v10154_v36 = vpop.permute.xlu0 %5013 }
0x10e4   : > { %v5038_v9 = vpop.permute.xlu1 %5037  ;;  %v4996_v28 = vpop.permute.xlu0 %4995 }
0x10e8   : > { %v4990_v10 = vpop.permute.xlu1 %4989  ;;  %v5140_v15 = vpop.permute.xlu0 %5139 }
0x10e9   : > { %6982 = vmatprep.subr.mxu0 %v5140_v15 }
0x10ec   : > { %v5044_v19 = vpop.permute.xlu1 %5043  ;;  %v5092_v3 = vpop.permute.xlu0 %5091 }
0x10ed   : > { %6938 = vmatprep.subr.mxu1 %v5044_v19  ;;  %6983 = vmatpush3.msra.mxu0 %v5092_v3 }
0x10ee   : > { %6939 = vmatpush3.msra.mxu1 %v4996_v28 }
0x10f0   : > { %v5020_v13 = vpop.permute.xlu1 %5019  ;;  %v5068_v12 = vpop.permute.xlu0 %5067 }
0x10f4   : > { %v5116_v1 = vpop.permute.xlu1 %5115  ;;  %v5110_v17 = vpop.permute.xlu0 %5109 }
0x10f8   : > { %v5042_v53 = vpop.permute.xlu1 %5041  ;;  %v5010_v21 = vpop.permute.xlu0 %5009 }
0x10f9   : > { %6940 = vmatprep.subr.mxu1 %v5042_v53 }
0x10fc   : > { %v4994_v6 = vpop.permute.xlu1 %4993  ;;  %v5138_v41 = vpop.permute.xlu0 %5137 }
0x10fd   : > { %6941 = vmatpush3.msra.mxu1 %v4994_v6  ;;  %6984 = vmatprep.subr.mxu0 %v5138_v41 }
0x10fe   : > { %6942 = vmatprep.subr.mxu1 %v5040_v30 }
0x10ff   : > { %6943 = vmatpush3.msra.mxu1 %v4992_v23  ;;  %v10670_v23 = vld [vmem:[#allocation11_spill] sm:$0xff] }
0x1100   : > { %v5012_v8 = vpop.permute.xlu1 %5011  ;;  %6944 = vmatprep.subr.mxu1 %v5038_v9  ;;  %v5090_v45 = vpop.permute.xlu0 %5089 }
0x1101   : > { %6945 = vmatpush3.msra.mxu1 %v4990_v10  ;;  %6985 = vmatpush3.msra.mxu0 %v5090_v45 }
0x1102   : > { %6946 = vmatprep.subr.mxu1 %v5036_v4  ;;  %6986 = vmatprep.subr.mxu0 %v5136_v52  ;;  %v5164_v52 = vld [vmem:[%s10453_s9 + $0x78] sm:$0xff] }
0x1103   : > { %6947 = vmatpush3.msra.mxu1 %v4988_v43  ;;  %6987 = vmatpush3.msra.mxu0 %v5088_v20  ;;  %v5160_v43 = vld [vmem:[%s10453_s9 + $0x58] sm:$0xff] }
0x1104   : > { %v5062_v27 = vpop.permute.xlu1 %5061  ;;  %6948 = vmatprep.subr.mxu1 %v5034_v60  ;;  %6988 = vmatprep.subr.mxu0 %v5134_v40  ;;  %v5060_v25 = vpop.permute.xlu0 %5059  ;;  %v5159_v60 = vld [vmem:[%s10453_s9 + $0x50] sm:$0xff]  ;;  %v10669_v20 = vld [vmem:[#allocation10_spill] sm:$0xff]  ;;  %v5364_v40 = vmul.u32 2, %v10670_v23 }
0x1105   : > { %6949 = vmatpush3.msra.mxu1 %v4986_v11  ;;  %6989 = vmatpush3.msra.mxu0 %v5086_v62  ;;  %v5163_v11 = vld [vmem:[%s10453_s9 + $0x70] sm:$0xff]  ;;  %v5365_v30 = vmul.u32 2, %v10669_v20 }
0x1106   : > { %6950 = vmatprep.subr.mxu1 %v10134_v16  ;;  %6990 = vmatprep.subr.mxu0 %v5132_v57  ;;  %v5158_v57 = vld [vmem:[%s10453_s9 + $0x48] sm:$0xff]  ;;  %vm5367_vm3 = vcmp.eq.s32.totalorder %v10649_v33, %v5364_v40 }
0x1107   : > { %6951 = vmatpush3.msra.mxu1 %v10138_v22  ;;  %6991 = vmatpush3.msra.mxu0 %v5084_v59  ;;  %v5155_v59 = vld [vmem:[%s10453_s9 + $0x30] sm:$0xff]  ;;  %vm5368_vm9 = vcmp.eq.s32.totalorder %v10649_v33, %v5365_v30 }
0x1108   : > { %v5108_v0 = vpop.permute.xlu1 %5107  ;;  %6952 = vmatprep.subr.mxu1 %v10142_v31  ;;  %6992 = vmatprep.subr.mxu0 %v5130_v47  ;;  %v5018_v4 = vpop.permute.xlu0 %5017  ;;  %v5154_v31 = vld [vmem:[%s10453_s9 + $0x28] sm:$0xff]  ;;  %v6283_v62 = vsel %vm5368_vm9, 1.0, %v10652_v29 }
0x1109   : > { %6953 = vmatpush3.msra.mxu1 %v10146_v58  ;;  %6993 = vmatpush3.msra.mxu0 %v5082_v2  ;;  %v5151_v58 = vld [vmem:[%s10453_s9 + $0x10] sm:$0xff]  ;;  %v5162_v47 = vld [vmem:[%s10453_s9 + $0x68] sm:$0xff]  ;;  %v5161_v2 = vld [vmem:[%s10453_s9 + $0x60] sm:$0xff] }
0x110a   : > { %6954 = vmatprep.subr.mxu1 %v5020_v13  ;;  %6994 = vmatprep.subr.mxu0 %v10136_v34 }
0x110b   : > { %6955 = vmatpush3.msk.msra.mxu1 %vm1085_vm5, %v10069_v39  ;;  %6995 = vmatpush3.msra.mxu0 %v10140_v56 }
0x110c   : > { %v5008_v16 = vpop.permute.xlu1 %5007  ;;  %6956 = vmatprep.subr.mxu1 %v5018_v4  ;;  %6996 = vmatprep.subr.mxu0 %v10144_v44  ;;  %v5114_v22 = vpop.permute.xlu0 %5113 }
0x110d   : > { %6957 = vmatpush3.msk.msra.mxu1 %vm1085_vm5, %v10084_v54  ;;  %6997 = vmatpush3.msra.mxu0 %v10148_v42  ;;  %v5157_v42 = vld [vmem:[%s10453_s9 + $0x40] sm:$0xff] }
0x110e   : > { %6958 = vmatprep.subr.mxu1 %v5016_v51  ;;  %6998 = vmatprep.subr.mxu0 %v5116_v1 }
0x110f   : > { %6959 = vmatpush3.msk.msra.mxu1 %vm1085_vm5, %v10047_v63  ;;  %6999 = vmatpush3.msra.mxu0 %v5068_v12 }
0x1110   : > { %v5066_v34 = vpop.permute.xlu1 %5065  ;;  %6960 = vmatprep.subr.mxu1 %v10154_v36  ;;  %7000 = vmatprep.subr.mxu0 %v5114_v22  ;;  %v5106_v39 = vpop.permute.xlu0 %5105  ;;  %v10671_v36 = vld [vmem:[#allocation12_spill] sm:$0xff]  ;;  %v10673_v22 = vld [vmem:[#allocation15_spill] sm:$0xff] }
0x1111   : > { %6961 = vmatpush3.msk.msra.mxu1 %vm1085_vm5, %v10058_v55  ;;  %7001 = vmatpush3.msra.mxu0 %v5066_v34  ;;  %v5363_v9 = vmul.u32 2, %v10671_v36  ;;  %v5392_v34 = vsub.f32 1.0, %v10673_v22 }
0x1112   : > { %6962 = vmatprep.subr.mxu1 %v5012_v8  ;;  %7002 = vmatprep.subr.mxu0 %v10152_v7  ;;  %v6285_v7 = vadd.s32 4294967295, %v5364_v40 }
0x1113   : > { %6963 = vmatpush3.msk.msra.mxu1 %vm1085_vm5, %v10025_v49  ;;  %7003 = vmatpush3.msra.mxu0 %v10150_v35  ;;  %v5149_v49 = vld [vmem:[%s10453_s9] sm:$0xff]  ;;  %v6286_v35 = vadd.s32 4294967295, %v5365_v30  ;;  %v6284_v28 = vadd.s32 4294967295, %v5363_v9  ;;  %vm5366_vm7 = vcmp.eq.s32.totalorder %v10649_v33, %v5363_v9 }
0x1114   : > { %v5058_v54 = vpop.permute.xlu1 %5057  ;;  %6964 = vmatprep.subr.mxu1 %v5010_v21  ;;  %7004 = vmatprep.subr.mxu0 %v5110_v17  ;;  %v5006_v63 = vpop.permute.xlu0 %5005  ;;  %vm5379_vm6 = vcmp.eq.s32.totalorder %v10649_v33, %v6285_v7  ;;  %v10672_v17 = vld [vmem:[#allocation16_spill] sm:$0xff] }
0x1115   : > { %6965 = vmatpush3.msk.msra.mxu1 %vm1085_vm5, %v10037_v14  ;;  %7005 = vmatpush3.msra.mxu0 %v5062_v27  ;;  %vm5378_vm11 = vcmp.eq.s32.totalorder %v10649_v33, %v6284_v28  ;;  %v5391_v38 = vsub.f32 1.0, %v10672_v17 }
0x1116   : > { %6966 = vmatprep.subr.mxu1 %v5008_v16  ;;  %7006 = vmatprep.subr.mxu0 %v5108_v0 }
0x1117   : > { %6967 = vmatpush3.msk.msra.mxu1 %vm1085_vm5, %v10003_v61  ;;  %7007 = vmatpush3.msra.mxu0 %v5060_v25  ;;  %v5153_v61 = vld [vmem:[%s10453_s9 + $0x20] sm:$0xff] }
0x1118   : > { %v5104_v55 = vpop.permute.xlu1 %5103  ;;  %6968 = vmatprep.subr.mxu1 %v5006_v63  ;;  %7008 = vmatprep.subr.mxu0 %v5106_v39  ;;  %v5056_v56 = vpop.permute.xlu0 %5055 }
0x1119   : > { %6969 = vmatpush3.msk.msra.mxu1 %vm1085_vm5, %v10014_v5  ;;  %7009 = vmatpush3.msra.mxu0 %v5058_v54  ;;  %v5156_v5 = vld [vmem:[%s10453_s9 + $0x38] sm:$0xff]  ;;  %vm5380_vm5 = vcmp.eq.s32.totalorder %v10649_v33, %v6286_v35 }
0x111a   : > { %5254 = vmatmul.mubr.f32.vlgmr.msra.gmra.mxu1 %v5149_v49  ;;  %7010 = vmatprep.subr.mxu0 %v5104_v55  ;;  %v6289_v51 = vsel %vm5380_vm5, 1.0, %v10652_v29 }
0x111b   : > { %7011 = vmatpush3.msra.mxu0 %v5056_v56  ;;  %5258 = vmatprep.mubr.f32.mxu1 %v5154_v31 }
0x111c   : > { %v5102_v14 = vpop.permute.xlu1 %5101  ;;  %v5054_v44 = vpop.permute.xlu0 %5053  ;;  %7395 = vmatprep.subr.msk.mxu1 %vm4684_vm8, %v6289_v51 }
0x111d   : > { %7012 = vmatprep.subr.mxu0 %v5102_v14  ;;  %7396 = vmatpush3.msk.msra.mxu1 %vm4684_vm8, %v6289_v51 }
0x111e   : > { %5259 = vmatmul.mubr.f32.gmra.mxu1 %v5153_v61  ;;  %7013 = vmatpush3.msra.mxu0 %v5054_v44 }
0x111f   : > { %5339 = vmatmul.mubr.f32.vlgmr.msra.gmra.mxu0 %v5151_v58  ;;  %5263 = vmatprep.mubr.f32.mxu1 %v5158_v57 }
0x1120   : > { %5343 = vmatprep.mubr.f32.mxu0 %v5156_v5  ;;  %7415 = vmatprep.subr.msk.mxu0 %vm4684_vm8, %v6283_v62  ;;  %v10674_v5 = vld [vmem:[#allocation18_spill] sm:$0xff] }
0x1121   : > { %7416 = vmatpush3.msk.msra.mxu0 %vm4684_vm8, %v6283_v62  ;;  %7397 = vmatprep.subr.msk.mxu1 %vm5379_vm6, %v10656_v46 }
0x1122   : > { %5264 = vmatmul.mubr.f32.gmra.mxu1 %v5157_v42  ;;  %7417 = vmatprep.subr.msk.mxu0 %vm5367_vm3, %v10656_v46  ;;  %v5393_v42 = vsub.f32 1.0, %v10674_v5 }
0x1123   : > { %5344 = vmatmul.mubr.f32.gmra.mxu0 %v5155_v59  ;;  %5268 = vmatprep.mubr.f32.mxu1 %v5162_v47 }
0x1124   : > { %5348 = vmatprep.mubr.f32.mxu0 %v5160_v43  ;;  %7398 = vmatpush3.msk.msra.mxu1 %vm5379_vm6, %v10656_v46 }
0x1125   : > { %7418 = vmatpush3.msk.msra.mxu0 %vm5367_vm3, %v10656_v46  ;;  %7399 = vmatprep.subr.msk.mxu1 %vm5378_vm11, %v10656_v46 }
0x1126   : > { %5269 = vmatmul.mubr.f32.gmra.mxu1 %v5161_v2  ;;  %7419 = vmatprep.subr.msk.mxu0 %vm5366_vm7, %v10656_v46 }
0x1127   : > { %5349 = vmatmul.mubr.f32.gmra.mxu0 %v5159_v60  ;;  %7400 = vmatpush3.msk.msra.mxu1 %vm5378_vm11, %v10656_v46 }
0x1128   : > { %5353 = vmatprep.mubr.f32.mxu0 %v5164_v52  ;;  %7420 = vmatpush3.msk.msra.mxu0 %vm5366_vm7, %v10656_v46 }
0x1129   : > { %7401 = vmatprep.subr.msk.mxu1 %vm4630_vm2, %v10656_v46  ;;  %7421 = vmatprep.subr.msk.mxu0 %vm9849_vm13, %v10656_v46  ;;  %v5172_v26 = vpop.permute.xlu1 %5171 }
0x112a   : > { %7402 = vmatpush3.msk.msra.mxu1 %vm4630_vm2, %v10656_v46  ;;  %7422 = vmatpush3.msk.msra.mxu0 %vm9849_vm13, %v10656_v46 }
0x112b   : > { %5354 = vmatmul.mubr.f32.gmra.mxu0 %v5163_v11  ;;  %7403 = vmatprep.subr.msk.mxu1 %vm4629_vm4, %v10656_v46  ;;  %v10675_v11 = vld [vmem:[#allocation17_spill] sm:$0xff] }
0x112c   : > { %7423 = vmatprep.subr.msk.mxu0 %vm9870_vm12, %v10656_v46  ;;  %7404 = vmatpush3.msk.msra.mxu1 %vm4629_vm4, %v10656_v46  ;;  %v5394_v20 = vsub.f32 1.0, %v10675_v11 }
0x112d   : > { %7424 = vmatpush3.msk.msra.mxu0 %vm9870_vm12, %v10656_v46  ;;  %7405 = vmatprep.subr.msk.mxu1 %vm9151_vm1, %v10656_v46  ;;  %v5182_v39 = vpop.permute.xlu1 %5181 }
0x112e   : > { %7425 = vmatprep.subr.msk.mxu0 %vm9116_vm14, %v10656_v46  ;;  %7406 = vmatpush3.msk.msra.mxu1 %vm9151_vm1, %v10656_v46  ;;  %vm7715_vm1 = vmmov 0  }
0x112f   : > { %7426 = vmatpush3.msk.msra.mxu0 %vm9116_vm14, %v10656_v46  ;;  %7407 = vmatprep.subr.msk.mxu1 %vm9161_vm0, %v10656_v46  ;;  %vm5399_vm14 = vcmask 416768  }
0x1130   : > { %7427 = vmatprep.subr.msk.mxu0 %vm9125_vm15, %v10656_v46  ;;  %7408 = vmatpush3.msk.msra.mxu1 %vm9161_vm0, %v10656_v46  ;;  %vm5812_vm0 = vcmask 809984  }
0x1131   : > { %7428 = vmatpush3.msk.msra.mxu0 %vm9125_vm15, %v10656_v46  ;;  %v5177_v46 = vpop.permute.xlu0 %5176  ;;  %vm5620_vm15 = vcmask 842752  }
0x1132   : > { %7435 = vmatprep.subr.mxu0 %v10652_v29 }
0x1135   : > { %v5187_v58 = vpop.permute.xlu0 %5186 }
0x11da   : > { %v6970_v32 = vpop.f32.mrf.mxu1 }
0x11dc   : > { %v6971_v33 = vpop.f32.mrf.mxu1 }
0x11dd   : > { %v6972_v50 = vadd.f32 %v6971_v33, %v6970_v32 }
0x11de   : > { %v6973_v18 = vpop.f32.mrf.mxu1 }
0x11df   : > { %v7014_v48 = vpop.f32.mrf.mxu0  ;;  %v5256_v15 = vadd.f32 %v6972_v50, %v5172_v26 }
0x11e0   : > { %v6974_v24 = vpop.f32.mrf.mxu1 }
0x11e1   : > { %v7015_v10 = vpop.f32.mrf.mxu0  ;;  %v6975_v19 = vadd.f32 %v6974_v24, %v6973_v18 }
0x11e2   : > { %v7016_v3 = vadd.f32 %v7015_v10, %v7014_v48  ;;  %v6976_v13 = vpop.f32.mrf.mxu1 }
0x11e3   : > { %v7017_v37 = vpop.f32.mrf.mxu0  ;;  %v5261_v21 = vadd.f32 %v6975_v19, %v5177_v46  ;;  %v5714_v46 = vld [vmem:[#allocation6 + $0x8] sm:$0xff] }
0x11e4   : > { %v5341_v12 = vadd.f32 %v7016_v3, %v5256_v15  ;;  %v6977_v1 = vpop.f32.mrf.mxu1 }
0x11e5   : > { %v7018_v53 = vpop.f32.mrf.mxu0  ;;  %v6978_v41 = vadd.f32 %v6977_v1, %v6976_v13 }
0x11e6   : > { %v5359_v6 = vmax.f32 %v5341_v12, 0.0  ;;  %v7019_v8 = vadd.f32 %v7018_v53, %v7017_v37  ;;  %v6979_v45 = vpop.f32.mrf.mxu1  ;;  %v5804_v53 = vld [vmem:[%s10457_s13 + $0x60] sm:$0x7] }
0x11e7   : > { %v7020_v27 = vpop.f32.mrf.mxu0  ;;  %v5266_v63 = vadd.f32 %v6978_v41, %v5182_v39  ;;  %v5802_v41 = vld [vmem:[%s10457_s13 + $0x50] sm:$0xff] }
0x11e8   : > { %v5387_v25 = vmul.f32 %v5359_v6, %v10672_v17  ;;  %v5395_v0 = vmul.f32 %v5391_v38, %v5359_v6  ;;  %v5346_v4 = vadd.f32 %v7019_v8, %v5261_v21  ;;  %v6980_v16 = vpop.f32.mrf.mxu1  ;;  %v5803_v21 = vld [vmem:[%s10457_s13 + $0x58] sm:$0xff]  ;;  %v5715_v6 = vld [vmem:[%s10456_s12] sm:$0xff]  ;;  %v5801_v8 = vld [vmem:[%s10457_s13 + $0x48] sm:$0xff] }
0x11e9   : > { %v7021_v54 = vpop.f32.mrf.mxu0  ;;  %v6981_v55 = vadd.f32 %v6980_v16, %v6979_v45  ;;  %v5800_v45 = vld [vmem:[%s10457_s13 + $0x40] sm:$0xff] }
0x11ea   : > { %v5360_v49 = vmax.f32 %v5346_v4, 0.0  ;;  %v7022_v56 = vadd.f32 %v7021_v54, %v7020_v27  ;;  %7409 = vmatprep.mubr.msk.f32.mxu1 %vm5399_vm14, %v5395_v0  ;;  %7429 = vmatprep.mubr.msk.f32.mxu0 %vm5399_vm14, %v5387_v25  ;;  %v5799_v27 = vld [vmem:[%s10457_s13 + $0x38] sm:$0xff]  ;;  %v5798_v25 = vld [vmem:[%s10457_s13 + $0x30] sm:$0xff]  ;;  %v5797_v0 = vld [vmem:[%s10457_s13 + $0x28] sm:$0xff] }
0x11eb   : > { %v7023_v31 = vpop.f32.mrf.mxu0  ;;  %v5271_v59 = vadd.f32 %v6981_v55, %v5187_v58 }
0x11ec   : > { %v5388_v61 = vmul.f32 %v10673_v22, %v5360_v49  ;;  %v5396_v14 = vmul.f32 %v5392_v34, %v5360_v49  ;;  %v5351_v44 = vadd.f32 %v7022_v56, %v5266_v63 }
0x11ed   : > { %v7024_v57 = vpop.f32.mrf.mxu0 }
0x11ee   : > { %v5361_v47 = vmax.f32 %v5351_v44, 0.0  ;;  %v7025_v43 = vadd.f32 %v7024_v57, %v7023_v31  ;;  %7410 = vmatmul.mubr.msk.f32.vlgmr.msra.gmra.mxu1 %vm5399_vm14, %v5396_v14  ;;  %7430 = vmatmul.mubr.msk.f32.vlgmr.msra.gmra.mxu0 %vm5399_vm14, %v5388_v61 }
0x11ef   : > { %7436 = vmatpush3.msk.msra.mxu0 %vm4684_vm8, %v5804_v53 }
0x11f0   : > { %v5389_v2 = vmul.f32 %v5361_v47, %v10674_v5  ;;  %v5397_v60 = vmul.f32 %v5393_v42, %v5361_v47  ;;  %v5356_v52 = vadd.f32 %v7025_v43, %v5271_v59  ;;  %7437 = vmatprep.subr.mxu0 %v10652_v29 }
0x11f1   : > { %7438 = vmatpush3.msra.mxu0 %v5803_v21 }
0x11f2   : > { %v5362_v30 = vmax.f32 %v5356_v52, 0.0  ;;  %7412 = vmatprep.mubr.msk.f32.mxu1 %vm5399_vm14, %v5397_v60  ;;  %7432 = vmatprep.mubr.msk.f32.mxu0 %vm5399_vm14, %v5389_v2 }
0x11f3   : > { %7439 = vmatprep.subr.mxu0 %v10652_v29 }
0x11f4   : > { %v5390_v35 = vmul.f32 %v10675_v11, %v5362_v30  ;;  %v5398_v23 = vmul.f32 %v5394_v20, %v5362_v30  ;;  %7440 = vmatpush3.msra.mxu0 %v5802_v41 }
0x11f5   : > { %7441 = vmatprep.subr.mxu0 %v10652_v29 }
0x11f6   : > { %7413 = vmatmul.mubr.msk.f32.gmra.mxu1 %vm5399_vm14, %v5398_v23  ;;  %7433 = vmatmul.mubr.msk.f32.gmra.mxu0 %vm5399_vm14, %v5390_v35  ;;  %v5713_v23 = vld [vmem:[#allocation6] sm:$0xff] }
0x11f7   : > { %5785 = vmatprep.mubr.f32.mxu1 %v5714_v46  ;;  %7442 = vmatpush3.msra.mxu0 %v5801_v8 }
0x11f8   : > { %7443 = vmatprep.subr.mxu0 %v10652_v29  ;;  %7461 = vmatprep.mubr.msk.f32.mxu0 %vm7715_vm1, %v10652_v29 }
0x11f9   : > { %7444 = vmatpush3.msra.mxu0 %v5800_v45 }
0x11fa   : > { %7445 = vmatprep.subr.mxu0 %v10652_v29 }
0x11fb   : > { %7446 = vmatpush3.msra.mxu0 %v5799_v27 }
0x11fc   : > { %7447 = vmatprep.subr.mxu0 %v10652_v29 }
0x11fd   : > { %7448 = vmatpush3.msra.mxu0 %v5798_v25 }
0x11fe   : > { %7449 = vmatprep.subr.mxu0 %v10652_v29 }
0x11ff   : > { %7450 = vmatpush3.msra.mxu0 %v5797_v0 }
0x1200   : > { %7451 = vmatprep.subr.mxu0 %v10652_v29 }
0x12ae   : > { %v7411_v40 = vpop.f32.mrf.mxu1  ;;  %v7431_v51 = vpop.f32.mrf.mxu0 }
0x12af   : > { %v5587_v18 = vadd.f32 %v7431_v51, %v7411_v40  ;;  %v5796_v40 = vld [vmem:[%s10457_s13 + $0x20] sm:$0xff]  ;;  %v5795_v51 = vld [vmem:[%s10457_s13 + $0x18] sm:$0xff] }
0x12b0   : > { %v5481_v62 = vpop.f32.mrf.mxu1  ;;  %v5581_v7 = vpop.f32.mrf.mxu0  ;;  %7452 = vmatpush3.msra.mxu0 %v5796_v40 }
0x12b1   : > { %v5582_v48 = vadd.f32 %v5581_v7, %v5481_v62  ;;  %7453 = vmatprep.subr.mxu0 %v10652_v29  ;;  %v5794_v62 = vld [vmem:[%s10457_s13 + $0x10] sm:$0xff]  ;;  %v5793_v7 = vld [vmem:[%s10457_s13 + $0x8] sm:$0xff] }
0x12b2   : > { %7454 = vmatpush3.msra.mxu0 %v5795_v51 }
0x12b3   : > { %7455 = vmatprep.subr.mxu0 %v10652_v29 }
0x12b4   : > { %7456 = vmatpush3.msra.mxu0 %v5794_v62 }
0x12b5   : > { %7457 = vmatprep.subr.mxu0 %v10652_v29 }
0x12b6   : > { %v7414_v36 = vpop.f32.mrf.mxu1  ;;  %v7434_v9 = vpop.f32.mrf.mxu0  ;;  %7458 = vmatpush3.msra.mxu0 %v5793_v7 }
0x12b7   : > { %v5597_v28 = vadd.f32 %v7434_v9, %v7414_v36  ;;  %v5792_v36 = vld [vmem:[%s10457_s13] sm:$0xff]  ;;  %7459 = vmatprep.subr.mxu0 %v10652_v29 }
0x12b8   : > { %v5491_v32 = vpop.f32.mrf.mxu1  ;;  %v5591_v33 = vpop.f32.mrf.mxu0  ;;  %7460 = vmatpush3.msra.mxu0 %v5792_v36 }
0x12b9   : > { %v5592_v50 = vadd.f32 %v5591_v33, %v5491_v32  ;;  %5610 = vrot.lane.b32.xlu1 %v5597_v28, %s10676_s4 }
0x12bb   : > { %5608 = vrot.lane.b32.xlu0 %v5592_v50, %s10676_s4 }
0x12bd   : > { %5606 = vrot.lane.b32.xlu1 %v5587_v18, %s10676_s4 }
0x12bf   : > { %5604 = vrot.lane.b32.xlu0 %v5582_v48, %s10676_s4  ;;  %v6316_v48 = vld [vmem:[%s10458_s14] ss:$0 sm:$0xff]  ;;  %s566_s4 = scalar_lea.vmem %s10459_s15, %s10677_s23 }
0x132b   : > { %v5611_v24 = vpop.permute.xlu1 %5610 }
0x132c   : > { %v10338_v12 = vsel %vm3694_vm10, 0.0, %v5611_v24 }
0x132d   : > { %v5609_v26 = vpop.permute.xlu0 %5608  ;;  %v5624_v1 = vsel %vm5620_vm15, %v10338_v12, 0.0 }
0x132e   : > { %v10347_v17 = vsel %vm3694_vm10, 0.0, %v5609_v26 }
0x132f   : > { %v5607_v10 = vpop.permute.xlu1 %5606  ;;  %v5623_v38 = vsel %vm5620_vm15, %v10347_v17, 0.0 }
0x1330   : > { %v10322_v15 = vsel %vm3694_vm10, 0.0, %v5607_v10 }
0x1331   : > { %v5622_v19 = vsel %vm5620_vm15, %v10322_v15, 0.0  ;;  %v5605_v3 = vpop.permute.xlu0 %5604 }
0x1332   : > { %5703 = vrot.lane.b32.xlu1 %v5622_v19, %s10558_s28  ;;  %5655 = vrot.lane.b32.xlu0 %v5622_v19, %s10557_s1  ;;  %v10329_v13 = vsel %vm3694_vm10, 0.0, %v5605_v3  ;;  %vm5889_vm10 = vcmask 818176  }
0x1333   : > { %v5621_v37 = vsel %vm5620_vm15, %v10329_v13, 0.0 }
0x1336   : > { %5691 = vrot.lane.b32.xlu1 %v5622_v19, %s10559_s30  ;;  %5643 = vrot.lane.b32.xlu0 %v5622_v19, %s10545_s0 }
0x133a   : > { %5653 = vrot.lane.b32.xlu0 %v5621_v37, %s10557_s1  ;;  %5701 = vrot.lane.b32.xlu1 %v5621_v37, %s10558_s28 }
0x133e   : > { %5641 = vrot.lane.b32.xlu0 %v5621_v37, %s10545_s0  ;;  %5689 = vrot.lane.b32.xlu1 %v5621_v37, %s10559_s30 }
0x1342   : > { %5659 = vrot.lane.b32.xlu0 %v5624_v1, %s10557_s1  ;;  %5707 = vrot.lane.b32.xlu1 %v5624_v1, %s10558_s28 }
0x1346   : > { %5647 = vrot.lane.b32.xlu0 %v5624_v1, %s10545_s0  ;;  %5695 = vrot.lane.b32.xlu1 %v5624_v1, %s10559_s30 }
0x134a   : > { %5657 = vrot.lane.b32.xlu0 %v5623_v38, %s10557_s1  ;;  %5705 = vrot.lane.b32.xlu1 %v5623_v38, %s10558_s28 }
0x134e   : > { %5635 = vrot.lane.b32.xlu0 %v5624_v1, %s10551_s20  ;;  %5683 = vrot.lane.b32.xlu1 %v5624_v1, %s10546_s25 }
0x1352   : > { %5645 = vrot.lane.b32.xlu0 %v5623_v38, %s10545_s0  ;;  %5693 = vrot.lane.b32.xlu1 %v5623_v38, %s10559_s30 }
0x1356   : > { %5631 = vrot.lane.b32.xlu0 %v5622_v19, %s10551_s20  ;;  %5679 = vrot.lane.b32.xlu1 %v5622_v19, %s10546_s25 }
0x135a   : > { %5633 = vrot.lane.b32.xlu0 %v5623_v38, %s10551_s20  ;;  %5681 = vrot.lane.b32.xlu1 %v5623_v38, %s10546_s25 }
0x135e   : > { %5629 = vrot.lane.b32.xlu0 %v5621_v37, %s10551_s20  ;;  %5677 = vrot.lane.b32.xlu1 %v5621_v37, %s10546_s25 }
0x1362   : > { %5669 = vrot.lane.b32.xlu0 %v5623_v38, %s10548_s27  ;;  %5671 = vrot.lane.b32.xlu1 %v5624_v1, %s10548_s27 }
0x1366   : > { %5665 = vrot.lane.b32.xlu0 %v5621_v37, %s10548_s27  ;;  %5667 = vrot.lane.b32.xlu1 %v5622_v19, %s10548_s27 }
0x136a   : > { %5718 = vperm.xlu1 %7530, %v5715_v6  }
0x13a4   : > { %v5704_v4 = vpop.permute.xlu1 %5703  ;;  %v5656_v16 = vpop.permute.xlu0 %5655 }
0x13a8   : > { %v5692_v22 = vpop.permute.xlu1 %5691  ;;  %v5644_v34 = vpop.permute.xlu0 %5643 }
0x13ac   : > { %v5702_v39 = vpop.permute.xlu1 %5701  ;;  %v5654_v54 = vpop.permute.xlu0 %5653 }
0x13b0   : > { %v5690_v63 = vpop.permute.xlu1 %5689  ;;  %v5642_v49 = vpop.permute.xlu0 %5641 }
0x13b4   : > { %v5708_v55 = vpop.permute.xlu1 %5707  ;;  %v5660_v56 = vpop.permute.xlu0 %5659 }
0x13b5   : > { %7048 = vmatprep.subr.mxu1 %v5708_v55 }
0x13b6   : > { %7049 = vmatpush3.msra.mxu1 %v5660_v56 }
0x13b8   : > { %v5696_v31 = vpop.permute.xlu1 %5695  ;;  %v5648_v61 = vpop.permute.xlu0 %5647 }
0x13bc   : > { %v5706_v14 = vpop.permute.xlu1 %5705  ;;  %v5658_v44 = vpop.permute.xlu0 %5657 }
0x13bd   : > { %7050 = vmatprep.subr.mxu1 %v5706_v14 }
0x13be   : > { %7051 = vmatpush3.msra.mxu1 %v5658_v44 }
0x13bf   : > { %7052 = vmatprep.subr.mxu1 %v5704_v4 }
0x13c0   : > { %v5684_v58 = vpop.permute.xlu1 %5683  ;;  %7053 = vmatpush3.msra.mxu1 %v5656_v16  ;;  %v5636_v57 = vpop.permute.xlu0 %5635 }
0x13c1   : > { %7054 = vmatprep.subr.mxu1 %v5702_v39 }
0x13c2   : > { %7055 = vmatpush3.msra.mxu1 %v5654_v54 }
0x13c3   : > { %7056 = vmatprep.subr.mxu1 %v5696_v31 }
0x13c4   : > { %v5694_v5 = vpop.permute.xlu1 %5693  ;;  %7057 = vmatpush3.msra.mxu1 %v5648_v61  ;;  %v5646_v42 = vpop.permute.xlu0 %5645 }
0x13c5   : > { %7058 = vmatprep.subr.mxu1 %v5694_v5 }
0x13c6   : > { %7059 = vmatpush3.msra.mxu1 %v5646_v42 }
0x13c7   : > { %7060 = vmatprep.subr.mxu1 %v5692_v22 }
0x13c8   : > { %v5680_v59 = vpop.permute.xlu1 %5679  ;;  %7061 = vmatpush3.msra.mxu1 %v5644_v34  ;;  %v5632_v47 = vpop.permute.xlu0 %5631 }
0x13c9   : > { %7062 = vmatprep.subr.mxu1 %v5690_v63 }
0x13ca   : > { %7063 = vmatpush3.msra.mxu1 %v5642_v49 }
0x13cb   : > { %7064 = vmatprep.subr.mxu1 %v5684_v58 }
0x13cc   : > { %v5682_v43 = vpop.permute.xlu1 %5681  ;;  %7065 = vmatpush3.msra.mxu1 %v5636_v57  ;;  %v5634_v2 = vpop.permute.xlu0 %5633 }
0x13cd   : > { %7066 = vmatprep.subr.mxu1 %v5682_v43 }
0x13ce   : > { %7067 = vmatpush3.msra.mxu1 %v5634_v2 }
0x13cf   : > { %7068 = vmatprep.subr.mxu1 %v5680_v59 }
0x13d0   : > { %v5678_v60 = vpop.permute.xlu1 %5677  ;;  %7069 = vmatpush3.msra.mxu1 %v5632_v47  ;;  %v5630_v52 = vpop.permute.xlu0 %5629 }
0x13d1   : > { %7070 = vmatprep.subr.mxu1 %v5678_v60 }
0x13d2   : > { %7071 = vmatpush3.msra.mxu1 %v5630_v52 }
0x13d4   : > { %v5672_v11 = vpop.permute.xlu1 %5671  ;;  %v5670_v20 = vpop.permute.xlu0 %5669 }
0x13d5   : > { %7072 = vmatprep.subr.mxu1 %v5672_v11 }
0x13d6   : > { %7073 = vmatpush3.msk.msra.mxu1 %vm5620_vm15, %v10338_v12 }
0x13d7   : > { %7074 = vmatprep.subr.mxu1 %v5670_v20 }
0x13d8   : > { %v5668_v30 = vpop.permute.xlu1 %5667  ;;  %7075 = vmatpush3.msk.msra.mxu1 %vm5620_vm15, %v10347_v17  ;;  %v5666_v35 = vpop.permute.xlu0 %5665 }
0x13d9   : > { %7076 = vmatprep.subr.mxu1 %v5668_v30 }
0x13da   : > { %7077 = vmatpush3.msk.msra.mxu1 %vm5620_vm15, %v10322_v15 }
0x13db   : > { %7078 = vmatprep.subr.mxu1 %v5666_v35 }
0x13dc   : > { %7079 = vmatpush3.msk.msra.mxu1 %vm5620_vm15, %v10329_v13 }
0x13dd   : > { %5786 = vmatmul.mubr.f32.vlgmr.msra.gmra.mxu1 %v5713_v23 }
0x13e5   : > { %v5719_v33 = vpop.permute.xlu1 %5718 }
0x149d   : > { %v7080_v9 = vpop.f32.mrf.mxu1 }
0x149f   : > { %v7081_v28 = vpop.f32.mrf.mxu1 }
0x14a0   : > { %v7082_v32 = vadd.f32 %v7081_v28, %v7080_v9 }
0x14a2   : > { %v5788_v50 = vadd.f32 %v7082_v32, %v5719_v33 }
0x14a4   : > { %v5791_v18 = vmax.f32 %v5788_v50, 0.0 }
0x14a6   : > { %7462 = vmatmul.mubr.msk.f32.vlgmr.msra.gmra.mxu0 %vm5812_vm0, %v5791_v18 }
0x1566   : > { %v5885_v24 = vpop.f32.mrf.mxu0 }
0x1567   : > { %v5886_v29 = vadd.f32 %v6316_v48, %v5885_v24 }
0x1568   : > { %v7463_v26 = vpop.f32.mrf.mxu0 }
0x1569   : > { %5890 = vst.msk [vmem:[%s566_s4] sm:$0xff] %vm5889_vm10, %v5886_v29 }
0x156a PF: > { %s29_s21 = sadd.s32 1, %s7693_s21  }
0x156b   : > { %p26_p2 = scmp.ge.s32.totalorder %s29_s21, 4  }
0x156d   :  { %28 = sbr.rel (!%p26_p2) target bundleno = 8 (0x8), region = 135 }
0x1572   :  { %5926 = vsyncpa [#allocation3], 1 }
0x1573   :  { %5928 = vsyncpa [#allocation3 + $0x1], 1 }
0x1574   :  { %5929 = vsyncpa [#allocation5], 1 }

</bundles_post_ra>
